<compile_context>
chip_gen: v6e
topology: v6e:2x2x1
jax: 0.10.0
libtpu: 0.0.40
codegen_flags: <defaults>
</compile_context>

<pallas_src>
import functools

import jax
import jax.numpy as jnp
from jax.experimental import pallas as pl
from jax.experimental.pallas import tpu as pltpu

# logical (PyTorch) dims
X_DIM = 784
HIDDEN_DIM = 400
LATENT_DIM = 200
# lane-padded dims (multiples of 128)
XP = 896
HP = 512
LP = 256

# static offsets into the fused bias vector (all multiples of 128)
OFF_B1 = 0                     # encoder input1 bias   (HP)
OFF_B2 = OFF_B1 + HP           # encoder input2 bias   (HP)
OFF_BMV = OFF_B2 + HP          # [mean | var] bias     (2*LP)
OFF_BD1 = OFF_BMV + 2 * LP     # decoder hidden1 bias  (HP)
OFF_BD2 = OFF_BD1 + HP         # decoder hidden2 bias  (HP)
OFF_BO = OFF_BD2 + HP          # decoder output bias   (XP)
B_TOTAL = OFF_BO + XP          # 3456


def _leaky_relu(h, slope=0.2):
    return jnp.where(h >= 0, h, slope * h)


def _bdot(a, w_ref):
    """bf16 x bf16 matmul with f32 accumulation on the MXU."""
    return jnp.dot(
        a.astype(jnp.bfloat16), w_ref[...],
        preferred_element_type=jnp.float32,
    )


def vae_kernel(
    x_ref, eps_ref,
    # resident params: weights bf16, fused bias f32
    w_in1_ref, w_in2_ref, w_mv_ref, w_h1_ref, w_h2_ref, w_out_ref, b_all_ref,
    # outputs
    xhat_ref, mv_ref,
):
    x = x_ref[...]  # bf16

    def bias(off, n):
        return b_all_ref[:, off:off + n]  # (1, n) f32, 128-aligned static slice

    # ---- Encoder ----
    h = _leaky_relu(_bdot(x, w_in1_ref) + bias(OFF_B1, HP))
    h = _leaky_relu(_bdot(h, w_in2_ref) + bias(OFF_B2, HP))
    mv = _bdot(h, w_mv_ref) + bias(OFF_BMV, 2 * LP)   # [mean | log_var]
    mean = mv[:, :LP]
    log_var = mv[:, LP:]

    # ---- Reparameterization: z = mean + exp(0.5 * log_var) * eps ----
    z = mean + jnp.exp(0.5 * log_var) * eps_ref[...]

    # ---- Decoder ----
    hd = _leaky_relu(_bdot(z, w_h1_ref) + bias(OFF_BD1, HP))
    hd = _leaky_relu(_bdot(hd, w_h2_ref) + bias(OFF_BD2, HP))
    x_hat = jax.nn.sigmoid(_bdot(hd, w_out_ref) + bias(OFF_BO, XP))

    xhat_ref[...] = x_hat.astype(xhat_ref.dtype)   # bf16 store (lane-dense)
    mv_ref[...] = mv                               # f32 [mean | log_var]


def init_params(key):
    """Unpadded f32 params mirroring nn.Linear init. Weights are (in, out)
    (transpose of PyTorch's (out, in)) so the kernel does x @ W; biases (1, out)."""
    dims = [
        (X_DIM, HIDDEN_DIM),       # encoder input1
        (HIDDEN_DIM, HIDDEN_DIM),  # encoder input2
        (HIDDEN_DIM, LATENT_DIM),  # mean
        (HIDDEN_DIM, LATENT_DIM),  # var
        (LATENT_DIM, HIDDEN_DIM),  # decoder hidden1
        (HIDDEN_DIM, HIDDEN_DIM),  # decoder hidden2
        (HIDDEN_DIM, X_DIM),       # decoder output
    ]
    params = []
    for fan_in, fan_out in dims:
        key, kw, kb = jax.random.split(key, 3)
        bound = 1.0 / jnp.sqrt(fan_in)
        params.append(jax.random.uniform(
            kw, (fan_in, fan_out), jnp.float32, minval=-bound, maxval=bound))
        params.append(jax.random.uniform(
            kb, (1, fan_out), jnp.float32, minval=-bound, maxval=bound))
    return params


def _pad2(a, rows, cols):
    return jnp.pad(a, ((0, rows - a.shape[0]), (0, cols - a.shape[1])))


def prepare_params(params_f32):
    """Zero-pad to lane multiples, fuse mean/var weights, concat all biases.
    Returns [w1, w2, w_mv, w_d1, w_d2, w_out (all bf16), b_all (f32)]."""
    (w1, b1, w2, b2, wm, bm, wv, bv, dw1, db1, dw2, db2, dwo, dbo) = params_f32
    w_mv = jnp.concatenate([_pad2(wm, HP, LP), _pad2(wv, HP, LP)], axis=1)
    b_all = jnp.concatenate([
        _pad2(b1, 1, HP), _pad2(b2, 1, HP),
        _pad2(bm, 1, LP), _pad2(bv, 1, LP),
        _pad2(db1, 1, HP), _pad2(db2, 1, HP), _pad2(dbo, 1, XP),
    ], axis=1)  # (1, 3456) f32, zero-padded -> padded lanes stay exact
    return [
        _pad2(w1, XP, HP).astype(jnp.bfloat16),
        _pad2(w2, HP, HP).astype(jnp.bfloat16),
        w_mv.astype(jnp.bfloat16),
        _pad2(dw1, LP, HP).astype(jnp.bfloat16),
        _pad2(dw2, HP, HP).astype(jnp.bfloat16),
        _pad2(dwo, HP, XP).astype(jnp.bfloat16),
        b_all,
    ]


_BUFFERED1_SUPPORTED = None


def _buffered1_supported():
    """One-time probe: can this JAX lower pipeline_mode=pl.Buffered(1) on a
    top-level pallas_call BlockSpec? Falls back to default buffering if not."""
    global _BUFFERED1_SUPPORTED
    if _BUFFERED1_SUPPORTED is None:
        try:
            def _k(x_ref, o_ref):
                o_ref[...] = x_ref[...]
            out = pl.pallas_call(
                _k,
                out_shape=jax.ShapeDtypeStruct((8, 128), jnp.float32),
                grid=(1,),
                in_specs=[pl.BlockSpec((8, 128), lambda i: (0, 0),
                                       pipeline_mode=pl.Buffered(1))],
                out_specs=pl.BlockSpec((8, 128), lambda i: (0, 0)),
            )(jnp.ones((8, 128), jnp.float32))
            jax.block_until_ready(out)
            _BUFFERED1_SUPPORTED = True
        except Exception:
            _BUFFERED1_SUPPORTED = False
    return _BUFFERED1_SUPPORTED


def _round_up(n, m):
    return -(-n // m) * m


@functools.partial(jax.jit, static_argnames=("buffered1",))
def _vae_forward_jit(x, eps, padded_params, buffered1):
    B = x.shape[0]
    B8 = _round_up(B, 8)
    # Batch tile selection: single tile for tiny batches; >=2 grid steps as
    # soon as B > 128 (v7x has 2 TCs); bigger tiles for large batches to
    # amortize per-grid-step overhead.
    if B8 <= 128:
        TB = B8
    elif B8 <= 512:
        TB = 128
    else:
        TB = 256
    BP = _round_up(B8, TB)

    xp = jnp.pad(x, ((0, BP - B), (0, XP - X_DIM))).astype(jnp.bfloat16)
    epsp = jnp.pad(eps, ((0, BP - B), (0, LP - LATENT_DIM)))

    grid = (BP // TB,)

    def stream_spec(cols):
        return pl.BlockSpec((TB, cols), lambda i: (i, 0))

    def resident_spec(shape):
        # same block index every step -> fetched once, stays VMEM-resident;
        # single-buffered when supported (no point double-buffering weights).
        if buffered1:
            return pl.BlockSpec(shape, lambda i: (0, 0),
                                pipeline_mode=pl.Buffered(1))
        return pl.BlockSpec(shape, lambda i: (0, 0))

    in_specs = [stream_spec(XP), stream_spec(LP)]
    in_specs += [resident_spec(p.shape) for p in padded_params]
    out_specs = (stream_spec(XP), stream_spec(2 * LP))
    out_shape = (
        jax.ShapeDtypeStruct((BP, XP), jnp.bfloat16),      # x_hat (padded)
        jax.ShapeDtypeStruct((BP, 2 * LP), jnp.float32),   # [mean | log_var]
    )

    flops = 2 * BP * (XP * HP + HP * HP + HP * (2 * LP)
                      + LP * HP + HP * HP + HP * XP)
    bytes_accessed = int(
        sum(p.size * p.dtype.itemsize for p in padded_params)
        + xp.size * 2 + epsp.size * 4
        + BP * XP * 2 + BP * (2 * LP) * 4
    )
    cost = pl.CostEstimate(
        flops=flops,
        transcendentals=BP * (LP + XP),   # exp in reparam + sigmoid
        bytes_accessed=bytes_accessed,
    )

    xhat, mv = pl.pallas_call(
        vae_kernel,
        out_shape=out_shape,
        grid=grid,
        in_specs=in_specs,
        out_specs=out_specs,
        compiler_params=pltpu.CompilerParams(
            dimension_semantics=("parallel",),
            vmem_limit_bytes=32 << 20,
        ),
        cost_estimate=cost,
    )(xp, epsp, *padded_params)

    x_hat = xhat[:B, :X_DIM].astype(jnp.float32)
    mean = mv[:B, :LATENT_DIM]
    log_var = mv[:B, LP:LP + LATENT_DIM]
    return x_hat, mean, log_var


def vae_forward(x, eps, padded_params):
    """x: [B, 784] f32, eps: [B, 200] f32, padded_params: from prepare_params."""
    return _vae_forward_jit(x, eps, list(padded_params),
                            buffered1=_buffered1_supported())


def reference_forward(x, eps, padded_params):
    """Pure-JAX reference with identical bf16-weight / f32-accumulation math."""
    w1, w2, wmv, dw1, dw2, dwo, b_all = padded_params
    xp = jnp.pad(x, ((0, 0), (0, XP - X_DIM))).astype(jnp.bfloat16)
    epsp = jnp.pad(eps, ((0, 0), (0, LP - LATENT_DIM)))
    bdot = lambda a, w: jnp.dot(a.astype(jnp.bfloat16), w,
                                preferred_element_type=jnp.float32)
    lrelu = lambda h: jnp.where(h >= 0, h, 0.2 * h)
    bias = lambda off, n: b_all[:, off:off + n]
    h = lrelu(bdot(xp, w1) + bias(OFF_B1, HP))
    h = lrelu(bdot(h, w2) + bias(OFF_B2, HP))
    mv = bdot(h, wmv) + bias(OFF_BMV, 2 * LP)
    mean, log_var = mv[:, :LP], mv[:, LP:]
    z = mean + jnp.exp(0.5 * log_var) * epsp
    hd = lrelu(bdot(z, dw1) + bias(OFF_BD1, HP))
    hd = lrelu(bdot(hd, dw2) + bias(OFF_BD2, HP))
    x_hat = jax.nn.sigmoid(bdot(hd, dwo) + bias(OFF_BO, XP))
    x_hat = x_hat.astype(jnp.bfloat16).astype(jnp.float32)
    return (x_hat[:, :X_DIM], mean[:, :LATENT_DIM], log_var[:, :LATENT_DIM])


if __name__ == "__main__":
    key = jax.random.PRNGKey(0)
    k_param, k_x, k_eps = jax.random.split(key, 3)

    B = 8
    raw_params = init_params(k_param)
    params = prepare_params(raw_params)

    x = jax.random.uniform(k_x, (B, X_DIM), jnp.float32)          # MNIST-like
    eps = jax.random.normal(k_eps, (B, LATENT_DIM), jnp.float32)  # ~ randn_like

    x_hat, mean, log_var = jax.block_until_ready(vae_forward(x, eps, params))

    # correctness vs pure-JAX reference with identical bf16 math
    r_xhat, r_mean, r_logvar = reference_forward(x, eps, params)
    assert x_hat.shape == (B, X_DIM)
    assert mean.shape == (B, LATENT_DIM)
    assert log_var.shape == (B, LATENT_DIM)
    assert jnp.allclose(x_hat, r_xhat, atol=2e-2, rtol=2e-2)
    assert jnp.allclose(mean, r_mean, atol=2e-3, rtol=2e-3)
    assert jnp.allclose(log_var, r_logvar, atol=2e-3, rtol=2e-3)

    print("KERNEL_OK")
</pallas_src>

<mosaic_0001>
module attributes {stable_mosaic.version = 11 : i64} {
  func.func @_k(%arg0: i32, %arg1: memref<8x128xf32, #tpu.memory_space<vmem>>, %arg2: memref<8x128xf32, #tpu.memory_space<vmem>>) attributes {dimension_semantics = [#tpu.dimension_semantics<arbitrary>], iteration_bounds = array<i64: 1>, scalar_prefetch = 0 : i64, scratch_operands = 0 : i64, tpu.core_type = #tpu.core_type<tc>, window_params = [{pipeline_mode = #tpu.pipeline_mode<synchronous>, transform_indices = @transform_0, window_bounds = array<i64: 8, 128>}, {pipeline_mode = #tpu.pipeline_mode<synchronous>, transform_indices = @transform_1, window_bounds = array<i64: 8, 128>}]} {
    %c0 = arith.constant 0 : index
    %c0_0 = arith.constant 0 : index
    %0 = vector.load %arg1[%c0, %c0_0] : memref<8x128xf32, #tpu.memory_space<vmem>>, vector<8x128xf32>
    %c0_1 = arith.constant 0 : index
    %c0_2 = arith.constant 0 : index
    %1 = vector.load %arg2[%c0_1, %c0_2] : memref<8x128xf32, #tpu.memory_space<vmem>>, vector<8x128xf32>
    tpu.vector_store %arg2[%c0_1, %c0_2], %0 {strides = array<i32>} : memref<8x128xf32, #tpu.memory_space<vmem>>, vector<8x128xf32>,
    return
  }
  func.func @transform_0(%arg0: i32) -> (i32, i32) {
    %c0_i32 = arith.constant 0 : i32
    %c0_i32_0 = arith.constant 0 : i32
    %c0_i32_1 = arith.constant 0 : i32
    return %c0_i32, %c0_i32_0 : i32, i32
  }
  func.func @transform_1(%arg0: i32) -> (i32, i32) {
    %c0_i32 = arith.constant 0 : i32
    %c0_i32_0 = arith.constant 0 : i32
    %c0_i32_1 = arith.constant 0 : i32
    return %c0_i32, %c0_i32_0 : i32, i32
  }
}

module attributes {stable_mosaic.version = 11 : i64} {
  func.func @vae_kernel(%arg0: i32, %arg1: memref<8x896xbf16, #tpu.memory_space<vmem>>, %arg2: memref<8x256xf32, #tpu.memory_space<vmem>>, %arg3: memref<896x512xbf16, #tpu.memory_space<vmem>>, %arg4: memref<512x512xbf16, #tpu.memory_space<vmem>>, %arg5: memref<512x512xbf16, #tpu.memory_space<vmem>>, %arg6: memref<256x512xbf16, #tpu.memory_space<vmem>>, %arg7: memref<512x512xbf16, #tpu.memory_space<vmem>>, %arg8: memref<512x896xbf16, #tpu.memory_space<vmem>>, %arg9: memref<1x3456xf32, #tpu.memory_space<vmem>>, %arg10: memref<8x896xbf16, #tpu.memory_space<vmem>>, %arg11: memref<8x512xf32, #tpu.memory_space<vmem>>) attributes {dimension_semantics = [#tpu.dimension_semantics<parallel>], iteration_bounds = array<i64: 1>, scalar_prefetch = 0 : i64, scratch_operands = 0 : i64, tpu.core_type = #tpu.core_type<tc>, window_params = [{transform_indices = @transform_0, window_bounds = array<i64: 8, 896>}, {transform_indices = @transform_1, window_bounds = array<i64: 8, 256>}, {pipeline_mode = #tpu.pipeline_mode<synchronous>, transform_indices = @transform_2, window_bounds = array<i64: 896, 512>}, {pipeline_mode = #tpu.pipeline_mode<synchronous>, transform_indices = @transform_3, window_bounds = array<i64: 512, 512>}, {pipeline_mode = #tpu.pipeline_mode<synchronous>, transform_indices = @transform_4, window_bounds = array<i64: 512, 512>}, {pipeline_mode = #tpu.pipeline_mode<synchronous>, transform_indices = @transform_5, window_bounds = array<i64: 256, 512>}, {pipeline_mode = #tpu.pipeline_mode<synchronous>, transform_indices = @transform_6, window_bounds = array<i64: 512, 512>}, {pipeline_mode = #tpu.pipeline_mode<synchronous>, transform_indices = @transform_7, window_bounds = array<i64: 512, 896>}, {pipeline_mode = #tpu.pipeline_mode<synchronous>, transform_indices = @transform_8, window_bounds = array<i64: 1, 3456>}, {transform_indices = @transform_9, window_bounds = array<i64: 8, 896>}, {transform_indices = @transform_10, window_bounds = array<i64: 8, 512>}]} {
    %c0 = arith.constant 0 : index
    %c0_0 = arith.constant 0 : index
    %0 = vector.load %arg1[%c0, %c0_0] : memref<8x896xbf16, #tpu.memory_space<vmem>>, vector<8x896xbf16>
    %c0_1 = arith.constant 0 : index
    %c0_2 = arith.constant 0 : index
    %1 = vector.load %arg3[%c0_1, %c0_2] : memref<896x512xbf16, #tpu.memory_space<vmem>>, vector<896x512xbf16>
    %cst = arith.constant dense<0.000000e+00> : vector<8x512xf32>
    %2 = tpu.matmul %0, %1, %cst {dimension_numbers = #tpu.dot_dimension_numbers<[1], [0], [0], [1], [0, 0, 1, 1], [], []>} : vector<8x896xbf16>, vector<896x512xbf16>, vector<8x512xf32> -> vector<8x512xf32>
    %c0_3 = arith.constant 0 : index
    %c0_4 = arith.constant 0 : index
    %3 = vector.load %arg9[%c0_3, %c0_4] : memref<1x3456xf32, #tpu.memory_space<vmem>>, vector<1x512xf32>
    %4 = vector.broadcast %3 : vector<1x512xf32> to vector<8x512xf32>
    %5 = arith.addf %2, %4 : vector<8x512xf32>
    %cst_5 = arith.constant 0.000000e+00 : f32
    %6 = vector.broadcast %cst_5 : f32 to vector<8x512xf32>
    %7 = arith.cmpf oge, %5, %6 : vector<8x512xf32>
    %cst_6 = arith.constant 2.000000e-01 : f32
    %8 = vector.broadcast %cst_6 : f32 to vector<8x512xf32>
    %9 = arith.mulf %8, %5 : vector<8x512xf32>
    %10 = arith.select %7, %5, %9 : vector<8x512xi1>, vector<8x512xf32>
    %11 = arith.truncf %10 : vector<8x512xf32> to vector<8x512xbf16>
    %c0_7 = arith.constant 0 : index
    %c0_8 = arith.constant 0 : index
    %12 = vector.load %arg4[%c0_7, %c0_8] : memref<512x512xbf16, #tpu.memory_space<vmem>>, vector<512x512xbf16>
    %cst_9 = arith.constant dense<0.000000e+00> : vector<8x512xf32>
    %13 = tpu.matmul %11, %12, %cst_9 {dimension_numbers = #tpu.dot_dimension_numbers<[1], [0], [0], [1], [0, 0, 1, 1], [], []>} : vector<8x512xbf16>, vector<512x512xbf16>, vector<8x512xf32> -> vector<8x512xf32>
    %c0_10 = arith.constant 0 : index
    %c512 = arith.constant 512 : index
    %14 = vector.load %arg9[%c0_10, %c512] : memref<1x3456xf32, #tpu.memory_space<vmem>>, vector<1x512xf32>
    %15 = vector.broadcast %14 : vector<1x512xf32> to vector<8x512xf32>
    %16 = arith.addf %13, %15 : vector<8x512xf32>
    %cst_11 = arith.constant 0.000000e+00 : f32
    %17 = vector.broadcast %cst_11 : f32 to vector<8x512xf32>
    %18 = arith.cmpf oge, %16, %17 : vector<8x512xf32>
    %cst_12 = arith.constant 2.000000e-01 : f32
    %19 = vector.broadcast %cst_12 : f32 to vector<8x512xf32>
    %20 = arith.mulf %19, %16 : vector<8x512xf32>
    %21 = arith.select %18, %16, %20 : vector<8x512xi1>, vector<8x512xf32>
    %22 = arith.truncf %21 : vector<8x512xf32> to vector<8x512xbf16>
    %c0_13 = arith.constant 0 : index
    %c0_14 = arith.constant 0 : index
    %23 = vector.load %arg5[%c0_13, %c0_14] : memref<512x512xbf16, #tpu.memory_space<vmem>>, vector<512x512xbf16>
    %cst_15 = arith.constant dense<0.000000e+00> : vector<8x512xf32>
    %24 = tpu.matmul %22, %23, %cst_15 {dimension_numbers = #tpu.dot_dimension_numbers<[1], [0], [0], [1], [0, 0, 1, 1], [], []>} : vector<8x512xbf16>, vector<512x512xbf16>, vector<8x512xf32> -> vector<8x512xf32>
    %c0_16 = arith.constant 0 : index
    %c1024 = arith.constant 1024 : index
    %25 = vector.load %arg9[%c0_16, %c1024] : memref<1x3456xf32, #tpu.memory_space<vmem>>, vector<1x512xf32>
    %26 = vector.broadcast %25 : vector<1x512xf32> to vector<8x512xf32>
    %27 = arith.addf %24, %26 : vector<8x512xf32>
    %28 = vector.extract_strided_slice %27 {offsets = [0, 0], sizes = [8, 256], strides = [1, 1]} : vector<8x512xf32> to vector<8x256xf32>
    %29 = vector.extract_strided_slice %27 {offsets = [0, 256], sizes = [8, 256], strides = [1, 1]} : vector<8x512xf32> to vector<8x256xf32>
    %cst_17 = arith.constant 5.000000e-01 : f32
    %30 = vector.broadcast %cst_17 : f32 to vector<8x256xf32>
    %31 = arith.mulf %30, %29 : vector<8x256xf32>
    %32 = math.exp %31 : vector<8x256xf32>
    %c0_18 = arith.constant 0 : index
    %c0_19 = arith.constant 0 : index
    %33 = vector.load %arg2[%c0_18, %c0_19] : memref<8x256xf32, #tpu.memory_space<vmem>>, vector<8x256xf32>
    %34 = arith.mulf %32, %33 : vector<8x256xf32>
    %35 = arith.addf %28, %34 : vector<8x256xf32>
    %36 = arith.truncf %35 : vector<8x256xf32> to vector<8x256xbf16>
    %c0_20 = arith.constant 0 : index
    %c0_21 = arith.constant 0 : index
    %37 = vector.load %arg6[%c0_20, %c0_21] : memref<256x512xbf16, #tpu.memory_space<vmem>>, vector<256x512xbf16>
    %cst_22 = arith.constant dense<0.000000e+00> : vector<8x512xf32>
    %38 = tpu.matmul %36, %37, %cst_22 {dimension_numbers = #tpu.dot_dimension_numbers<[1], [0], [0], [1], [0, 0, 1, 1], [], []>} : vector<8x256xbf16>, vector<256x512xbf16>, vector<8x512xf32> -> vector<8x512xf32>
    %c0_23 = arith.constant 0 : index
    %c1536 = arith.constant 1536 : index
    %39 = vector.load %arg9[%c0_23, %c1536] : memref<1x3456xf32, #tpu.memory_space<vmem>>, vector<1x512xf32>
    %40 = vector.broadcast %39 : vector<1x512xf32> to vector<8x512xf32>
    %41 = arith.addf %38, %40 : vector<8x512xf32>
    %cst_24 = arith.constant 0.000000e+00 : f32
    %42 = vector.broadcast %cst_24 : f32 to vector<8x512xf32>
    %43 = arith.cmpf oge, %41, %42 : vector<8x512xf32>
    %cst_25 = arith.constant 2.000000e-01 : f32
    %44 = vector.broadcast %cst_25 : f32 to vector<8x512xf32>
    %45 = arith.mulf %44, %41 : vector<8x512xf32>
    %46 = arith.select %43, %41, %45 : vector<8x512xi1>, vector<8x512xf32>
    %47 = arith.truncf %46 : vector<8x512xf32> to vector<8x512xbf16>
    %c0_26 = arith.constant 0 : index
    %c0_27 = arith.constant 0 : index
    %48 = vector.load %arg7[%c0_26, %c0_27] : memref<512x512xbf16, #tpu.memory_space<vmem>>, vector<512x512xbf16>
    %cst_28 = arith.constant dense<0.000000e+00> : vector<8x512xf32>
    %49 = tpu.matmul %47, %48, %cst_28 {dimension_numbers = #tpu.dot_dimension_numbers<[1], [0], [0], [1], [0, 0, 1, 1], [], []>} : vector<8x512xbf16>, vector<512x512xbf16>, vector<8x512xf32> -> vector<8x512xf32>
    %c0_29 = arith.constant 0 : index
    %c2048 = arith.constant 2048 : index
    %50 = vector.load %arg9[%c0_29, %c2048] : memref<1x3456xf32, #tpu.memory_space<vmem>>, vector<1x512xf32>
    %51 = vector.broadcast %50 : vector<1x512xf32> to vector<8x512xf32>
    %52 = arith.addf %49, %51 : vector<8x512xf32>
    %cst_30 = arith.constant 0.000000e+00 : f32
    %53 = vector.broadcast %cst_30 : f32 to vector<8x512xf32>
    %54 = arith.cmpf oge, %52, %53 : vector<8x512xf32>
    %cst_31 = arith.constant 2.000000e-01 : f32
    %55 = vector.broadcast %cst_31 : f32 to vector<8x512xf32>
    %56 = arith.mulf %55, %52 : vector<8x512xf32>
    %57 = arith.select %54, %52, %56 : vector<8x512xi1>, vector<8x512xf32>
    %58 = arith.truncf %57 : vector<8x512xf32> to vector<8x512xbf16>
    %c0_32 = arith.constant 0 : index
    %c0_33 = arith.constant 0 : index
    %59 = vector.load %arg8[%c0_32, %c0_33] : memref<512x896xbf16, #tpu.memory_space<vmem>>, vector<512x896xbf16>
    %cst_34 = arith.constant dense<0.000000e+00> : vector<8x896xf32>
    %60 = tpu.matmul %58, %59, %cst_34 {dimension_numbers = #tpu.dot_dimension_numbers<[1], [0], [0], [1], [0, 0, 1, 1], [], []>} : vector<8x512xbf16>, vector<512x896xbf16>, vector<8x896xf32> -> vector<8x896xf32>
    %c0_35 = arith.constant 0 : index
    %c2560 = arith.constant 2560 : index
    %61 = vector.load %arg9[%c0_35, %c2560] : memref<1x3456xf32, #tpu.memory_space<vmem>>, vector<1x896xf32>
    %62 = vector.broadcast %61 : vector<1x896xf32> to vector<8x896xf32>
    %63 = arith.addf %60, %62 : vector<8x896xf32>
    %64 = arith.negf %63 : vector<8x896xf32>
    %65 = math.exp %64 : vector<8x896xf32>
    %cst_36 = arith.constant 1.000000e+00 : f32
    %66 = vector.broadcast %cst_36 : f32 to vector<8x896xf32>
    %67 = arith.addf %66, %65 : vector<8x896xf32>
    %68 = arith.divf %66, %67 : vector<8x896xf32>
    %69 = arith.truncf %68 : vector<8x896xf32> to vector<8x896xbf16>
    %c0_37 = arith.constant 0 : index
    %c0_38 = arith.constant 0 : index
    %70 = vector.load %arg10[%c0_37, %c0_38] : memref<8x896xbf16, #tpu.memory_space<vmem>>, vector<8x896xbf16>
    tpu.vector_store %arg10[%c0_37, %c0_38], %69 {strides = array<i32>} : memref<8x896xbf16, #tpu.memory_space<vmem>>, vector<8x896xbf16>,
    %c0_39 = arith.constant 0 : index
    %c0_40 = arith.constant 0 : index
    %71 = vector.load %arg11[%c0_39, %c0_40] : memref<8x512xf32, #tpu.memory_space<vmem>>, vector<8x512xf32>
    tpu.vector_store %arg11[%c0_39, %c0_40], %27 {strides = array<i32>} : memref<8x512xf32, #tpu.memory_space<vmem>>, vector<8x512xf32>,
    return
  }
  func.func @transform_0(%arg0: i32) -> (i32, i32) {
    %c0_i32 = arith.constant 0 : i32
    %c0_i32_0 = arith.constant 0 : i32
    return %arg0, %c0_i32 : i32, i32
  }
  func.func @transform_1(%arg0: i32) -> (i32, i32) {
    %c0_i32 = arith.constant 0 : i32
    %c0_i32_0 = arith.constant 0 : i32
    return %arg0, %c0_i32 : i32, i32
  }
  func.func @transform_2(%arg0: i32) -> (i32, i32) {
    %c0_i32 = arith.constant 0 : i32
    %c0_i32_0 = arith.constant 0 : i32
    %c0_i32_1 = arith.constant 0 : i32
    return %c0_i32, %c0_i32_0 : i32, i32
  }
  func.func @transform_3(%arg0: i32) -> (i32, i32) {
    %c0_i32 = arith.constant 0 : i32
    %c0_i32_0 = arith.constant 0 : i32
    %c0_i32_1 = arith.constant 0 : i32
    return %c0_i32, %c0_i32_0 : i32, i32
  }
  func.func @transform_4(%arg0: i32) -> (i32, i32) {
    %c0_i32 = arith.constant 0 : i32
    %c0_i32_0 = arith.constant 0 : i32
    %c0_i32_1 = arith.constant 0 : i32
    return %c0_i32, %c0_i32_0 : i32, i32
  }
  func.func @transform_5(%arg0: i32) -> (i32, i32) {
    %c0_i32 = arith.constant 0 : i32
    %c0_i32_0 = arith.constant 0 : i32
    %c0_i32_1 = arith.constant 0 : i32
    return %c0_i32, %c0_i32_0 : i32, i32
  }
  func.func @transform_6(%arg0: i32) -> (i32, i32) {
    %c0_i32 = arith.constant 0 : i32
    %c0_i32_0 = arith.constant 0 : i32
    %c0_i32_1 = arith.constant 0 : i32
    return %c0_i32, %c0_i32_0 : i32, i32
  }
  func.func @transform_7(%arg0: i32) -> (i32, i32) {
    %c0_i32 = arith.constant 0 : i32
    %c0_i32_0 = arith.constant 0 : i32
    %c0_i32_1 = arith.constant 0 : i32
    return %c0_i32, %c0_i32_0 : i32, i32
  }
  func.func @transform_8(%arg0: i32) -> (i32, i32) {
    %c0_i32 = arith.constant 0 : i32
    %c0_i32_0 = arith.constant 0 : i32
    %c0_i32_1 = arith.constant 0 : i32
    return %c0_i32, %c0_i32_0 : i32, i32
  }
  func.func @transform_9(%arg0: i32) -> (i32, i32) {
    %c0_i32 = arith.constant 0 : i32
    %c0_i32_0 = arith.constant 0 : i32
    return %arg0, %c0_i32 : i32, i32
  }
  func.func @transform_10(%arg0: i32) -> (i32, i32) {
    %c0_i32 = arith.constant 0 : i32
    %c0_i32_0 = arith.constant 0 : i32
    return %arg0, %c0_i32 : i32, i32
  }
}

</mosaic_0001>

<bundles_post_ra>
// kernel: tpu_custom_call.1
= control target key start
LH: loop header
LB: loop body
LE: loop exit
PB: predicated region body
PF: predicated region fallthrough
CT: control target
= control target key end

     0   :  { %6 = vsyncpa [#allocation3], 0  ;;  %s102_s0 = inlined_call_operand.hbm [shape: f32[8,128], index: 0, kind: input, shape index: {}]   ;;  %s103_s1 = inlined_call_operand.hbm [shape: f32[8,128], index: 1, kind: output, shape index: {}]  }
   0x1   :  { %7 = vsyncpa [#allocation4], 0  ;;  %s84_s6 = smov [#allocation2]  }
   0x2   :  { %s14_s7 = sshll.u32 %s84_s6, 4  ;;  %s15_s7 = int_to_ptr.vmem [resolvable:$true] %s14_s7 }
   0x3   :  { %s48_s8 = scalar_lea.vmem %s15_s7, 128  ;;  %p53_p1 = scmp.lt.s32.totalorder %s15_s7, %s15_s7 }
   0x4   :  { %p49_p0 = scmp.ne.s32.totalorder %s15_s7, %s48_s8  ;;  %p54_p2 = scmp.lt.s32.totalorder %s48_s8, %s48_s8 }
   0x6   :  { %p55_p3 = por %p54_p2, %p53_p1 }
   0x8   :  { %p56_p4 = pnand %p55_p3, %p49_p0 }
   0xa   :  { %59 = shalt.err (!%p56_p4)
}
   0xb   :  { %17 = dma.hbm_to_vmem [thread:$0]  %s102_s0, 128, %s15_s7, [#allocation3]  }
   0xc   :  { %80 = dma.done.wait [#allocation3], 128  }
   0xd   :  { %81 = vsyncadd [#allocation3], 4294967168  ;;  %s85_s11 = smov [#allocation5]   ;;  %v21_v0 = vld [vmem:[#allocation2] sm:$0xff] }
   0xe   :  { %s29_s12 = sshll.u32 %s85_s11, 4  ;;  %22 = vst [vmem:[#allocation5] sm:$0xff] %v21_v0  ;;  %s30_s12 = int_to_ptr.vmem [resolvable:$true] %s29_s12 }
   0xf   :  { %s60_s13 = scalar_lea.vmem %s30_s12, 128  ;;  %p65_p6 = scmp.lt.s32.totalorder %s30_s12, %s30_s12 }
  0x10   :  { %p61_p5 = scmp.ne.s32.totalorder %s30_s12, %s60_s13  ;;  %p66_p7 = scmp.lt.s32.totalorder %s60_s13, %s60_s13 }
  0x12   :  { %p67_p8 = por %p66_p7, %p65_p6 }
  0x14   :  { %p68_p9 = pnand %p67_p8, %p61_p5 }
  0x16   :  { %71 = shalt.err (!%p68_p9)
}
  0x17   :  { %32 = dma.vmem_to_hbm [thread:$0]  %s30_s12, 128, %s103_s1, [#allocation4]  }
  0x18   :  { %82 = dma.done.wait [#allocation4], 128  }
  0x19   :  { %83 = vsyncadd [#allocation4], 4294967168 }
  0x1a   :  { %36 = vsyncpa [#allocation3], 1 }
  0x1b   :  { %37 = vsyncpa [#allocation4], 1 }

// kernel: _vae_forward_jit.1
= control target key start
LH: loop header
LB: loop body
LE: loop exit
PB: predicated region body
PF: predicated region fallthrough
CT: control target
= control target key end

     0   :  { %16 = vsyncpa [#allocation3], 0  ;;  %s9939_s0 = inlined_call_operand.vmem [shape: bf16[8,896], index: 0, kind: input, shape index: {}]   ;;  %s9940_s1 = inlined_call_operand.vmem [shape: f32[8,256], index: 1, kind: input, shape index: {}]   ;;  %s9941_s2 = inlined_call_operand.hbm [shape: bf16[896,512], index: 2, kind: input, shape index: {}]   ;;  %s9942_s3 = inlined_call_operand.hbm [shape: bf16[512,512], index: 3, kind: input, shape index: {}]   ;;  %s9943_s4 = inlined_call_operand.hbm [shape: bf16[512,512], index: 4, kind: input, shape index: {}]   ;;  %s9944_s5 = inlined_call_operand.hbm [shape: bf16[256,512], index: 5, kind: input, shape index: {}]   ;;  %s9945_s6 = inlined_call_operand.hbm [shape: bf16[512,512], index: 6, kind: input, shape index: {}]   ;;  %s9946_s7 = inlined_call_operand.hbm [shape: bf16[512,896], index: 7, kind: input, shape index: {}]   ;;  %s9947_s8 = inlined_call_operand.vmem [shape: f32[1,3456], index: 8, kind: input, shape index: {}]   ;;  %s9948_s9 = inlined_call_operand.vmem [shape: bf16[8,896], index: 9, kind: output, shape index: {0}]   ;;  %s9949_s10 = inlined_call_operand.vmem [shape: f32[8,512], index: 10, kind: output, shape index: {1}]  }
   0x1   :  { %17 = vsyncpa [#allocation5], 0 }
   0x2   :  { %18 = vsyncpa [#allocation8], 0 }
   0x3   :  { %19 = vsyncpa [#allocation11], 0  ;;  %s9599_s13 = smov [#allocation4]   ;;  %s9600_s15 = smov [#allocation7]  }
   0x4   :  { %s41_s14 = sshll.u32 %s9599_s13, 4  ;;  %s65_s16 = sshll.u32 %s9600_s15, 4  ;;  %s42_s14 = int_to_ptr.vmem [resolvable:$true] %s41_s14  ;;  %s66_s16 = int_to_ptr.vmem [resolvable:$true] %s65_s16 }
   0x5   :  { %s9479_s17 = scalar_lea.vmem %s42_s14, 16384  ;;  %p9484_p1 = scmp.lt.s32.totalorder %s42_s14, %s42_s14 }
   0x6   :  { %p9480_p0 = scmp.ne.s32.totalorder %s42_s14, %s9479_s17  ;;  %p9485_p2 = scmp.lt.s32.totalorder %s9479_s17, %s9479_s17 }
   0x8   :  { %p9486_p3 = por %p9485_p2, %p9484_p1 }
   0xa   :  { %p9487_p4 = pnand %p9486_p3, %p9480_p0 }
   0xc   :  { %9490 = shalt.err (!%p9487_p4)
}
   0xd   :  { %s9601_s18 = smov 256   ;;  %s9602_s19 = smov 16  }
   0xe   :  { %47 = dma.hbm_to_vmem [thread:$0]  %s9942_s3, 16384, %s42_s14, [#allocation5], %s9601_s18, %s9601_s18, %s9602_s19  }
   0xf   :  { %s9499_s22 = scalar_lea.vmem %s66_s16, 8192  ;;  %p9504_p6 = scmp.lt.s32.totalorder %s66_s16, %s66_s16 }
  0x10   :  { %p9500_p5 = scmp.ne.s32.totalorder %s66_s16, %s9499_s22  ;;  %p9505_p7 = scmp.lt.s32.totalorder %s9499_s22, %s9499_s22 }
  0x12   :  { %p9506_p8 = por %p9505_p7, %p9504_p6 }
  0x14   :  { %p9507_p9 = pnand %p9506_p8, %p9500_p5 }
  0x16   :  { %9510 = shalt.err (!%p9507_p9)
}
  0x17   :  { %71 = dma.hbm_to_vmem [thread:$0]  %s9944_s5, 8192, %s66_s16, [#allocation8], %s9601_s18, %s9601_s18, %s9602_s19  }
  0x18   :  { %s9603_s25 = smov [#allocation2]   ;;  %s9604_s27 = smov [#allocation6]  }
  0x19   :  { %s29_s26 = sshll.u32 %s9603_s25, 4  ;;  %s53_s28 = sshll.u32 %s9604_s27, 4  ;;  %s30_s26 = int_to_ptr.vmem [resolvable:$true] %s29_s26  ;;  %s54_s28 = int_to_ptr.vmem [resolvable:$true] %s53_s28 }
  0x1a   :  { %s9519_s3 = scalar_lea.vmem %s30_s26, 28672  ;;  %p9524_p11 = scmp.lt.s32.totalorder %s30_s26, %s30_s26 }
  0x1b   :  { %p9520_p10 = scmp.ne.s32.totalorder %s30_s26, %s9519_s3  ;;  %p9525_p12 = scmp.lt.s32.totalorder %s9519_s3, %s9519_s3 }
  0x1d   :  { %p9526_p13 = por %p9525_p12, %p9524_p11 }
  0x1f   :  { %p9527_p0 = pnand %p9526_p13, %p9520_p10 }
  0x21   :  { %9530 = shalt.err (!%p9527_p0)
}
  0x22   :  { %35 = dma.hbm_to_vmem [thread:$0]  %s9941_s2, 28672, %s30_s26, [#allocation3], %s9601_s18, %s9601_s18, %s9602_s19  }
  0x23   :  { %s9539_s5 = scalar_lea.vmem %s54_s28, 16384  ;;  %p9544_p2 = scmp.lt.s32.totalorder %s54_s28, %s54_s28 }
  0x24   :  { %p9540_p1 = scmp.ne.s32.totalorder %s54_s28, %s9539_s5  ;;  %p9545_p3 = scmp.lt.s32.totalorder %s9539_s5, %s9539_s5 }
  0x26   :  { %p9546_p4 = por %p9545_p3, %p9544_p2 }
  0x28   :  { %p9547_p5 = pnand %p9546_p4, %p9540_p1 }
  0x2a   :  { %9550 = shalt.err (!%p9547_p5)
}
  0x2b   :  { %59 = dma.hbm_to_vmem [thread:$0]  %s9943_s4, 16384, %s54_s28, [#allocation5], %s9601_s18, %s9601_s18, %s9602_s19  }
  0x2c   :  { %s9605_s13 = smov [#allocation9]   ;;  %s9606_s15 = smov [#allocation10]  }
  0x2d   :  { %s77_s14 = sshll.u32 %s9605_s13, 4  ;;  %s89_s16 = sshll.u32 %s9606_s15, 4  ;;  %s78_s14 = int_to_ptr.vmem [resolvable:$true] %s77_s14  ;;  %s90_s16 = int_to_ptr.vmem [resolvable:$true] %s89_s16 }
  0x2e   :  { %s9559_s2 = scalar_lea.vmem %s78_s14, 16384  ;;  %p9564_p7 = scmp.lt.s32.totalorder %s78_s14, %s78_s14 }
  0x2f   :  { %p9560_p6 = scmp.ne.s32.totalorder %s78_s14, %s9559_s2  ;;  %p9565_p8 = scmp.lt.s32.totalorder %s9559_s2, %s9559_s2 }
  0x31   :  { %p9566_p9 = por %p9565_p8, %p9564_p7 }
  0x33   :  { %p9567_p10 = pnand %p9566_p9, %p9560_p6 }
  0x35   :  { %9570 = shalt.err (!%p9567_p10)
}
  0x36   :  { %83 = dma.hbm_to_vmem [thread:$0]  %s9945_s6, 16384, %s78_s14, [#allocation8], %s9601_s18, %s9601_s18, %s9602_s19  }
  0x37   :  { %s9579_s4 = scalar_lea.vmem %s90_s16, 28672  ;;  %p9584_p12 = scmp.lt.s32.totalorder %s90_s16, %s90_s16 }
  0x38   :  { %p9580_p11 = scmp.ne.s32.totalorder %s90_s16, %s9579_s4  ;;  %p9585_p13 = scmp.lt.s32.totalorder %s9579_s4, %s9579_s4 }
  0x3a   :  { %p9586_p0 = por %p9585_p13, %p9584_p12 }
  0x3c   :  { %p9587_p1 = pnand %p9586_p0, %p9580_p11 }
  0x3e   :  { %9590 = shalt.err (!%p9587_p1)
}
  0x3f   :  { %s9607_s21 = smov 448   ;;  %s9608_s22 = smov 28  }
  0x40   :  { %95 = dma.hbm_to_vmem [thread:$0]  %s9946_s7, 28672, %s90_s16, [#allocation11], %s9607_s21, %s9607_s21, %s9608_s22  }
  0x41   :  { %9591 = dma.done.wait [#allocation3], 28672  }
  0x42   :  { %9592 = vsyncadd [#allocation3], 4294938624 }
  0x43   :  { %9593 = dma.done.wait [#allocation5], 32768  }
  0x44   :  { %9594 = vsyncadd [#allocation5], 4294934528 }
  0x45   :  { %9595 = dma.done.wait [#allocation8], 24576  }
  0x46   :  { %9596 = vsyncadd [#allocation8], 4294942720 }
  0x47   :  { %9597 = dma.done.wait [#allocation11], 28672  }
  0x48   :  { %9598 = vsyncadd [#allocation11], 4294938624  ;;  %v8103_v0 = vld [vmem:[#allocation2 + $0xe4] ss:$16 sps:$4 sm:$0xff]   ;;  %v8107_v2 = vld [vmem:[#allocation2 + $0xe0] ss:$16 sps:$4 sm:$0xff]  }
  0x49   :  { %v8105_v1 = vld [vmem:[#allocation2 + $0x2e4] ss:$16 sps:$4 sm:$0xff]   ;;  %1512 = vmatprep.subr.bf16.mxu0 %v8103_v0  ;;  %v8108_v3 = vld [vmem:[#allocation2 + $0x2e0] ss:$16 sps:$4 sm:$0xff]   ;;  %v118_v48 = vld [vmem:[%s9939_s0 + $0x8] sm:$0xff] }
  0x4a   :  { %1553 = vmatprep.subr.bf16.mxu1 %v8105_v1  ;;  %v8109_v4 = vld [vmem:[#allocation2 + $0xc4] ss:$16 sps:$4 sm:$0xff]   ;;  %1513 = vmatpush1.bf16.msra.mxu0 %v8107_v2  ;;  %v8113_v6 = vld [vmem:[#allocation2 + $0xc0] ss:$16 sps:$4 sm:$0xff]   ;;  %v9706_v51 = vcombine.high %v118_v48, %v118_v48 }
  0x4b   :  { %1554 = vmatpush1.bf16.msra.mxu1 %v8108_v3  ;;  %v8111_v5 = vld [vmem:[#allocation2 + $0x2c4] ss:$16 sps:$4 sm:$0xff]   ;;  %1514 = vmatprep.subr.bf16.mxu0 %v8109_v4  ;;  %v8114_v7 = vld [vmem:[#allocation2 + $0x2c0] ss:$16 sps:$4 sm:$0xff]  }
  0x4c   :  { %1555 = vmatprep.subr.bf16.mxu1 %v8111_v5  ;;  %v8115_v8 = vld [vmem:[#allocation2 + $0xa4] ss:$16 sps:$4 sm:$0xff]   ;;  %v8119_v10 = vld [vmem:[#allocation2 + $0xa0] ss:$16 sps:$4 sm:$0xff]   ;;  %1585 = vmatprep.mubr.bf16.mxu1 %v9706_v51 }
  0x4d   :  { %v8117_v9 = vld [vmem:[#allocation2 + $0x2a4] ss:$16 sps:$4 sm:$0xff]   ;;  %v8120_v11 = vld [vmem:[#allocation2 + $0x2a0] ss:$16 sps:$4 sm:$0xff]  }
  0x4e   :  { %1515 = vmatpush1.bf16.msra.mxu0 %v8113_v6  ;;  %v8121_v12 = vld [vmem:[#allocation2 + $0x84] ss:$16 sps:$4 sm:$0xff]   ;;  %v8125_v14 = vld [vmem:[#allocation2 + $0x80] ss:$16 sps:$4 sm:$0xff]  }
  0x4f   :  { %1556 = vmatpush1.bf16.msra.mxu1 %v8114_v7  ;;  %1516 = vmatprep.subr.bf16.mxu0 %v8115_v8  ;;  %v8123_v13 = vld [vmem:[#allocation2 + $0x284] ss:$16 sps:$4 sm:$0xff]   ;;  %v8126_v15 = vld [vmem:[#allocation2 + $0x280] ss:$16 sps:$4 sm:$0xff]   ;;  %v9712_v7 = vcombine.low %v118_v48, %v118_v48  ;;  %v8263_v48 = vld [vmem:[#allocation2 + $0xcc] ss:$16 sps:$4 sm:$0xff]  }
  0x50   :  { %1557 = vmatprep.subr.bf16.mxu1 %v8117_v9  ;;  %v8127_v16 = vld [vmem:[#allocation2 + $0x64] ss:$16 sps:$4 sm:$0xff]   ;;  %v8131_v18 = vld [vmem:[#allocation2 + $0x60] ss:$16 sps:$4 sm:$0xff]  }
  0x51   :  { %v8129_v17 = vld [vmem:[#allocation2 + $0x264] ss:$16 sps:$4 sm:$0xff]   ;;  %v8132_v19 = vld [vmem:[#allocation2 + $0x260] ss:$16 sps:$4 sm:$0xff]  }
  0x52   :  { %1517 = vmatpush1.bf16.msra.mxu0 %v8119_v10  ;;  %v8133_v20 = vld [vmem:[#allocation2 + $0x44] ss:$16 sps:$4 sm:$0xff]   ;;  %v8137_v22 = vld [vmem:[#allocation2 + $0x40] ss:$16 sps:$4 sm:$0xff]  }
  0x53   :  { %1558 = vmatpush1.bf16.msra.mxu1 %v8120_v11  ;;  %1518 = vmatprep.subr.bf16.mxu0 %v8121_v12  ;;  %v8135_v21 = vld [vmem:[#allocation2 + $0x244] ss:$16 sps:$4 sm:$0xff]   ;;  %v8138_v23 = vld [vmem:[#allocation2 + $0x240] ss:$16 sps:$4 sm:$0xff]  }
  0x54   :  { %1559 = vmatprep.subr.bf16.mxu1 %v8123_v13  ;;  %v8139_v24 = vld [vmem:[#allocation2 + $0x24] ss:$16 sps:$4 sm:$0xff]   ;;  %v8143_v26 = vld [vmem:[#allocation2 + $0x20] ss:$16 sps:$4 sm:$0xff]  }
  0x55   :  { %v8141_v25 = vld [vmem:[#allocation2 + $0x224] ss:$16 sps:$4 sm:$0xff]   ;;  %v8144_v27 = vld [vmem:[#allocation2 + $0x220] ss:$16 sps:$4 sm:$0xff]  }
  0x56   :  { %1519 = vmatpush1.bf16.msra.mxu0 %v8125_v14  ;;  %v8145_v28 = vld [vmem:[#allocation2 + $0x4] ss:$16 sps:$4 sm:$0xff]   ;;  %v8149_v30 = vld [vmem:[#allocation2] ss:$16 sps:$4 sm:$0xff]  }
  0x57   :  { %1560 = vmatpush1.bf16.msra.mxu1 %v8126_v15  ;;  %1520 = vmatprep.subr.bf16.mxu0 %v8127_v16  ;;  %v8147_v29 = vld [vmem:[#allocation2 + $0x204] ss:$16 sps:$4 sm:$0xff]   ;;  %v8150_v31 = vld [vmem:[#allocation2 + $0x200] ss:$16 sps:$4 sm:$0xff]   ;;  %v9609_v16 = vmov 0  }
  0x58   :  { %1561 = vmatprep.subr.bf16.mxu1 %v8129_v17  ;;  %v8151_v32 = vld [vmem:[#allocation2 + $0x1e4] ss:$16 sps:$4 sm:$0xff]   ;;  %v8155_v34 = vld [vmem:[#allocation2 + $0x1e0] ss:$16 sps:$4 sm:$0xff]  }
  0x59   :  { %v8153_v33 = vld [vmem:[#allocation2 + $0x3e4] ss:$16 sps:$4 sm:$0xff]   ;;  %v8156_v35 = vld [vmem:[#allocation2 + $0x3e0] ss:$16 sps:$4 sm:$0xff]  }
  0x5a   :  { %1521 = vmatpush1.bf16.msra.mxu0 %v8131_v18  ;;  %v8157_v36 = vld [vmem:[#allocation2 + $0x1c4] ss:$16 sps:$4 sm:$0xff]   ;;  %v8161_v38 = vld [vmem:[#allocation2 + $0x1c0] ss:$16 sps:$4 sm:$0xff]  }
  0x5b   :  { %1562 = vmatpush1.bf16.msra.mxu1 %v8132_v19  ;;  %1522 = vmatprep.subr.bf16.mxu0 %v8133_v20  ;;  %v8159_v37 = vld [vmem:[#allocation2 + $0x3c4] ss:$16 sps:$4 sm:$0xff]   ;;  %v8162_v39 = vld [vmem:[#allocation2 + $0x3c0] ss:$16 sps:$4 sm:$0xff]  }
  0x5c   :  { %1563 = vmatprep.subr.bf16.mxu1 %v8135_v21  ;;  %v8163_v40 = vld [vmem:[#allocation2 + $0x1a4] ss:$16 sps:$4 sm:$0xff]   ;;  %v8167_v42 = vld [vmem:[#allocation2 + $0x1a0] ss:$16 sps:$4 sm:$0xff]  }
  0x5d   :  { %v8165_v41 = vld [vmem:[#allocation2 + $0x3a4] ss:$16 sps:$4 sm:$0xff]   ;;  %v8168_v43 = vld [vmem:[#allocation2 + $0x3a0] ss:$16 sps:$4 sm:$0xff]  }
  0x5e   :  { %1523 = vmatpush1.bf16.msra.mxu0 %v8137_v22  ;;  %v8169_v44 = vld [vmem:[#allocation2 + $0x184] ss:$16 sps:$4 sm:$0xff]   ;;  %v8173_v49 = vld [vmem:[#allocation2 + $0x180] ss:$16 sps:$4 sm:$0xff]  }
  0x5f   :  { %1564 = vmatpush1.bf16.msra.mxu1 %v8138_v23  ;;  %1524 = vmatprep.subr.bf16.mxu0 %v8139_v24  ;;  %v8171_v45 = vld [vmem:[#allocation2 + $0x384] ss:$16 sps:$4 sm:$0xff]   ;;  %v8174_v50 = vld [vmem:[#allocation2 + $0x380] ss:$16 sps:$4 sm:$0xff]  }
  0x60   :  { %1565 = vmatprep.subr.bf16.mxu1 %v8141_v25  ;;  %v117_v46 = vld [vmem:[%s9939_s0] sm:$0xff] }
  0x61   :  { %v9701_v47 = vcombine.high %v117_v46, %v117_v46  ;;  %v8175_v52 = vld [vmem:[#allocation2 + $0x164] ss:$16 sps:$4 sm:$0xff]   ;;  %v8179_v54 = vld [vmem:[#allocation2 + $0x160] ss:$16 sps:$4 sm:$0xff]   ;;  %v9710_v6 = vcombine.low %v117_v46, %v117_v46 }
  0x62   :  { %1525 = vmatpush1.bf16.msra.mxu0 %v8143_v26  ;;  %v8177_v53 = vld [vmem:[#allocation2 + $0x364] ss:$16 sps:$4 sm:$0xff]   ;;  %v8180_v55 = vld [vmem:[#allocation2 + $0x360] ss:$16 sps:$4 sm:$0xff]  }
  0x63   :  { %1566 = vmatpush1.bf16.msra.mxu1 %v8144_v27  ;;  %1526 = vmatprep.subr.bf16.mxu0 %v8145_v28  ;;  %v8181_v56 = vld [vmem:[#allocation2 + $0x144] ss:$16 sps:$4 sm:$0xff]   ;;  %v8185_v58 = vld [vmem:[#allocation2 + $0x140] ss:$16 sps:$4 sm:$0xff]  }
  0x64   :  { %1567 = vmatprep.subr.bf16.mxu1 %v8147_v29  ;;  %1544 = vmatprep.mubr.bf16.mxu0 %v9701_v47  ;;  %v8183_v57 = vld [vmem:[#allocation2 + $0x344] ss:$16 sps:$4 sm:$0xff]   ;;  %v8186_v59 = vld [vmem:[#allocation2 + $0x340] ss:$16 sps:$4 sm:$0xff]  }
  0x65   :  { %v8187_v60 = vld [vmem:[#allocation2 + $0x124] ss:$16 sps:$4 sm:$0xff]   ;;  %v8191_v62 = vld [vmem:[#allocation2 + $0x120] ss:$16 sps:$4 sm:$0xff]  }
  0x66   :  { %1527 = vmatpush1.bf16.msra.mxu0 %v8149_v30  ;;  %v8189_v61 = vld [vmem:[#allocation2 + $0x324] ss:$16 sps:$4 sm:$0xff]   ;;  %v8192_v63 = vld [vmem:[#allocation2 + $0x320] ss:$16 sps:$4 sm:$0xff]  }
  0x67   :  { %1568 = vmatpush1.bf16.msra.mxu1 %v8150_v31  ;;  %1528 = vmatprep.subr.bf16.mxu0 %v8151_v32  ;;  %v8193_v0 = vld [vmem:[#allocation2 + $0x104] ss:$16 sps:$4 sm:$0xff]   ;;  %v8197_v2 = vld [vmem:[#allocation2 + $0x100] ss:$16 sps:$4 sm:$0xff]  }
  0x68   :  { %1569 = vmatprep.subr.bf16.mxu1 %v8153_v33  ;;  %v8195_v1 = vld [vmem:[#allocation2 + $0x304] ss:$16 sps:$4 sm:$0xff]   ;;  %v8198_v3 = vld [vmem:[#allocation2 + $0x300] ss:$16 sps:$4 sm:$0xff]  }
  0x69   :  { %v8205_v4 = vld [vmem:[#allocation2 + $0x4e4] ss:$16 sps:$4 sm:$0xff]   ;;  %v8203_v8 = vld [vmem:[#allocation2 + $0x4e0] ss:$16 sps:$4 sm:$0xff]  }
  0x6a   :  { %1529 = vmatpush2.bf16.msra.mxu0 %v8155_v34  ;;  %v8208_v5 = vld [vmem:[#allocation2 + $0x6e4] ss:$16 sps:$4 sm:$0xff]   ;;  %v8206_v9 = vld [vmem:[#allocation2 + $0x6e0] ss:$16 sps:$4 sm:$0xff]  }
  0x6b   :  { %1570 = vmatpush2.bf16.msra.mxu1 %v8156_v35  ;;  %1530 = vmatprep.subr.bf16.mxu0 %v8157_v36  ;;  %v8211_v10 = vld [vmem:[#allocation2 + $0x4c4] ss:$16 sps:$4 sm:$0xff]   ;;  %v8209_v12 = vld [vmem:[#allocation2 + $0x4c0] ss:$16 sps:$4 sm:$0xff]  }
  0x6c   :  { %1571 = vmatprep.subr.bf16.mxu1 %v8159_v37  ;;  %v8214_v11 = vld [vmem:[#allocation2 + $0x6c4] ss:$16 sps:$4 sm:$0xff]   ;;  %v8212_v13 = vld [vmem:[#allocation2 + $0x6c0] ss:$16 sps:$4 sm:$0xff]  }
  0x6d   :  { %v8217_v14 = vld [vmem:[#allocation2 + $0x4a4] ss:$16 sps:$4 sm:$0xff]   ;;  %v8215_v17 = vld [vmem:[#allocation2 + $0x4a0] ss:$16 sps:$4 sm:$0xff]  }
  0x6e   :  { %1531 = vmatpush2.bf16.msra.mxu0 %v8161_v38  ;;  %v8220_v15 = vld [vmem:[#allocation2 + $0x6a4] ss:$16 sps:$4 sm:$0xff]   ;;  %v8218_v18 = vld [vmem:[#allocation2 + $0x6a0] ss:$16 sps:$4 sm:$0xff]  }
  0x6f   :  { %1572 = vmatpush2.bf16.msra.mxu1 %v8162_v39  ;;  %1532 = vmatprep.subr.bf16.mxu0 %v8163_v40  ;;  %v8223_v19 = vld [vmem:[#allocation2 + $0x484] ss:$16 sps:$4 sm:$0xff]   ;;  %v8221_v21 = vld [vmem:[#allocation2 + $0x480] ss:$16 sps:$4 sm:$0xff]  }
  0x70   :  { %1573 = vmatprep.subr.bf16.mxu1 %v8165_v41  ;;  %v8226_v20 = vld [vmem:[#allocation2 + $0x684] ss:$16 sps:$4 sm:$0xff]   ;;  %v8224_v22 = vld [vmem:[#allocation2 + $0x680] ss:$16 sps:$4 sm:$0xff]  }
  0x71   :  { %v8229_v23 = vld [vmem:[#allocation2 + $0x464] ss:$16 sps:$4 sm:$0xff]   ;;  %v8227_v25 = vld [vmem:[#allocation2 + $0x460] ss:$16 sps:$4 sm:$0xff]  }
  0x72   :  { %1533 = vmatpush2.bf16.msra.mxu0 %v8167_v42  ;;  %v8232_v24 = vld [vmem:[#allocation2 + $0x664] ss:$16 sps:$4 sm:$0xff]   ;;  %v8230_v26 = vld [vmem:[#allocation2 + $0x660] ss:$16 sps:$4 sm:$0xff]   ;;  %v8257_v42 = vld [vmem:[#allocation2 + $0xec] ss:$16 sps:$4 sm:$0xff]  }
  0x73   :  { %1574 = vmatpush2.bf16.msra.mxu1 %v8168_v43  ;;  %1534 = vmatprep.subr.bf16.mxu0 %v8169_v44  ;;  %v8235_v27 = vld [vmem:[#allocation2 + $0x444] ss:$16 sps:$4 sm:$0xff]   ;;  %v8233_v29 = vld [vmem:[#allocation2 + $0x440] ss:$16 sps:$4 sm:$0xff]   ;;  %v8254_v44 = vld [vmem:[%s9939_s0 + $0x18] ss:$0 sps:$4 sm:$0xff]  }
  0x74   :  { %1575 = vmatprep.subr.bf16.mxu1 %v8171_v45  ;;  %v8238_v28 = vld [vmem:[#allocation2 + $0x644] ss:$16 sps:$4 sm:$0xff]   ;;  %v8236_v30 = vld [vmem:[#allocation2 + $0x640] ss:$16 sps:$4 sm:$0xff]   ;;  %v8255_v45 = vld [vmem:[#allocation2 + $0xe8] ss:$16 sps:$4 sm:$0xff]  }
  0x75   :  { %v8241_v31 = vld [vmem:[#allocation2 + $0x424] ss:$16 sps:$4 sm:$0xff]   ;;  %v8239_v34 = vld [vmem:[#allocation2 + $0x420] ss:$16 sps:$4 sm:$0xff]  }
  0x76   :  { %1535 = vmatpush2.bf16.msra.mxu0 %v8173_v49  ;;  %v8244_v32 = vld [vmem:[#allocation2 + $0x624] ss:$16 sps:$4 sm:$0xff]   ;;  %v8242_v36 = vld [vmem:[#allocation2 + $0x620] ss:$16 sps:$4 sm:$0xff]  }
  0x77   :  { %1576 = vmatpush2.bf16.msra.mxu1 %v8174_v50  ;;  %1536 = vmatprep.subr.bf16.mxu0 %v8175_v52  ;;  %v9720_v33 = vld [vmem:[%s9939_s0 + $0x10] sm:$0xff]  ;;  %v8261_v50 = vld [vmem:[#allocation2 + $0xc8] ss:$16 sps:$4 sm:$0xff]  }
  0x78   :  { %1577 = vmatprep.subr.bf16.mxu1 %v8177_v53  ;;  %v9724_v35 = vcombine.high %v9720_v33, %v9720_v33  ;;  %v8247_v37 = vld [vmem:[#allocation2 + $0x404] ss:$16 sps:$4 sm:$0xff]   ;;  %v8245_v39 = vld [vmem:[#allocation2 + $0x400] ss:$16 sps:$4 sm:$0xff]   ;;  %v8269_v53 = vld [vmem:[#allocation2 + $0xac] ss:$16 sps:$4 sm:$0xff]  }
  0x79   :  { %v8250_v38 = vld [vmem:[#allocation2 + $0x604] ss:$16 sps:$4 sm:$0xff]   ;;  %v8248_v40 = vld [vmem:[#allocation2 + $0x600] ss:$16 sps:$4 sm:$0xff]  }
  0x7a   :  { %1537 = vmatpush2.bf16.msra.mxu0 %v8179_v54  ;;  %v8253_v41 = vld [vmem:[#allocation2 + $0x5e4] ss:$16 sps:$4 sm:$0xff]   ;;  %v8251_v43 = vld [vmem:[#allocation2 + $0x5e0] ss:$16 sps:$4 sm:$0xff]  }
  0x7b   :  { %1578 = vmatpush2.bf16.msra.mxu1 %v8180_v55  ;;  %1538 = vmatprep.subr.bf16.mxu0 %v8181_v56  ;;  %v8260_v46 = vld [vmem:[#allocation2 + $0x5c4] ss:$16 sps:$4 sm:$0xff]   ;;  %v8258_v49 = vld [vmem:[#allocation2 + $0x5c0] ss:$16 sps:$4 sm:$0xff]   ;;  %v8267_v55 = vld [vmem:[#allocation2 + $0xa8] ss:$16 sps:$4 sm:$0xff]  }
  0x7c   :  { %1579 = vmatprep.subr.bf16.mxu1 %v8183_v57  ;;  %v8266_v52 = vld [vmem:[#allocation2 + $0x5a4] ss:$16 sps:$4 sm:$0xff]   ;;  %v8264_v54 = vld [vmem:[#allocation2 + $0x5a0] ss:$16 sps:$4 sm:$0xff]   ;;  %v8275_v57 = vld [vmem:[#allocation2 + $0x8c] ss:$16 sps:$4 sm:$0xff]  }
  0x7d   :  { %v8272_v56 = vld [vmem:[#allocation2 + $0x584] ss:$16 sps:$4 sm:$0xff]  }
  0x7e   :  { %1539 = vmatpush2.bf16.msra.mxu0 %v8185_v58  ;;  %v8270_v58 = vld [vmem:[#allocation2 + $0x580] ss:$16 sps:$4 sm:$0xff]  }
  0x7f   :  { %1580 = vmatpush2.bf16.msra.mxu1 %v8186_v59  ;;  %1540 = vmatprep.subr.bf16.mxu0 %v8187_v60  ;;  %v8273_v59 = vld [vmem:[#allocation2 + $0x88] ss:$16 sps:$4 sm:$0xff]   ;;  %v8278_v60 = vld [vmem:[#allocation2 + $0x564] ss:$16 sps:$4 sm:$0xff]  }
  0x80   :  { %1581 = vmatprep.subr.bf16.mxu1 %v8189_v61  ;;  %v8281_v61 = vld [vmem:[#allocation2 + $0x6c] ss:$16 sps:$4 sm:$0xff]  }
  0x82   :  { %1541 = vmatpush2.bf16.msra.mxu0 %v8191_v62  ;;  %v8276_v62 = vld [vmem:[#allocation2 + $0x560] ss:$16 sps:$4 sm:$0xff]  }
  0x83   :  { %1582 = vmatpush2.bf16.msra.mxu1 %v8192_v63  ;;  %1542 = vmatprep.subr.bf16.mxu0 %v8193_v0  ;;  %v8284_v63 = vld [vmem:[#allocation2 + $0x544] ss:$16 sps:$4 sm:$0xff]   ;;  %v8287_v0 = vld [vmem:[#allocation2 + $0x4c] ss:$16 sps:$4 sm:$0xff]  }
  0x84   :  { %1583 = vmatprep.subr.bf16.mxu1 %v8195_v1  ;;  %v8282_v1 = vld [vmem:[#allocation2 + $0x540] ss:$16 sps:$4 sm:$0xff]  }
  0x86   :  { %1543 = vmatpush2.bf16.msra.mxu0 %v8197_v2  ;;  %v8285_v2 = vld [vmem:[#allocation2 + $0x48] ss:$16 sps:$4 sm:$0xff]  }
  0x87   :  { %1584 = vmatpush2.bf16.msra.mxu1 %v8198_v3  ;;  %1594 = vmatprep.subr.bf16.mxu0 %v8205_v4  ;;  %v8290_v3 = vld [vmem:[#allocation2 + $0x524] ss:$16 sps:$4 sm:$0xff]   ;;  %v8293_v4 = vld [vmem:[#allocation2 + $0x2c] ss:$16 sps:$4 sm:$0xff]  }
  0x88   :  { %1635 = vmatprep.subr.bf16.mxu1 %v8208_v5  ;;  %v8288_v5 = vld [vmem:[#allocation2 + $0x520] ss:$16 sps:$4 sm:$0xff]  }
  0x89   :  { %1545 = vmatmul.mubr.bf16.vlgmr.msra.gmra.mxu0 %v9710_v6 }
  0x8a   :  { %1586 = vmatmul.mubr.bf16.vlgmr.msra.gmra.mxu1 %v9712_v7  ;;  %1595 = vmatpush1.bf16.msra.mxu0 %v8203_v8  ;;  %v8291_v8 = vld [vmem:[#allocation2 + $0x28] ss:$16 sps:$4 sm:$0xff]  }
  0x8b   :  { %1636 = vmatpush1.bf16.msra.mxu1 %v8206_v9  ;;  %1596 = vmatprep.subr.bf16.mxu0 %v8211_v10  ;;  %v8296_v9 = vld [vmem:[#allocation2 + $0x504] ss:$16 sps:$4 sm:$0xff]   ;;  %v8299_v10 = vld [vmem:[#allocation2 + $0xc] ss:$16 sps:$4 sm:$0xff]  }
  0x8c   :  { %1637 = vmatprep.subr.bf16.mxu1 %v8214_v11  ;;  %1667 = vmatprep.mubr.bf16.mxu1 %v9609_v16  ;;  %v8294_v11 = vld [vmem:[#allocation2 + $0x500] ss:$16 sps:$4 sm:$0xff]  }
  0x8d   :  { %1626 = vmatprep.mubr.bf16.mxu0 %v9724_v35 }
  0x8e   :  { %1597 = vmatpush1.bf16.msra.mxu0 %v8209_v12  ;;  %v8297_v12 = vld [vmem:[#allocation2 + $0x8] ss:$16 sps:$4 sm:$0xff]  }
  0x8f   :  { %1638 = vmatpush1.bf16.msra.mxu1 %v8212_v13  ;;  %1598 = vmatprep.subr.bf16.mxu0 %v8217_v14  ;;  %v8304_v13 = vld [vmem:[#allocation2 + $0x1ec] ss:$16 sps:$4 sm:$0xff]  }
  0x90   :  { %1639 = vmatprep.subr.bf16.mxu1 %v8220_v15  ;;  %v8307_v14 = vld [vmem:[#allocation2 + $0x2ec] ss:$16 sps:$4 sm:$0xff]   ;;  %v9733_v15 = vcombine.low %v9720_v33, %v9720_v33  ;;  %v8326_v33 = vld [vmem:[#allocation2 + $0x168] ss:$16 sps:$4 sm:$0xff]  }
  0x92   :  { %1599 = vmatpush1.bf16.msra.mxu0 %v8215_v17  ;;  %v8302_v17 = vld [vmem:[#allocation2 + $0x1e8] ss:$16 sps:$4 sm:$0xff]  }
  0x93   :  { %1640 = vmatpush1.bf16.msra.mxu1 %v8218_v18  ;;  %1600 = vmatprep.subr.bf16.mxu0 %v8223_v19  ;;  %v8305_v18 = vld [vmem:[#allocation2 + $0x2e8] ss:$16 sps:$4 sm:$0xff]   ;;  %v8310_v19 = vld [vmem:[#allocation2 + $0x1cc] ss:$16 sps:$4 sm:$0xff]  }
  0x94   :  { %1641 = vmatprep.subr.bf16.mxu1 %v8226_v20  ;;  %v8313_v20 = vld [vmem:[#allocation2 + $0x2cc] ss:$16 sps:$4 sm:$0xff]  }
  0x96   :  { %1601 = vmatpush1.bf16.msra.mxu0 %v8221_v21  ;;  %v8308_v21 = vld [vmem:[#allocation2 + $0x1c8] ss:$16 sps:$4 sm:$0xff]  }
  0x97   :  { %1642 = vmatpush1.bf16.msra.mxu1 %v8224_v22  ;;  %1602 = vmatprep.subr.bf16.mxu0 %v8229_v23  ;;  %v8311_v22 = vld [vmem:[#allocation2 + $0x2c8] ss:$16 sps:$4 sm:$0xff]   ;;  %v8316_v23 = vld [vmem:[#allocation2 + $0x1ac] ss:$16 sps:$4 sm:$0xff]  }
  0x98   :  { %1643 = vmatprep.subr.bf16.mxu1 %v8232_v24  ;;  %v8319_v24 = vld [vmem:[#allocation2 + $0x2ac] ss:$16 sps:$4 sm:$0xff]  }
  0x9a   :  { %1603 = vmatpush1.bf16.msra.mxu0 %v8227_v25  ;;  %v8314_v25 = vld [vmem:[#allocation2 + $0x1a8] ss:$16 sps:$4 sm:$0xff]  }
  0x9b   :  { %1644 = vmatpush1.bf16.msra.mxu1 %v8230_v26  ;;  %1604 = vmatprep.subr.bf16.mxu0 %v8235_v27  ;;  %v8317_v26 = vld [vmem:[#allocation2 + $0x2a8] ss:$16 sps:$4 sm:$0xff]   ;;  %v8322_v27 = vld [vmem:[#allocation2 + $0x18c] ss:$16 sps:$4 sm:$0xff]  }
  0x9c   :  { %1645 = vmatprep.subr.bf16.mxu1 %v8238_v28  ;;  %v8325_v28 = vld [vmem:[#allocation2 + $0x28c] ss:$16 sps:$4 sm:$0xff]  }
  0x9e   :  { %1605 = vmatpush1.bf16.msra.mxu0 %v8233_v29  ;;  %v8320_v29 = vld [vmem:[#allocation2 + $0x188] ss:$16 sps:$4 sm:$0xff]  }
  0x9f   :  { %1646 = vmatpush1.bf16.msra.mxu1 %v8236_v30  ;;  %1606 = vmatprep.subr.bf16.mxu0 %v8241_v31  ;;  %v8323_v30 = vld [vmem:[#allocation2 + $0x288] ss:$16 sps:$4 sm:$0xff]   ;;  %v8328_v31 = vld [vmem:[#allocation2 + $0x16c] ss:$16 sps:$4 sm:$0xff]  }
  0xa0   :  { %1647 = vmatprep.subr.bf16.mxu1 %v8244_v32  ;;  %v8331_v32 = vld [vmem:[#allocation2 + $0x26c] ss:$16 sps:$4 sm:$0xff]  }
  0xa2   :  { %1607 = vmatpush1.bf16.msra.mxu0 %v8239_v34  ;;  %v8334_v34 = vld [vmem:[#allocation2 + $0x14c] ss:$16 sps:$4 sm:$0xff]  }
  0xa3   :  { %1648 = vmatpush1.bf16.msra.mxu1 %v8242_v36  ;;  %1608 = vmatprep.subr.bf16.mxu0 %v8247_v37  ;;  %v8337_v36 = vld [vmem:[#allocation2 + $0x24c] ss:$16 sps:$4 sm:$0xff]   ;;  %v8332_v37 = vld [vmem:[#allocation2 + $0x148] ss:$16 sps:$4 sm:$0xff]  }
  0xa4   :  { %1649 = vmatprep.subr.bf16.mxu1 %v8250_v38  ;;  %v8335_v38 = vld [vmem:[#allocation2 + $0x248] ss:$16 sps:$4 sm:$0xff]  }
  0xa6   :  { %1609 = vmatpush1.bf16.msra.mxu0 %v8245_v39  ;;  %v8340_v39 = vld [vmem:[#allocation2 + $0x12c] ss:$16 sps:$4 sm:$0xff]  }
  0xa7   :  { %1650 = vmatpush1.bf16.msra.mxu1 %v8248_v40  ;;  %1610 = vmatprep.subr.bf16.mxu0 %v8253_v41  ;;  %v8343_v40 = vld [vmem:[#allocation2 + $0x22c] ss:$16 sps:$4 sm:$0xff]   ;;  %v8338_v41 = vld [vmem:[#allocation2 + $0x128] ss:$16 sps:$4 sm:$0xff]  }
  0xa8   :  { %1676 = vmatprep.subr.bf16.mxu1 %v8257_v42  ;;  %v8341_v42 = vld [vmem:[#allocation2 + $0x228] ss:$16 sps:$4 sm:$0xff]  }
  0xaa   :  { %1668 = vmatmul.mubr.bf16.vlgmr.msra.gmra.mxu1 %v8254_v44  ;;  %1611 = vmatpush2.bf16.msra.mxu0 %v8251_v43  ;;  %v8346_v43 = vld [vmem:[#allocation2 + $0x10c] ss:$16 sps:$4 sm:$0xff]  }
  0xab   :  { %1677 = vmatpush1.bf16.msra.mxu1 %v8255_v45  ;;  %1612 = vmatprep.subr.bf16.mxu0 %v8260_v46  ;;  %v8349_v44 = vld [vmem:[#allocation2 + $0x20c] ss:$16 sps:$4 sm:$0xff]   ;;  %v8344_v45 = vld [vmem:[#allocation2 + $0x108] ss:$16 sps:$4 sm:$0xff]  }
  0xac   :  { %1678 = vmatprep.subr.bf16.mxu1 %v8263_v48  ;;  %1708 = vmatprep.mubr.bf16.mxu1 %v9701_v47  ;;  %v8279_v47 = vld [vmem:[#allocation2 + $0x68] ss:$16 sps:$4 sm:$0xff]   ;;  %v8352_v48 = vld [vmem:[#allocation2 + $0x3ec] ss:$16 sps:$4 sm:$0xff]  }
  0xad   :  { %v8347_v46 = vld [vmem:[#allocation2 + $0x208] ss:$16 sps:$4 sm:$0xff]  }
  0xae   :  { %1613 = vmatpush2.bf16.msra.mxu0 %v8258_v49  ;;  %v8355_v49 = vld [vmem:[#allocation2 + $0x4ec] ss:$16 sps:$4 sm:$0xff]  }
  0xaf   :  { %1679 = vmatpush1.bf16.msra.mxu1 %v8261_v50  ;;  %1614 = vmatprep.subr.bf16.mxu0 %v8266_v52  ;;  %v8350_v50 = vld [vmem:[#allocation2 + $0x3e8] ss:$16 sps:$4 sm:$0xff]  }
  0xb0   :  { %1680 = vmatprep.subr.bf16.mxu1 %v8269_v53  ;;  %v8353_v52 = vld [vmem:[#allocation2 + $0x4e8] ss:$16 sps:$4 sm:$0xff]   ;;  %v8358_v53 = vld [vmem:[#allocation2 + $0x3cc] ss:$16 sps:$4 sm:$0xff]  }
  0xb2   :  { %1615 = vmatpush2.bf16.msra.mxu0 %v8264_v54  ;;  %v8361_v54 = vld [vmem:[#allocation2 + $0x4cc] ss:$16 sps:$4 sm:$0xff]  }
  0xb3   :  { %1681 = vmatpush1.bf16.msra.mxu1 %v8267_v55  ;;  %1616 = vmatprep.subr.bf16.mxu0 %v8272_v56  ;;  %v8356_v55 = vld [vmem:[#allocation2 + $0x3c8] ss:$16 sps:$4 sm:$0xff]  }
  0xb4   :  { %1682 = vmatprep.subr.bf16.mxu1 %v8275_v57  ;;  %v8359_v56 = vld [vmem:[#allocation2 + $0x4c8] ss:$16 sps:$4 sm:$0xff]   ;;  %v8364_v57 = vld [vmem:[#allocation2 + $0x3ac] ss:$16 sps:$4 sm:$0xff]  }
  0xb6   :  { %1617 = vmatpush2.bf16.msra.mxu0 %v8270_v58  ;;  %v8367_v58 = vld [vmem:[#allocation2 + $0x4ac] ss:$16 sps:$4 sm:$0xff]  }
  0xb7   :  { %1683 = vmatpush1.bf16.msra.mxu1 %v8273_v59  ;;  %1618 = vmatprep.subr.bf16.mxu0 %v8278_v60  ;;  %v8362_v59 = vld [vmem:[#allocation2 + $0x3a8] ss:$16 sps:$4 sm:$0xff]  }
  0xb8   :  { %1684 = vmatprep.subr.bf16.mxu1 %v8281_v61  ;;  %v8365_v60 = vld [vmem:[#allocation2 + $0x4a8] ss:$16 sps:$4 sm:$0xff]   ;;  %v8370_v61 = vld [vmem:[#allocation2 + $0x38c] ss:$16 sps:$4 sm:$0xff]  }
  0xba   :  { %1619 = vmatpush2.bf16.msra.mxu0 %v8276_v62  ;;  %v8373_v62 = vld [vmem:[#allocation2 + $0x48c] ss:$16 sps:$4 sm:$0xff]  }
  0xbb   :  { %1685 = vmatpush1.bf16.msra.mxu1 %v8279_v47  ;;  %1620 = vmatprep.subr.bf16.mxu0 %v8284_v63  ;;  %v8368_v47 = vld [vmem:[#allocation2 + $0x388] ss:$16 sps:$4 sm:$0xff]   ;;  %v8376_v63 = vld [vmem:[#allocation2 + $0x36c] ss:$16 sps:$4 sm:$0xff]  }
  0xbc   :  { %1686 = vmatprep.subr.bf16.mxu1 %v8287_v0  ;;  %v8379_v0 = vld [vmem:[#allocation2 + $0x46c] ss:$16 sps:$4 sm:$0xff]  }
  0xbe   :  { %1621 = vmatpush2.bf16.msra.mxu0 %v8282_v1  ;;  %v8374_v1 = vld [vmem:[#allocation2 + $0x368] ss:$16 sps:$4 sm:$0xff]  }
  0xbf   :  { %1687 = vmatpush1.bf16.msra.mxu1 %v8285_v2  ;;  %1622 = vmatprep.subr.bf16.mxu0 %v8290_v3  ;;  %v8377_v2 = vld [vmem:[#allocation2 + $0x468] ss:$16 sps:$4 sm:$0xff]   ;;  %v8382_v3 = vld [vmem:[#allocation2 + $0x34c] ss:$16 sps:$4 sm:$0xff]  }
  0xc0   :  { %1688 = vmatprep.subr.bf16.mxu1 %v8293_v4  ;;  %v8385_v4 = vld [vmem:[#allocation2 + $0x44c] ss:$16 sps:$4 sm:$0xff]  }
  0xc2   :  { %1623 = vmatpush2.bf16.msra.mxu0 %v8288_v5  ;;  %v8383_v5 = vld [vmem:[#allocation2 + $0x448] ss:$16 sps:$4 sm:$0xff]  }
  0xc3   :  { %1689 = vmatpush1.bf16.msra.mxu1 %v8291_v8  ;;  %1624 = vmatprep.subr.bf16.mxu0 %v8296_v9  ;;  %v8388_v8 = vld [vmem:[#allocation2 + $0x32c] ss:$16 sps:$4 sm:$0xff]  }
  0xc4   :  { %1690 = vmatprep.subr.bf16.mxu1 %v8299_v10  ;;  %v8391_v9 = vld [vmem:[#allocation2 + $0x42c] ss:$16 sps:$4 sm:$0xff]   ;;  %v8386_v10 = vld [vmem:[#allocation2 + $0x328] ss:$16 sps:$4 sm:$0xff]  }
  0xc6   :  { %1625 = vmatpush2.bf16.msra.mxu0 %v8294_v11  ;;  %v8389_v11 = vld [vmem:[#allocation2 + $0x428] ss:$16 sps:$4 sm:$0xff]  }
  0xc7   :  { %1691 = vmatpush1.bf16.msra.mxu1 %v8297_v12  ;;  %1717 = vmatprep.subr.bf16.mxu0 %v8307_v14  ;;  %v8394_v12 = vld [vmem:[#allocation2 + $0x30c] ss:$16 sps:$4 sm:$0xff]   ;;  %v8392_v14 = vld [vmem:[#allocation2 + $0x308] ss:$16 sps:$4 sm:$0xff]  }
  0xc8   :  { %1692 = vmatprep.subr.bf16.mxu1 %v8304_v13  ;;  %v8397_v13 = vld [vmem:[#allocation2 + $0x40c] ss:$16 sps:$4 sm:$0xff]  }
  0xc9   :  { %1627 = vmatmul.mubr.bf16.vlgmr.msra.gmra.mxu0 %v9733_v15 }
  0xca   :  { %1718 = vmatpush1.bf16.msra.mxu0 %v8305_v18  ;;  %1749 = vmatprep.mubr.bf16.mxu0 %v9706_v51  ;;  %v8329_v51 = vld [vmem:[#allocation2 + $0x268] ss:$16 sps:$4 sm:$0xff]   ;;  %v8400_v18 = vld [vmem:[#allocation2 + $0x5ec] ss:$16 sps:$4 sm:$0xff]  }
  0xcb   :  { %1693 = vmatpush2.bf16.msra.mxu1 %v8302_v17  ;;  %1719 = vmatprep.subr.bf16.mxu0 %v8313_v20  ;;  %v8395_v17 = vld [vmem:[#allocation2 + $0x408] ss:$16 sps:$4 sm:$0xff]  }
  0xcc   :  { %1694 = vmatprep.subr.bf16.mxu1 %v8310_v19  ;;  %v8403_v19 = vld [vmem:[#allocation2 + $0x6ec] ss:$16 sps:$4 sm:$0xff]   ;;  %v8398_v20 = vld [vmem:[#allocation2 + $0x5e8] ss:$16 sps:$4 sm:$0xff]  }
  0xce   :  { %1720 = vmatpush1.bf16.msra.mxu0 %v8311_v22  ;;  %v8406_v22 = vld [vmem:[#allocation2 + $0x5cc] ss:$16 sps:$4 sm:$0xff]  }
  0xcf   :  { %1695 = vmatpush2.bf16.msra.mxu1 %v8308_v21  ;;  %1721 = vmatprep.subr.bf16.mxu0 %v8319_v24  ;;  %v8401_v21 = vld [vmem:[#allocation2 + $0x6e8] ss:$16 sps:$4 sm:$0xff]  }
  0xd0   :  { %1696 = vmatprep.subr.bf16.mxu1 %v8316_v23  ;;  %v8409_v23 = vld [vmem:[#allocation2 + $0x6cc] ss:$16 sps:$4 sm:$0xff]   ;;  %v8404_v24 = vld [vmem:[#allocation2 + $0x5c8] ss:$16 sps:$4 sm:$0xff]  }
  0xd2   :  { %1722 = vmatpush1.bf16.msra.mxu0 %v8317_v26  ;;  %v8412_v26 = vld [vmem:[#allocation2 + $0x5ac] ss:$16 sps:$4 sm:$0xff]  }
  0xd3   :  { %1697 = vmatpush2.bf16.msra.mxu1 %v8314_v25  ;;  %1723 = vmatprep.subr.bf16.mxu0 %v8325_v28  ;;  %v8407_v25 = vld [vmem:[#allocation2 + $0x6c8] ss:$16 sps:$4 sm:$0xff]  }
  0xd4   :  { %1698 = vmatprep.subr.bf16.mxu1 %v8322_v27  ;;  %v8415_v27 = vld [vmem:[#allocation2 + $0x6ac] ss:$16 sps:$4 sm:$0xff]   ;;  %v8410_v28 = vld [vmem:[#allocation2 + $0x5a8] ss:$16 sps:$4 sm:$0xff]  }
  0xd6   :  { %1724 = vmatpush1.bf16.msra.mxu0 %v8323_v30  ;;  %v8418_v30 = vld [vmem:[#allocation2 + $0x58c] ss:$16 sps:$4 sm:$0xff]  }
  0xd7   :  { %1699 = vmatpush2.bf16.msra.mxu1 %v8320_v29  ;;  %1725 = vmatprep.subr.bf16.mxu0 %v8331_v32  ;;  %v8413_v29 = vld [vmem:[#allocation2 + $0x6a8] ss:$16 sps:$4 sm:$0xff]  }
  0xd8   :  { %1700 = vmatprep.subr.bf16.mxu1 %v8328_v31  ;;  %v8421_v31 = vld [vmem:[#allocation2 + $0x68c] ss:$16 sps:$4 sm:$0xff]   ;;  %v8416_v32 = vld [vmem:[#allocation2 + $0x588] ss:$16 sps:$4 sm:$0xff]  }
  0xda   :  { %1726 = vmatpush1.bf16.msra.mxu0 %v8329_v51  ;;  %v8424_v51 = vld [vmem:[#allocation2 + $0x56c] ss:$16 sps:$4 sm:$0xff]  }
  0xdb   :  { %1701 = vmatpush2.bf16.msra.mxu1 %v8326_v33  ;;  %1727 = vmatprep.subr.bf16.mxu0 %v8337_v36  ;;  %v8419_v33 = vld [vmem:[#allocation2 + $0x688] ss:$16 sps:$4 sm:$0xff]  }
  0xdc   :  { %1702 = vmatprep.subr.bf16.mxu1 %v8334_v34  ;;  %v8422_v34 = vld [vmem:[#allocation2 + $0x568] ss:$16 sps:$4 sm:$0xff]  }
  0xdd   :  { %v8425_v36 = vld [vmem:[#allocation2 + $0x668] ss:$16 sps:$4 sm:$0xff]  }
  0xde   :  { %1728 = vmatpush1.bf16.msra.mxu0 %v8335_v38  ;;  %v8428_v38 = vld [vmem:[#allocation2 + $0x548] ss:$16 sps:$4 sm:$0xff]  }
  0xdf   :  { %1703 = vmatpush2.bf16.msra.mxu1 %v8332_v37  ;;  %1729 = vmatprep.subr.bf16.mxu0 %v8343_v40  ;;  %v8433_v37 = vld [vmem:[#allocation2 + $0x64c] ss:$16 sps:$4 sm:$0xff]  }
  0xe0   :  { %1704 = vmatprep.subr.bf16.mxu1 %v8340_v39  ;;  %v8431_v39 = vld [vmem:[#allocation2 + $0x648] ss:$16 sps:$4 sm:$0xff]   ;;  %v8436_v40 = vld [vmem:[#allocation2 + $0x52c] ss:$16 sps:$4 sm:$0xff]  }
  0xe2   :  { %1730 = vmatpush1.bf16.msra.mxu0 %v8341_v42  ;;  %v8434_v42 = vld [vmem:[#allocation2 + $0x528] ss:$16 sps:$4 sm:$0xff]  }
  0xe3   :  { %1705 = vmatpush2.bf16.msra.mxu1 %v8338_v41  ;;  %1731 = vmatprep.subr.bf16.mxu0 %v8349_v44  ;;  %v8439_v41 = vld [vmem:[#allocation2 + $0x62c] ss:$16 sps:$4 sm:$0xff]  }
  0xe4   :  { %1706 = vmatprep.subr.bf16.mxu1 %v8346_v43  ;;  %v8437_v43 = vld [vmem:[#allocation2 + $0x628] ss:$16 sps:$4 sm:$0xff]   ;;  %v8442_v44 = vld [vmem:[#allocation2 + $0x50c] ss:$16 sps:$4 sm:$0xff]  }
  0xe6   :  { %1732 = vmatpush1.bf16.msra.mxu0 %v8347_v46  ;;  %v8440_v46 = vld [vmem:[#allocation2 + $0x508] ss:$16 sps:$4 sm:$0xff]  }
  0xe7   :  { %1707 = vmatpush2.bf16.msra.mxu1 %v8344_v45  ;;  %1733 = vmatprep.subr.bf16.mxu0 %v8352_v48  ;;  %v8445_v45 = vld [vmem:[#allocation2 + $0x60c] ss:$16 sps:$4 sm:$0xff]   ;;  %v8443_v48 = vld [vmem:[#allocation2 + $0x608] ss:$16 sps:$4 sm:$0xff]  }
  0xe8   :  { %1758 = vmatprep.subr.bf16.mxu1 %v8355_v49  ;;  %v8448_v49 = vld [vmem:[#allocation4 + $0xe4] ss:$16 sps:$4 sm:$0xff]  }
  0xea   :  { %1709 = vmatmul.mubr.bf16.vlgmr.msra.gmra.mxu1 %v9710_v6  ;;  %1734 = vmatpush2.bf16.msra.mxu0 %v8350_v50  ;;  %v8371_v6 = vld [vmem:[#allocation2 + $0x488] ss:$16 sps:$4 sm:$0xff]   ;;  %v8446_v50 = vld [vmem:[#allocation4 + $0xe0] ss:$16 sps:$4 sm:$0xff]  }
  0xeb   :  { %1759 = vmatpush1.bf16.msra.mxu1 %v8353_v52  ;;  %1735 = vmatprep.subr.bf16.mxu0 %v8358_v53  ;;  %v8451_v52 = vld [vmem:[#allocation4 + $0xc4] ss:$16 sps:$4 sm:$0xff]   ;;  %v8449_v53 = vld [vmem:[#allocation4 + $0xc0] ss:$16 sps:$4 sm:$0xff]  }
  0xec   :  { %1760 = vmatprep.subr.bf16.mxu1 %v8361_v54  ;;  %1790 = vmatprep.mubr.bf16.mxu1 %v9724_v35  ;;  %v8380_v35 = vld [vmem:[#allocation2 + $0x348] ss:$16 sps:$4 sm:$0xff]  }
  0xed   :  { %v9470_v54 = vld [vmem:[%s9939_s0 + $0x18] ss:$0 sps:$4 sm:$0xff]  }
  0xee   :  { %1736 = vmatpush2.bf16.msra.mxu0 %v8356_v55  ;;  %v8454_v55 = vld [vmem:[#allocation4 + $0xa4] ss:$16 sps:$4 sm:$0xff]  }
  0xef   :  { %1761 = vmatpush1.bf16.msra.mxu1 %v8359_v56  ;;  %1737 = vmatprep.subr.bf16.mxu0 %v8364_v57  ;;  %v8452_v56 = vld [vmem:[#allocation4 + $0xa0] ss:$16 sps:$4 sm:$0xff]   ;;  %v8457_v57 = vld [vmem:[#allocation4 + $0x84] ss:$16 sps:$4 sm:$0xff]  }
  0xf0   :  { %1762 = vmatprep.subr.bf16.mxu1 %v8367_v58  ;;  %v8455_v58 = vld [vmem:[#allocation4 + $0x80] ss:$16 sps:$4 sm:$0xff]  }
  0xf2   :  { %1738 = vmatpush2.bf16.msra.mxu0 %v8362_v59  ;;  %v8460_v59 = vld [vmem:[#allocation4 + $0x64] ss:$16 sps:$4 sm:$0xff]  }
  0xf3   :  { %1763 = vmatpush1.bf16.msra.mxu1 %v8365_v60  ;;  %1739 = vmatprep.subr.bf16.mxu0 %v8370_v61  ;;  %v8518_v60 = vld [vmem:[#allocation4 + $0x2e0] ss:$16 sps:$4 sm:$0xff]   ;;  %v8520_v61 = vld [vmem:[#allocation4 + $0x2e4] ss:$16 sps:$4 sm:$0xff]  }
  0xf4   :  { %1764 = vmatprep.subr.bf16.mxu1 %v8373_v62  ;;  %v8458_v62 = vld [vmem:[#allocation4 + $0x60] ss:$16 sps:$4 sm:$0xff]  }
  0xf6   :  { %1740 = vmatpush2.bf16.msra.mxu0 %v8368_v47  ;;  %v8524_v47 = vld [vmem:[#allocation4 + $0x2c0] ss:$16 sps:$4 sm:$0xff]  }
  0xf7   :  { %1765 = vmatpush1.bf16.msra.mxu1 %v8371_v6  ;;  %1741 = vmatprep.subr.bf16.mxu0 %v8376_v63  ;;  %v8526_v6 = vld [vmem:[#allocation4 + $0x2c4] ss:$16 sps:$4 sm:$0xff]   ;;  %v8461_v63 = vld [vmem:[#allocation4 + $0x40] ss:$16 sps:$4 sm:$0xff]  }
  0xf8   :  { %1766 = vmatprep.subr.bf16.mxu1 %v8379_v0  ;;  %v8466_v0 = vld [vmem:[#allocation4 + $0x24] ss:$16 sps:$4 sm:$0xff]  }
  0xfa   :  { %1742 = vmatpush2.bf16.msra.mxu0 %v8374_v1  ;;  %v8530_v1 = vld [vmem:[#allocation4 + $0x2a0] ss:$16 sps:$4 sm:$0xff]  }
  0xfb   :  { %1767 = vmatpush1.bf16.msra.mxu1 %v8377_v2  ;;  %1743 = vmatprep.subr.bf16.mxu0 %v8382_v3  ;;  %v8532_v2 = vld [vmem:[#allocation4 + $0x2a4] ss:$16 sps:$4 sm:$0xff]   ;;  %v8464_v3 = vld [vmem:[#allocation4 + $0x20] ss:$16 sps:$4 sm:$0xff]  }
  0xfc   :  { %1768 = vmatprep.subr.bf16.mxu1 %v8385_v4  ;;  %v8469_v4 = vld [vmem:[#allocation4 + $0x4] ss:$16 sps:$4 sm:$0xff]  }
  0xfe   :  { %1744 = vmatpush2.bf16.msra.mxu0 %v8380_v35  ;;  %v8536_v35 = vld [vmem:[#allocation4 + $0x280] ss:$16 sps:$4 sm:$0xff]  }
  0xff   :  { %1769 = vmatpush1.bf16.msra.mxu1 %v8383_v5  ;;  %1745 = vmatprep.subr.bf16.mxu0 %v8388_v8  ;;  %v8538_v5 = vld [vmem:[#allocation4 + $0x284] ss:$16 sps:$4 sm:$0xff]   ;;  %v8467_v8 = vld [vmem:[#allocation4] ss:$16 sps:$4 sm:$0xff]  }
 0x100   :  { %1770 = vmatprep.subr.bf16.mxu1 %v8391_v9  ;;  %v8472_v9 = vld [vmem:[#allocation4 + $0x1e4] ss:$16 sps:$4 sm:$0xff]  }
 0x102   :  { %1746 = vmatpush2.bf16.msra.mxu0 %v8386_v10  ;;  %v8542_v10 = vld [vmem:[#allocation4 + $0x260] ss:$16 sps:$4 sm:$0xff]  }
 0x103   :  { %1771 = vmatpush1.bf16.msra.mxu1 %v8389_v11  ;;  %1747 = vmatprep.subr.bf16.mxu0 %v8394_v12  ;;  %v8544_v11 = vld [vmem:[#allocation4 + $0x264] ss:$16 sps:$4 sm:$0xff]   ;;  %v8470_v12 = vld [vmem:[#allocation4 + $0x1e0] ss:$16 sps:$4 sm:$0xff]  }
 0x104   :  { %1772 = vmatprep.subr.bf16.mxu1 %v8397_v13  ;;  %v8475_v13 = vld [vmem:[#allocation4 + $0x1c4] ss:$16 sps:$4 sm:$0xff]  }
 0x106   :  { %1748 = vmatpush2.bf16.msra.mxu0 %v8392_v14  ;;  %v8473_v14 = vld [vmem:[#allocation4 + $0x1c0] ss:$16 sps:$4 sm:$0xff]  }
 0x107   :  { %1773 = vmatpush1.bf16.msra.mxu1 %v8395_v17  ;;  %1799 = vmatprep.subr.bf16.mxu0 %v8403_v19  ;;  %v8550_v17 = vld [vmem:[#allocation4 + $0x244] ss:$16 sps:$4 sm:$0xff]  }
 0x108   :  { %1774 = vmatprep.subr.bf16.mxu1 %v8400_v18 }
 0x109   :  { %1750 = vmatmul.mubr.bf16.vlgmr.msra.gmra.mxu0 %v9712_v7  ;;  %v8427_v7 = vld [vmem:[#allocation2 + $0x66c] ss:$16 sps:$4 sm:$0xff]  }
 0x10a   :  { %1800 = vmatpush1.bf16.msra.mxu0 %v8401_v21  ;;  %1831 = vmatprep.mubr.bf16.mxu0 %v9609_v16  ;;  %v8430_v16 = vld [vmem:[#allocation2 + $0x54c] ss:$16 sps:$4 sm:$0xff]   ;;  %v8548_v21 = vld [vmem:[#allocation4 + $0x240] ss:$16 sps:$4 sm:$0xff]  }
 0x10b   :  { %1775 = vmatpush2.bf16.msra.mxu1 %v8398_v20  ;;  %1801 = vmatprep.subr.bf16.mxu0 %v8409_v23  ;;  %v8478_v20 = vld [vmem:[#allocation4 + $0x1a4] ss:$16 sps:$4 sm:$0xff]  }
 0x10c   :  { %1776 = vmatprep.subr.bf16.mxu1 %v8406_v22 }
 0x10e   :  { %1802 = vmatpush1.bf16.msra.mxu0 %v8407_v25 }
 0x10f   :  { %1777 = vmatpush2.bf16.msra.mxu1 %v8404_v24  ;;  %1803 = vmatprep.subr.bf16.mxu0 %v8415_v27  ;;  %v8556_v24 = vld [vmem:[#allocation4 + $0x224] ss:$16 sps:$4 sm:$0xff]   ;;  %v8476_v27 = vld [vmem:[#allocation4 + $0x1a0] ss:$16 sps:$4 sm:$0xff]  }
 0x110   :  { %1778 = vmatprep.subr.bf16.mxu1 %v8412_v26 }
 0x112   :  { %1804 = vmatpush1.bf16.msra.mxu0 %v8413_v29 }
 0x113   :  { %1779 = vmatpush2.bf16.msra.mxu1 %v8410_v28  ;;  %1805 = vmatprep.subr.bf16.mxu0 %v8421_v31  ;;  %v8554_v28 = vld [vmem:[#allocation4 + $0x220] ss:$16 sps:$4 sm:$0xff]   ;;  %v8481_v31 = vld [vmem:[#allocation4 + $0x184] ss:$16 sps:$4 sm:$0xff]  }
 0x114   :  { %1780 = vmatprep.subr.bf16.mxu1 %v8418_v30 }
 0x116   :  { %1806 = vmatpush1.bf16.msra.mxu0 %v8419_v33  ;;  %v8562_v33 = vld [vmem:[#allocation4 + $0x204] ss:$16 sps:$4 sm:$0xff]  }
 0x117   :  { %1781 = vmatpush2.bf16.msra.mxu1 %v8416_v32  ;;  %1807 = vmatprep.subr.bf16.mxu0 %v8427_v7  ;;  %v8560_v32 = vld [vmem:[#allocation4 + $0x200] ss:$16 sps:$4 sm:$0xff]   ;;  %v8484_v7 = vld [vmem:[#allocation4 + $0x164] ss:$16 sps:$4 sm:$0xff]  }
 0x118   :  { %1782 = vmatprep.subr.bf16.mxu1 %v8424_v51  ;;  %v8479_v51 = vld [vmem:[#allocation4 + $0x180] ss:$16 sps:$4 sm:$0xff]  }
 0x11a   :  { %1808 = vmatpush1.bf16.msra.mxu0 %v8425_v36  ;;  %v8568_v36 = vld [vmem:[#allocation4 + $0x3e4] ss:$16 sps:$4 sm:$0xff]  }
 0x11b   :  { %1783 = vmatpush2.bf16.msra.mxu1 %v8422_v34  ;;  %1809 = vmatprep.subr.bf16.mxu0 %v8433_v37  ;;  %v8566_v34 = vld [vmem:[#allocation4 + $0x3e0] ss:$16 sps:$4 sm:$0xff]   ;;  %v8571_v37 = vld [vmem:[#allocation4 + $0x3c4] ss:$16 sps:$4 sm:$0xff]  }
 0x11c   :  { %1784 = vmatprep.subr.bf16.mxu1 %v8430_v16  ;;  %v8482_v16 = vld [vmem:[#allocation4 + $0x160] ss:$16 sps:$4 sm:$0xff]  }
 0x11e   :  { %1810 = vmatpush1.bf16.msra.mxu0 %v8431_v39  ;;  %v8569_v39 = vld [vmem:[#allocation4 + $0x3c0] ss:$16 sps:$4 sm:$0xff]  }
 0x11f   :  { %1785 = vmatpush2.bf16.msra.mxu1 %v8428_v38  ;;  %1811 = vmatprep.subr.bf16.mxu0 %v8439_v41  ;;  %v8487_v38 = vld [vmem:[#allocation4 + $0x144] ss:$16 sps:$4 sm:$0xff]  }
 0x120   :  { %1786 = vmatprep.subr.bf16.mxu1 %v8436_v40  ;;  %v8485_v40 = vld [vmem:[#allocation4 + $0x140] ss:$16 sps:$4 sm:$0xff]   ;;  %v8574_v41 = vld [vmem:[#allocation4 + $0x3a4] ss:$16 sps:$4 sm:$0xff]  }
 0x122   :  { %1812 = vmatpush1.bf16.msra.mxu0 %v8437_v43  ;;  %v8572_v43 = vld [vmem:[#allocation4 + $0x3a0] ss:$16 sps:$4 sm:$0xff]  }
 0x123   :  { %1787 = vmatpush2.bf16.msra.mxu1 %v8434_v42  ;;  %1813 = vmatprep.subr.bf16.mxu0 %v8445_v45  ;;  %v8490_v42 = vld [vmem:[#allocation4 + $0x124] ss:$16 sps:$4 sm:$0xff]   ;;  %v8488_v45 = vld [vmem:[#allocation4 + $0x120] ss:$16 sps:$4 sm:$0xff]  }
 0x124   :  { %1788 = vmatprep.subr.bf16.mxu1 %v8442_v44  ;;  %v8577_v44 = vld [vmem:[#allocation4 + $0x384] ss:$16 sps:$4 sm:$0xff]  }
 0x126   :  { %1814 = vmatpush1.bf16.msra.mxu0 %v8443_v48  ;;  %v8575_v48 = vld [vmem:[#allocation4 + $0x380] ss:$16 sps:$4 sm:$0xff]  }
 0x127   :  { %1789 = vmatpush2.bf16.msra.mxu1 %v8440_v46  ;;  %2646 = vmatprep.subr.bf16.mxu0 %v8448_v49  ;;  %v8493_v46 = vld [vmem:[#allocation4 + $0x104] ss:$16 sps:$4 sm:$0xff]  }
 0x128   :  { %2687 = vmatprep.subr.bf16.mxu1 %v8520_v61  ;;  %v8580_v49 = vld [vmem:[#allocation4 + $0x364] ss:$16 sps:$4 sm:$0xff]  }
 0x129   :  { %1832 = vmatmul.mubr.bf16.vlgmr.msra.gmra.mxu0 %v9470_v54  ;;  %v8583_v54 = vld [vmem:[#allocation4 + $0x344] ss:$16 sps:$4 sm:$0xff]  }
 0x12a   :  { %1791 = vmatmul.mubr.bf16.vlgmr.msra.gmra.mxu1 %v9733_v15  ;;  %2647 = vmatpush1.bf16.msra.mxu0 %v8446_v50  ;;  %v8463_v15 = vld [vmem:[#allocation4 + $0x44] ss:$16 sps:$4 sm:$0xff]   ;;  %v8491_v50 = vld [vmem:[#allocation4 + $0x100] ss:$16 sps:$4 sm:$0xff]  }
 0x12b   :  { %2648 = vmatprep.subr.bf16.mxu0 %v8451_v52  ;;  %2688 = vmatpush1.bf16.msra.mxu1 %v8518_v60  ;;  %v8496_v52 = vld [vmem:[#allocation4 + $0xec] ss:$16 sps:$4 sm:$0xff]   ;;  %v8584_v60 = vld [vmem:[#allocation4 + $0x320] ss:$16 sps:$4 sm:$0xff]  }
 0x12c   :  { %2689 = vmatprep.subr.bf16.mxu1 %v8526_v6  ;;  %v8592_v6 = vld [vmem:[#allocation4 + $0x2ec] ss:$16 sps:$4 sm:$0xff]  }
 0x12e   :  { %2649 = vmatpush1.bf16.msra.mxu0 %v8449_v53  ;;  %v8578_v53 = vld [vmem:[#allocation4 + $0x360] ss:$16 sps:$4 sm:$0xff]  }
 0x12f   :  { %2650 = vmatprep.subr.bf16.mxu0 %v8454_v55  ;;  %2690 = vmatpush1.bf16.msra.mxu1 %v8524_v47  ;;  %v347_v47 = vlaneseq }
 0x130   :  { %2691 = vmatprep.subr.bf16.mxu1 %v8532_v2 }
 0x132   :  { %2651 = vmatpush1.bf16.msra.mxu0 %v8452_v56  ;;  %v8581_v56 = vld [vmem:[#allocation4 + $0x340] ss:$16 sps:$4 sm:$0xff]  }
 0x133   :  { %2652 = vmatprep.subr.bf16.mxu0 %v8457_v57  ;;  %2692 = vmatpush1.bf16.msra.mxu1 %v8530_v1 }
 0x134   :  { %2693 = vmatprep.subr.bf16.mxu1 %v8538_v5 }
 0x136   :  { %2653 = vmatpush1.bf16.msra.mxu0 %v8455_v58  ;;  %v8586_v58 = vld [vmem:[#allocation4 + $0x324] ss:$16 sps:$4 sm:$0xff]  }
 0x137   :  { %2654 = vmatprep.subr.bf16.mxu0 %v8460_v59  ;;  %2694 = vmatpush1.bf16.msra.mxu1 %v8536_v35 }
 0x138   :  { %2695 = vmatprep.subr.bf16.mxu1 %v8544_v11 }
 0x13a   :  { %2655 = vmatpush1.bf16.msra.mxu0 %v8458_v62  ;;  %v8589_v62 = vld [vmem:[#allocation4 + $0x304] ss:$16 sps:$4 sm:$0xff]  }
 0x13b   :  { %2656 = vmatprep.subr.bf16.mxu0 %v8463_v15  ;;  %2696 = vmatpush1.bf16.msra.mxu1 %v8542_v10  ;;  %v8587_v15 = vld [vmem:[#allocation4 + $0x300] ss:$16 sps:$4 sm:$0xff]  }
 0x13c   :  { %2697 = vmatprep.subr.bf16.mxu1 %v8550_v17 }
 0x13e   :  { %2657 = vmatpush1.bf16.msra.mxu0 %v8461_v63  ;;  %v9753_v63 = vshrl.u32 %v347_v47, 7 }
 0x13f   :  { %2658 = vmatprep.subr.bf16.mxu0 %v8466_v0  ;;  %2698 = vmatpush1.bf16.msra.mxu1 %v8548_v21  ;;  %v9758_v0 = vld [vmem:[%s9947_s8] sm:$0xf] }
 0x140   :  { %2699 = vmatprep.subr.bf16.mxu1 %v8556_v24  ;;  %v9761_v1 = vsub.s32 0, %v9753_v63  ;;  %v9764_v2 = vsub.s32 1, %v9753_v63 }
 0x142   :  { %2659 = vmatpush1.bf16.msra.mxu0 %v8464_v3  ;;  %v350_v3 = vrot.slane %v9758_v0, %v9761_v1 }
 0x143   :  { %2660 = vmatprep.subr.bf16.mxu0 %v8469_v4  ;;  %2700 = vmatpush1.bf16.msra.mxu1 %v8554_v28  ;;  %v354_v4 = vrot.slane %v9758_v0, %v9764_v2  ;;  %v8499_v28 = vld [vmem:[#allocation4 + $0xcc] ss:$16 sps:$4 sm:$0xff]  }
 0x144   :  { %2701 = vmatprep.subr.bf16.mxu1 %v8562_v33  ;;  %v8508_v33 = vld [vmem:[#allocation4 + $0x6c] ss:$16 sps:$4 sm:$0xff]  }
 0x146   :  { %2661 = vmatpush1.bf16.msra.mxu0 %v8467_v8 }
 0x147   :  { %2662 = vmatprep.subr.bf16.mxu0 %v8472_v9  ;;  %2702 = vmatpush1.bf16.msra.mxu1 %v8560_v32  ;;  %v8503_v32 = vld [vmem:[#allocation4 + $0x88] ss:$16 sps:$4 sm:$0xff]  }
 0x148   :  { %2703 = vmatprep.subr.bf16.mxu1 %v8568_v36  ;;  %v8514_v36 = vld [vmem:[#allocation4 + $0x2c] ss:$16 sps:$4 sm:$0xff]  }
 0x149   :  { %v9745_v18 = vpop.f32.mrf.mxu0 }
 0x14a   :  { %v9747_v19 = vpop.f32.mrf.mxu1  ;;  %2663 = vmatpush2.bf16.msra.mxu0 %v8470_v12  ;;  %v1547_v35 = vadd.f32 %v9745_v18, %v350_v3  ;;  %v8640_v3 = vld [vmem:[#allocation6 + $0xe4] ss:$16 sps:$4 sm:$0xff]  }
 0x14b   :  { %v9749_v22 = vpop.f32.mrf.mxu0  ;;  %2664 = vmatprep.subr.bf16.mxu0 %v8475_v13  ;;  %2704 = vmatpush2.bf16.msra.mxu1 %v8566_v34  ;;  %v8509_v34 = vld [vmem:[#allocation4 + $0x48] ss:$16 sps:$4 sm:$0xff]  }
 0x14c   :  { %v9751_v23 = vpop.f32.mrf.mxu1  ;;  %2705 = vmatprep.subr.bf16.mxu1 %v8571_v37  ;;  %v1549_v5 = vadd.f32 %v9749_v22, %v354_v4  ;;  %v1588_v8 = vadd.f32 %v9747_v19, %v1547_v35  ;;  %v8494_v22 = vld [vmem:[#allocation4 + $0xe8] ss:$16 sps:$4 sm:$0xff]   ;;  %v8643_v4 = vld [vmem:[#allocation6 + $0xc4] ss:$16 sps:$4 sm:$0xff]   ;;  %v9783_v35 = vsub.s32 2, %v9753_v63 }
 0x14d   :  { %v1550_v25 = vpop.f32.mrf.mxu0 }
 0x14e   :  { %v1591_v26 = vpop.f32.mrf.mxu1  ;;  %2665 = vmatpush2.bf16.msra.mxu0 %v8473_v14  ;;  %v1590_v10 = vadd.f32 %v9751_v23, %v1549_v5  ;;  %v8497_v23 = vld [vmem:[#allocation4 + $0xc8] ss:$16 sps:$4 sm:$0xff]   ;;  %v9786_v5 = vsub.s32 3, %v9753_v63 }
 0x14f   :  { %v1551_v29 = vpop.f32.mrf.mxu0  ;;  %2666 = vmatprep.subr.bf16.mxu0 %v8478_v20  ;;  %2706 = vmatpush2.bf16.msra.mxu1 %v8569_v39  ;;  %v8517_v39 = vld [vmem:[#allocation4 + $0xc] ss:$16 sps:$4 sm:$0xff]  }
 0x150   :  { %v1592_v30 = vpop.f32.mrf.mxu1  ;;  %2707 = vmatprep.subr.bf16.mxu1 %v8574_v41  ;;  %v8502_v29 = vld [vmem:[#allocation4 + $0xac] ss:$16 sps:$4 sm:$0xff]  }
 0x151   :  { %v8500_v30 = vld [vmem:[#allocation4 + $0xa8] ss:$16 sps:$4 sm:$0xff]  }
 0x152   :  { %2667 = vmatpush2.bf16.msra.mxu0 %v8476_v27 }
 0x153   :  { %2668 = vmatprep.subr.bf16.mxu0 %v8481_v31  ;;  %2708 = vmatpush2.bf16.msra.mxu1 %v8572_v43  ;;  %v8505_v31 = vld [vmem:[#allocation4 + $0x8c] ss:$16 sps:$4 sm:$0xff]  }
 0x154   :  { %2709 = vmatprep.subr.bf16.mxu1 %v8577_v44  ;;  %v8523_v43 = vld [vmem:[#allocation4 + $0x1ec] ss:$16 sps:$4 sm:$0xff]   ;;  %v8521_v44 = vld [vmem:[#allocation4 + $0x1e8] ss:$16 sps:$4 sm:$0xff]  }
 0x156   :  { %2669 = vmatpush2.bf16.msra.mxu0 %v8479_v51  ;;  %v8506_v51 = vld [vmem:[#allocation4 + $0x68] ss:$16 sps:$4 sm:$0xff]  }
 0x157   :  { %2670 = vmatprep.subr.bf16.mxu0 %v8484_v7  ;;  %2710 = vmatpush2.bf16.msra.mxu1 %v8575_v48  ;;  %v8511_v7 = vld [vmem:[#allocation4 + $0x4c] ss:$16 sps:$4 sm:$0xff]  }
 0x158   :  { %2711 = vmatprep.subr.bf16.mxu1 %v8580_v49  ;;  %v8535_v48 = vld [vmem:[#allocation4 + $0x1ac] ss:$16 sps:$4 sm:$0xff]   ;;  %v8533_v49 = vld [vmem:[#allocation4 + $0x1a8] ss:$16 sps:$4 sm:$0xff]  }
 0x15a   :  { %2671 = vmatpush2.bf16.msra.mxu0 %v8482_v16 }
 0x15b   :  { %2672 = vmatprep.subr.bf16.mxu0 %v8487_v38  ;;  %2712 = vmatpush2.bf16.msra.mxu1 %v8578_v53  ;;  %v8512_v38 = vld [vmem:[#allocation4 + $0x28] ss:$16 sps:$4 sm:$0xff]   ;;  %v8547_v53 = vld [vmem:[#allocation4 + $0x16c] ss:$16 sps:$4 sm:$0xff]  }
 0x15c   :  { %2713 = vmatprep.subr.bf16.mxu1 %v8583_v54  ;;  %v8545_v54 = vld [vmem:[#allocation4 + $0x168] ss:$16 sps:$4 sm:$0xff]  }
 0x15e   :  { %2673 = vmatpush2.bf16.msra.mxu0 %v8485_v40 }
 0x15f   :  { %2674 = vmatprep.subr.bf16.mxu0 %v8490_v42  ;;  %2714 = vmatpush2.bf16.msra.mxu1 %v8581_v56  ;;  %v8515_v42 = vld [vmem:[#allocation4 + $0x8] ss:$16 sps:$4 sm:$0xff]  }
 0x160   :  { %2715 = vmatprep.subr.bf16.mxu1 %v8586_v58  ;;  %v8551_v56 = vld [vmem:[#allocation4 + $0x148] ss:$16 sps:$4 sm:$0xff]  }
 0x162   :  { %2675 = vmatpush2.bf16.msra.mxu0 %v8488_v45  ;;  %v8529_v45 = vld [vmem:[#allocation4 + $0x1cc] ss:$16 sps:$4 sm:$0xff]  }
 0x163   :  { %2676 = vmatprep.subr.bf16.mxu0 %v8493_v46  ;;  %2716 = vmatpush2.bf16.msra.mxu1 %v8584_v60  ;;  %v8527_v46 = vld [vmem:[#allocation4 + $0x1c8] ss:$16 sps:$4 sm:$0xff]   ;;  %v8565_v60 = vld [vmem:[#allocation4 + $0x10c] ss:$16 sps:$4 sm:$0xff]  }
 0x164   :  { %2717 = vmatprep.subr.bf16.mxu1 %v8589_v62 }
 0x166   :  { %2677 = vmatpush2.bf16.msra.mxu0 %v8491_v50  ;;  %v8541_v50 = vld [vmem:[#allocation4 + $0x18c] ss:$16 sps:$4 sm:$0xff]  }
 0x167   :  { %2728 = vmatprep.subr.bf16.mxu0 %v8496_v52  ;;  %2718 = vmatpush2.bf16.msra.mxu1 %v8587_v15  ;;  %v8539_v52 = vld [vmem:[#allocation4 + $0x188] ss:$16 sps:$4 sm:$0xff]  }
 0x168   :  { %2769 = vmatprep.subr.bf16.mxu1 %v8592_v6  ;;  %v8563_v15 = vld [vmem:[#allocation4 + $0x108] ss:$16 sps:$4 sm:$0xff]   ;;  %v8638_v6 = vld [vmem:[#allocation6 + $0xe0] ss:$16 sps:$4 sm:$0xff]  }
 0x16a   :  { %v1669_v55 = vpop.f32.mrf.mxu1 }
 0x16c   :  { %v1671_v57 = vpop.f32.mrf.mxu1 }
 0x16e   :  { %v1673_v59 = vpop.f32.mrf.mxu1 }
 0x16f   :  { %v8557_v59 = vld [vmem:[#allocation4 + $0x128] ss:$16 sps:$4 sm:$0xff]  }
 0x170   :  { %v1674_v61 = vpop.f32.mrf.mxu1 }
 0x189   :  { %v1628_v9 = vpop.f32.mrf.mxu0 }
 0x18a   :  { %v1629_v11 = vadd.f32 %v1628_v9, %v1588_v8  ;;  %v8641_v8 = vld [vmem:[#allocation6 + $0xc0] ss:$16 sps:$4 sm:$0xff]   ;;  %v8646_v9 = vld [vmem:[#allocation6 + $0xa4] ss:$16 sps:$4 sm:$0xff]  }
 0x18b   :  { %v1630_v12 = vpop.f32.mrf.mxu0 }
 0x18c   :  { %v1670_v13 = vadd.f32 %v1669_v55, %v1629_v11  ;;  %v1631_v14 = vadd.f32 %v1630_v12, %v1590_v10  ;;  %v8553_v55 = vld [vmem:[#allocation4 + $0x14c] ss:$16 sps:$4 sm:$0xff]   ;;  %v8644_v10 = vld [vmem:[#allocation6 + $0xa0] ss:$16 sps:$4 sm:$0xff]   ;;  %v358_v11 = vrot.slane %v9758_v0, %v9783_v35  ;;  %v8649_v12 = vld [vmem:[#allocation6 + $0x84] ss:$16 sps:$4 sm:$0xff]  }
 0x18d   :  { %v1632_v17 = vpop.f32.mrf.mxu0 }
 0x18e   :  { %vm1840_vm0 = vcmp.ge.f32.partialorder %v1670_v13, 0.0  ;;  %v1844_v20 = vmul.f32 0.2, %v1670_v13  ;;  %v1672_v21 = vadd.f32 %v1671_v57, %v1631_v14  ;;  %v8559_v57 = vld [vmem:[#allocation4 + $0x12c] ss:$16 sps:$4 sm:$0xff]  }
 0x18f   :  { %v1633_v24 = vpop.f32.mrf.mxu0  ;;  %v8647_v14 = vld [vmem:[#allocation6 + $0x80] ss:$16 sps:$4 sm:$0xff]  }
 0x190   :  { %v1845_v25 = vmul.f32 0.2, %v1672_v21  ;;  %vm1841_vm1 = vcmp.ge.f32.partialorder %v1672_v21, 0.0  ;;  %v1848_v26 = vsel %vm1840_vm0, %v1670_v13, %v1844_v20  ;;  %v362_v13 = vrot.slane %v9758_v0, %v9786_v5  ;;  %v8652_v20 = vld [vmem:[#allocation6 + $0x64] ss:$16 sps:$4 sm:$0xff]  }
 0x191   :  { %v9774_v19 = vpack.c.bf16 %v1848_v26, %v1848_v26 }
 0x192   :  { %v1849_v18 = vsel %vm1841_vm1, %v1672_v21, %v1845_v25 }
 0x193   :  { %v1853_v27 = vpack.c.bf16 %v1849_v18, %v1849_v18  ;;  %v8650_v18 = vld [vmem:[#allocation6 + $0x60] ss:$16 sps:$4 sm:$0xff]  }
 0x195   :  { %2678 = vmatprep.mubr.bf16.mxu0 %v1853_v27 }
 0x196   :  { %2679 = vmatmul.mubr.bf16.vlgmr.msra.gmra.mxu0 %v9774_v19 }
 0x197   :  { %2729 = vmatpush1.bf16.msra.mxu0 %v8494_v22  ;;  %2760 = vmatprep.mubr.bf16.mxu0 %v1853_v27 }
 0x198   :  { %2730 = vmatprep.subr.bf16.mxu0 %v8499_v28  ;;  %v8655_v28 = vld [vmem:[#allocation6 + $0x44] ss:$16 sps:$4 sm:$0xff]  }
 0x19b   :  { %2731 = vmatpush1.bf16.msra.mxu0 %v8497_v23 }
 0x19c   :  { %2732 = vmatprep.subr.bf16.mxu0 %v8502_v29 }
 0x19f   :  { %2733 = vmatpush1.bf16.msra.mxu0 %v8500_v30 }
 0x1a0   :  { %2734 = vmatprep.subr.bf16.mxu0 %v8505_v31 }
 0x1a3   :  { %2735 = vmatpush1.bf16.msra.mxu0 %v8503_v32  ;;  %v8653_v32 = vld [vmem:[#allocation6 + $0x40] ss:$16 sps:$4 sm:$0xff]  }
 0x1a4   :  { %2736 = vmatprep.subr.bf16.mxu0 %v8508_v33 }
 0x1a7   :  { %2737 = vmatpush1.bf16.msra.mxu0 %v8506_v51 }
 0x1a8   :  { %2738 = vmatprep.subr.bf16.mxu0 %v8511_v7 }
 0x1aa   :  { %v9777_v16 = vpop.f32.mrf.mxu1 }
 0x1ab   :  { %2739 = vmatpush1.bf16.msra.mxu0 %v8509_v34  ;;  %v1711_v17 = vadd.f32 %v9777_v16, %v358_v11  ;;  %v8667_v11 = vld [vmem:[#allocation6 + $0x1c4] ss:$16 sps:$4 sm:$0xff]  }
 0x1ac   :  { %v9779_v37 = vpop.f32.mrf.mxu1  ;;  %2740 = vmatprep.subr.bf16.mxu0 %v8514_v36 }
 0x1ad   :  { %v1713_v21 = vadd.f32 %v9779_v37, %v362_v13  ;;  %v8590_v37 = vld [vmem:[#allocation4 + $0x2e8] ss:$16 sps:$4 sm:$0xff]   ;;  %v8665_v13 = vld [vmem:[#allocation6 + $0x1c0] ss:$16 sps:$4 sm:$0xff]  }
 0x1ae   :  { %v1714_v40 = vpop.f32.mrf.mxu1 }
 0x1af   :  { %2741 = vmatpush1.bf16.msra.mxu0 %v8512_v38 }
 0x1b0   :  { %v1715_v41 = vpop.f32.mrf.mxu1  ;;  %2742 = vmatprep.subr.bf16.mxu0 %v8517_v39  ;;  %v8595_v39 = vld [vmem:[#allocation4 + $0x2cc] ss:$16 sps:$4 sm:$0xff]  }
 0x1b3   :  { %2743 = vmatpush1.bf16.msra.mxu0 %v8515_v42  ;;  %v8593_v42 = vld [vmem:[#allocation4 + $0x2c8] ss:$16 sps:$4 sm:$0xff]  }
 0x1b4   :  { %2744 = vmatprep.subr.bf16.mxu0 %v8523_v43  ;;  %v8598_v43 = vld [vmem:[#allocation4 + $0x2ac] ss:$16 sps:$4 sm:$0xff]  }
 0x1b7   :  { %2745 = vmatpush2.bf16.msra.mxu0 %v8521_v44  ;;  %v8596_v44 = vld [vmem:[#allocation4 + $0x2a8] ss:$16 sps:$4 sm:$0xff]  }
 0x1b8   :  { %2746 = vmatprep.subr.bf16.mxu0 %v8529_v45  ;;  %v8601_v45 = vld [vmem:[#allocation4 + $0x28c] ss:$16 sps:$4 sm:$0xff]  }
 0x1bb   :  { %2747 = vmatpush2.bf16.msra.mxu0 %v8527_v46  ;;  %v8599_v46 = vld [vmem:[#allocation4 + $0x288] ss:$16 sps:$4 sm:$0xff]  }
 0x1bc   :  { %2748 = vmatprep.subr.bf16.mxu0 %v8535_v48  ;;  %v8604_v48 = vld [vmem:[#allocation4 + $0x26c] ss:$16 sps:$4 sm:$0xff]  }
 0x1bf   :  { %2749 = vmatpush2.bf16.msra.mxu0 %v8533_v49  ;;  %v8602_v49 = vld [vmem:[#allocation4 + $0x268] ss:$16 sps:$4 sm:$0xff]  }
 0x1c0   :  { %2750 = vmatprep.subr.bf16.mxu0 %v8541_v50  ;;  %v8607_v50 = vld [vmem:[#allocation4 + $0x24c] ss:$16 sps:$4 sm:$0xff]  }
 0x1c3   :  { %2751 = vmatpush2.bf16.msra.mxu0 %v8539_v52  ;;  %v8605_v52 = vld [vmem:[#allocation4 + $0x248] ss:$16 sps:$4 sm:$0xff]  }
 0x1c4   :  { %2752 = vmatprep.subr.bf16.mxu0 %v8547_v53  ;;  %v8610_v53 = vld [vmem:[#allocation4 + $0x22c] ss:$16 sps:$4 sm:$0xff]  }
 0x1c7   :  { %2753 = vmatpush2.bf16.msra.mxu0 %v8545_v54  ;;  %v8608_v54 = vld [vmem:[#allocation4 + $0x228] ss:$16 sps:$4 sm:$0xff]  }
 0x1c8   :  { %2754 = vmatprep.subr.bf16.mxu0 %v8553_v55  ;;  %v8613_v55 = vld [vmem:[#allocation4 + $0x20c] ss:$16 sps:$4 sm:$0xff]  }
 0x1c9   :  { %v1751_v58 = vpop.f32.mrf.mxu0 }
 0x1ca   :  { %v1752_v24 = vadd.f32 %v1751_v58, %v1711_v17  ;;  %v8614_v58 = vld [vmem:[#allocation4 + $0x3e8] ss:$16 sps:$4 sm:$0xff]   ;;  %v8670_v17 = vld [vmem:[#allocation6 + $0x1a4] ss:$16 sps:$4 sm:$0xff]  }
 0x1cb   :  { %2755 = vmatpush2.bf16.msra.mxu0 %v8551_v56  ;;  %v1753_v61 = vpop.f32.mrf.mxu0  ;;  %v8611_v56 = vld [vmem:[#allocation4 + $0x208] ss:$16 sps:$4 sm:$0xff]  }
 0x1cc   :  { %2756 = vmatprep.subr.bf16.mxu0 %v8559_v57  ;;  %v1754_v27 = vadd.f32 %v1753_v61, %v1713_v21  ;;  %v8616_v57 = vld [vmem:[#allocation4 + $0x3ec] ss:$16 sps:$4 sm:$0xff]   ;;  %v8658_v61 = vld [vmem:[#allocation6 + $0x24] ss:$16 sps:$4 sm:$0xff]   ;;  %v8668_v21 = vld [vmem:[#allocation6 + $0x1a0] ss:$16 sps:$4 sm:$0xff]  }
 0x1cd   :  { %v1755_v62 = vpop.f32.mrf.mxu0 }
 0x1ce   :  { %v8622_v62 = vld [vmem:[#allocation4 + $0x3ac] ss:$16 sps:$4 sm:$0xff]  }
 0x1cf   :  { %2757 = vmatpush2.bf16.msra.mxu0 %v8557_v59  ;;  %v1756_v47 = vpop.f32.mrf.mxu0  ;;  %v8619_v59 = vld [vmem:[#allocation4 + $0x3cc] ss:$16 sps:$4 sm:$0xff]  }
 0x1d0   :  { %2758 = vmatprep.subr.bf16.mxu0 %v8565_v60  ;;  %v8617_v60 = vld [vmem:[#allocation4 + $0x3c8] ss:$16 sps:$4 sm:$0xff]  }
 0x1d1   :  { %v8620_v47 = vld [vmem:[#allocation4 + $0x3a8] ss:$16 sps:$4 sm:$0xff]  }
 0x1d3   :  { %2759 = vmatpush2.bf16.msra.mxu0 %v8563_v15  ;;  %v8656_v15 = vld [vmem:[#allocation6 + $0x20] ss:$16 sps:$4 sm:$0xff]  }
 0x1d4   :  { %3616 = vmatprep.subr.bf16.mxu0 %v8640_v3  ;;  %v8625_v3 = vld [vmem:[#allocation4 + $0x38c] ss:$16 sps:$4 sm:$0xff]  }
 0x1d6   :  { %2761 = vmatmul.mubr.bf16.vlgmr.msra.gmra.mxu0 %v9774_v19 }
 0x1d7   :  { %3617 = vmatpush1.bf16.msra.mxu0 %v8638_v6  ;;  %v8661_v6 = vld [vmem:[#allocation6 + $0x4] ss:$16 sps:$4 sm:$0xff]  }
 0x1d8   :  { %3618 = vmatprep.subr.bf16.mxu0 %v8643_v4  ;;  %v8659_v4 = vld [vmem:[#allocation6] ss:$16 sps:$4 sm:$0xff]  }
 0x1db   :  { %3619 = vmatpush1.bf16.msra.mxu0 %v8641_v8  ;;  %v8664_v8 = vld [vmem:[#allocation6 + $0x1e4] ss:$16 sps:$4 sm:$0xff]  }
 0x1dc   :  { %3620 = vmatprep.subr.bf16.mxu0 %v8646_v9  ;;  %v8662_v9 = vld [vmem:[#allocation6 + $0x1e0] ss:$16 sps:$4 sm:$0xff]  }
 0x1df   :  { %3621 = vmatpush1.bf16.msra.mxu0 %v8644_v10  ;;  %v8623_v10 = vld [vmem:[#allocation4 + $0x388] ss:$16 sps:$4 sm:$0xff]  }
 0x1e0   :  { %3622 = vmatprep.subr.bf16.mxu0 %v8649_v12  ;;  %v8628_v12 = vld [vmem:[#allocation4 + $0x36c] ss:$16 sps:$4 sm:$0xff]  }
 0x1e3   :  { %3623 = vmatpush1.bf16.msra.mxu0 %v8647_v14  ;;  %v8626_v14 = vld [vmem:[#allocation4 + $0x368] ss:$16 sps:$4 sm:$0xff]  }
 0x1e4   :  { %3624 = vmatprep.subr.bf16.mxu0 %v8652_v20  ;;  %v8631_v20 = vld [vmem:[#allocation4 + $0x34c] ss:$16 sps:$4 sm:$0xff]  }
 0x1e7   :  { %3625 = vmatpush1.bf16.msra.mxu0 %v8650_v18  ;;  %v8671_v18 = vld [vmem:[#allocation6 + $0x180] ss:$16 sps:$4 sm:$0xff]  }
 0x1e8   :  { %3626 = vmatprep.subr.bf16.mxu0 %v8655_v28  ;;  %v8637_v28 = vld [vmem:[#allocation4 + $0x30c] ss:$16 sps:$4 sm:$0xff]  }
 0x1e9   :  { %v1833_v26 = vpop.f32.mrf.mxu0 }
 0x1ea   :  { %v1792_v25 = vpop.f32.mrf.mxu1 }
 0x1eb   :  { %v1793_v22 = vadd.f32 %v1792_v25, %v1752_v24  ;;  %v1835_v23 = vpop.f32.mrf.mxu0  ;;  %3627 = vmatpush1.bf16.msra.mxu0 %v8653_v32  ;;  %v8629_v24 = vld [vmem:[#allocation4 + $0x348] ss:$16 sps:$4 sm:$0xff]   ;;  %v8673_v25 = vld [vmem:[#allocation6 + $0x184] ss:$16 sps:$4 sm:$0xff]  }
 0x1ec   :  { %v1794_v19 = vpop.f32.mrf.mxu1  ;;  %3628 = vmatprep.subr.bf16.mxu0 %v8658_v61  ;;  %v8685_v32 = vld [vmem:[#allocation6 + $0x104] ss:$16 sps:$4 sm:$0xff]   ;;  %v8752_v61 = vld [vmem:[#allocation6 + $0x380] ss:$16 sps:$4 sm:$0xff]  }
 0x1ed   :  { %v1834_v0 = vadd.f32 %v1833_v26, %v1793_v22  ;;  %v1795_v29 = vadd.f32 %v1794_v19, %v1754_v27  ;;  %v1837_v31 = vpop.f32.mrf.mxu0  ;;  %v8634_v26 = vld [vmem:[#allocation4 + $0x32c] ss:$16 sps:$4 sm:$0xff]   ;;  %v8632_v27 = vld [vmem:[#allocation4 + $0x328] ss:$16 sps:$4 sm:$0xff]   ;;  %v8676_v22 = vld [vmem:[#allocation6 + $0x164] ss:$16 sps:$4 sm:$0xff]  }
 0x1ee   :  { %v1796_v30 = vpop.f32.mrf.mxu1  ;;  %v8674_v19 = vld [vmem:[#allocation6 + $0x160] ss:$16 sps:$4 sm:$0xff]  }
 0x1ef   :  { %vm1842_vm2 = vcmp.ge.f32.partialorder %v1834_v0, 0.0  ;;  %v1846_v33 = vmul.f32 0.2, %v1834_v0  ;;  %v1836_v51 = vadd.f32 %v1835_v23, %v1795_v29  ;;  %v1838_v34 = vpop.f32.mrf.mxu0  ;;  %3629 = vmatpush1.bf16.msra.mxu0 %v8656_v15  ;;  %v8635_v23 = vld [vmem:[#allocation4 + $0x308] ss:$16 sps:$4 sm:$0xff]  }
 0x1f0   :  { %v1797_v7 = vpop.f32.mrf.mxu1  ;;  %3630 = vmatprep.subr.bf16.mxu0 %v8661_v6  ;;  %v8677_v29 = vld [vmem:[#allocation6 + $0x140] ss:$16 sps:$4 sm:$0xff]   ;;  %v8682_v30 = vld [vmem:[#allocation6 + $0x124] ss:$16 sps:$4 sm:$0xff]   ;;  %v8691_v34 = vld [vmem:[#allocation6 + $0xec] ss:$16 sps:$4 sm:$0xff]  }
 0x1f1   :  { %vm1843_vm3 = vcmp.ge.f32.partialorder %v1836_v51, 0.0  ;;  %v1847_v36 = vmul.f32 0.2, %v1836_v51  ;;  %v1850_v16 = vsel %vm1842_vm2, %v1834_v0, %v1846_v33  ;;  %v8679_v0 = vld [vmem:[#allocation6 + $0x144] ss:$16 sps:$4 sm:$0xff]  }
 0x1f2   :  { %v9794_v41 = vpack.c.bf16 %v1850_v16, %v1850_v16  ;;  %v8680_v31 = vld [vmem:[#allocation6 + $0x120] ss:$16 sps:$4 sm:$0xff]   ;;  %v8688_v7 = vld [vmem:[#allocation6 + $0x2e4] ss:$16 sps:$4 sm:$0xff]  }
 0x1f3   :  { %v1851_v38 = vsel %vm1843_vm3, %v1836_v51, %v1847_v36  ;;  %3631 = vmatpush1.bf16.msra.mxu0 %v8659_v4  ;;  %v8683_v33 = vld [vmem:[#allocation6 + $0x100] ss:$16 sps:$4 sm:$0xff]   ;;  %v8694_v16 = vld [vmem:[#allocation6 + $0x2c4] ss:$16 sps:$4 sm:$0xff]  }
 0x1f4   :  { %v1855_v40 = vpack.c.bf16 %v1851_v38, %v1851_v38  ;;  %3632 = vmatprep.subr.bf16.mxu0 %v8664_v8  ;;  %v8686_v51 = vld [vmem:[#allocation6 + $0x2e0] ss:$16 sps:$4 sm:$0xff]   ;;  %v8700_v38 = vld [vmem:[#allocation6 + $0x2a4] ss:$16 sps:$4 sm:$0xff]  }
 0x1f5   :  { %v8692_v36 = vld [vmem:[#allocation6 + $0x2c0] ss:$16 sps:$4 sm:$0xff]   ;;  %v8772_v4 = vld [vmem:[#allocation6 + $0x324] ss:$16 sps:$4 sm:$0xff]  }
 0x1f6   :  { %2719 = vmatprep.mubr.bf16.mxu1 %v1855_v40  ;;  %v8758_v15 = vld [vmem:[#allocation6 + $0x360] ss:$16 sps:$4 sm:$0xff]  }
 0x1f7   :  { %2720 = vmatmul.mubr.bf16.vlgmr.msra.gmra.mxu1 %v9794_v41  ;;  %3633 = vmatpush2.bf16.msra.mxu0 %v8662_v9  ;;  %v8764_v6 = vld [vmem:[#allocation6 + $0x340] ss:$16 sps:$4 sm:$0xff]   ;;  %v8778_v9 = vld [vmem:[#allocation6 + $0x304] ss:$16 sps:$4 sm:$0xff]  }
 0x1f8   :  { %2770 = vmatpush1.bf16.msra.mxu1 %v8590_v37  ;;  %2801 = vmatprep.mubr.bf16.mxu1 %v1855_v40  ;;  %v8698_v37 = vld [vmem:[#allocation6 + $0x2a0] ss:$16 sps:$4 sm:$0xff]   ;;  %v8706_v40 = vld [vmem:[#allocation6 + $0x284] ss:$16 sps:$4 sm:$0xff]  }
 0x1f9   :  { %2771 = vmatprep.subr.bf16.mxu1 %v8595_v39  ;;  %3634 = vmatprep.subr.bf16.mxu0 %v8667_v11  ;;  %v8704_v39 = vld [vmem:[#allocation6 + $0x280] ss:$16 sps:$4 sm:$0xff]   ;;  %v8784_v11 = vld [vmem:[#allocation6 + $0x2ec] ss:$16 sps:$4 sm:$0xff]  }
 0x1fa   :  { %v8770_v8 = vld [vmem:[#allocation6 + $0x320] ss:$16 sps:$4 sm:$0xff]  }
 0x1fb   :  { %3635 = vmatpush2.bf16.msra.mxu0 %v8665_v13 }
 0x1fc   :  { %2772 = vmatpush1.bf16.msra.mxu1 %v8593_v42  ;;  %3636 = vmatprep.subr.bf16.mxu0 %v8670_v17  ;;  %v8712_v42 = vld [vmem:[#allocation6 + $0x264] ss:$16 sps:$4 sm:$0xff]  }
 0x1fd   :  { %2773 = vmatprep.subr.bf16.mxu1 %v8598_v43  ;;  %v8716_v43 = vld [vmem:[#allocation6 + $0x240] ss:$16 sps:$4 sm:$0xff]  }
 0x1ff   :  { %3637 = vmatpush2.bf16.msra.mxu0 %v8668_v21 }
 0x200   :  { %2774 = vmatpush1.bf16.msra.mxu1 %v8596_v44  ;;  %3638 = vmatprep.subr.bf16.mxu0 %v8673_v25  ;;  %v8718_v44 = vld [vmem:[#allocation6 + $0x244] ss:$16 sps:$4 sm:$0xff]  }
 0x201   :  { %2775 = vmatprep.subr.bf16.mxu1 %v8601_v45 }
 0x203   :  { %3639 = vmatpush2.bf16.msra.mxu0 %v8671_v18 }
 0x204   :  { %2776 = vmatpush1.bf16.msra.mxu1 %v8599_v46  ;;  %3640 = vmatprep.subr.bf16.mxu0 %v8676_v22  ;;  %v8722_v46 = vld [vmem:[#allocation6 + $0x220] ss:$16 sps:$4 sm:$0xff]  }
 0x205   :  { %2777 = vmatprep.subr.bf16.mxu1 %v8604_v48  ;;  %v8724_v48 = vld [vmem:[#allocation6 + $0x224] ss:$16 sps:$4 sm:$0xff]  }
 0x207   :  { %3641 = vmatpush2.bf16.msra.mxu0 %v8674_v19 }
 0x208   :  { %2778 = vmatpush1.bf16.msra.mxu1 %v8602_v49  ;;  %3642 = vmatprep.subr.bf16.mxu0 %v8679_v0 }
 0x209   :  { %2779 = vmatprep.subr.bf16.mxu1 %v8607_v50 }
 0x20b   :  { %3643 = vmatpush2.bf16.msra.mxu0 %v8677_v29 }
 0x20c   :  { %2780 = vmatpush1.bf16.msra.mxu1 %v8605_v52  ;;  %3644 = vmatprep.subr.bf16.mxu0 %v8682_v30  ;;  %v8728_v52 = vld [vmem:[#allocation6 + $0x200] ss:$16 sps:$4 sm:$0xff]  }
 0x20d   :  { %2781 = vmatprep.subr.bf16.mxu1 %v8610_v53  ;;  %v8730_v53 = vld [vmem:[#allocation6 + $0x204] ss:$16 sps:$4 sm:$0xff]  }
 0x20f   :  { %3645 = vmatpush2.bf16.msra.mxu0 %v8680_v31 }
 0x210   :  { %2782 = vmatpush1.bf16.msra.mxu1 %v8608_v54  ;;  %3646 = vmatprep.subr.bf16.mxu0 %v8685_v32 }
 0x211   :  { %2783 = vmatprep.subr.bf16.mxu1 %v8613_v55  ;;  %v8734_v55 = vld [vmem:[#allocation6 + $0x3e0] ss:$16 sps:$4 sm:$0xff]  }
 0x213   :  { %3647 = vmatpush2.bf16.msra.mxu0 %v8683_v33  ;;  %v8689_v33 = vld [vmem:[#allocation6 + $0xe8] ss:$16 sps:$4 sm:$0xff]  }
 0x214   :  { %2784 = vmatpush1.bf16.msra.mxu1 %v8611_v56  ;;  %3698 = vmatprep.subr.bf16.mxu0 %v8691_v34  ;;  %v8736_v56 = vld [vmem:[#allocation6 + $0x3e4] ss:$16 sps:$4 sm:$0xff]   ;;  %v8695_v34 = vld [vmem:[#allocation6 + $0xc8] ss:$16 sps:$4 sm:$0xff]  }
 0x215   :  { %2785 = vmatprep.subr.bf16.mxu1 %v8616_v57  ;;  %v8740_v57 = vld [vmem:[#allocation6 + $0x3c0] ss:$16 sps:$4 sm:$0xff]  }
 0x218   :  { %2786 = vmatpush2.bf16.msra.mxu1 %v8614_v58  ;;  %v8742_v58 = vld [vmem:[#allocation6 + $0x3c4] ss:$16 sps:$4 sm:$0xff]  }
 0x219   :  { %2787 = vmatprep.subr.bf16.mxu1 %v8619_v59  ;;  %v8746_v59 = vld [vmem:[#allocation6 + $0x3a0] ss:$16 sps:$4 sm:$0xff]  }
 0x21c   :  { %2788 = vmatpush2.bf16.msra.mxu1 %v8617_v60  ;;  %v8748_v60 = vld [vmem:[#allocation6 + $0x3a4] ss:$16 sps:$4 sm:$0xff]  }
 0x21d   :  { %2789 = vmatprep.subr.bf16.mxu1 %v8622_v62  ;;  %v8754_v62 = vld [vmem:[#allocation6 + $0x384] ss:$16 sps:$4 sm:$0xff]  }
 0x220   :  { %2790 = vmatpush2.bf16.msra.mxu1 %v8620_v47  ;;  %v8760_v47 = vld [vmem:[#allocation6 + $0x364] ss:$16 sps:$4 sm:$0xff]  }
 0x221   :  { %2791 = vmatprep.subr.bf16.mxu1 %v8625_v3  ;;  %v8766_v3 = vld [vmem:[#allocation6 + $0x344] ss:$16 sps:$4 sm:$0xff]  }
 0x224   :  { %2792 = vmatpush2.bf16.msra.mxu1 %v8623_v10  ;;  %v8776_v10 = vld [vmem:[#allocation6 + $0x300] ss:$16 sps:$4 sm:$0xff]  }
 0x225   :  { %2793 = vmatprep.subr.bf16.mxu1 %v8628_v12 }
 0x228   :  { %2794 = vmatpush2.bf16.msra.mxu1 %v8626_v14 }
 0x229   :  { %2795 = vmatprep.subr.bf16.mxu1 %v8631_v20  ;;  %v9805_v20 = vld [vmem:[%s9947_s8 + $0x4] sm:$0xf] }
 0x22a   :  { %v1989_v21 = vrot.slane %v9805_v20, %v9761_v1 }
 0x22c   :  { %2796 = vmatpush2.bf16.msra.mxu1 %v8629_v24  ;;  %v1993_v24 = vrot.slane %v9805_v20, %v9764_v2 }
 0x22d   :  { %2797 = vmatprep.subr.bf16.mxu1 %v8634_v26 }
 0x230   :  { %2798 = vmatpush2.bf16.msra.mxu1 %v8632_v27 }
 0x231   :  { %2799 = vmatprep.subr.bf16.mxu1 %v8637_v28 }
 0x234   :  { %2800 = vmatpush2.bf16.msra.mxu1 %v8635_v23 }
 0x235   :  { %3657 = vmatprep.subr.bf16.mxu1 %v8688_v7  ;;  %v8697_v7 = vld [vmem:[#allocation6 + $0xcc] ss:$16 sps:$4 sm:$0xff]  }
 0x237   :  { %2802 = vmatmul.mubr.bf16.vlgmr.msra.gmra.mxu1 %v9794_v41  ;;  %v8710_v41 = vld [vmem:[#allocation6 + $0x260] ss:$16 sps:$4 sm:$0xff]  }
 0x238   :  { %3658 = vmatpush1.bf16.msra.mxu1 %v8686_v51 }
 0x239   :  { %3659 = vmatprep.subr.bf16.mxu1 %v8694_v16  ;;  %v8701_v16 = vld [vmem:[#allocation6 + $0xa8] ss:$16 sps:$4 sm:$0xff]  }
 0x23c   :  { %3660 = vmatpush1.bf16.msra.mxu1 %v8692_v36  ;;  %v8703_v36 = vld [vmem:[#allocation6 + $0xac] ss:$16 sps:$4 sm:$0xff]  }
 0x23d   :  { %3661 = vmatprep.subr.bf16.mxu1 %v8700_v38  ;;  %v8707_v38 = vld [vmem:[#allocation6 + $0x88] ss:$16 sps:$4 sm:$0xff]  }
 0x240   :  { %3662 = vmatpush1.bf16.msra.mxu1 %v8698_v37  ;;  %v8709_v37 = vld [vmem:[#allocation6 + $0x8c] ss:$16 sps:$4 sm:$0xff]  }
 0x241   :  { %3663 = vmatprep.subr.bf16.mxu1 %v8706_v40  ;;  %v8713_v40 = vld [vmem:[#allocation6 + $0x68] ss:$16 sps:$4 sm:$0xff]  }
 0x244   :  { %3664 = vmatpush1.bf16.msra.mxu1 %v8704_v39  ;;  %v8715_v39 = vld [vmem:[#allocation6 + $0x6c] ss:$16 sps:$4 sm:$0xff]  }
 0x245   :  { %3665 = vmatprep.subr.bf16.mxu1 %v8712_v42  ;;  %v8719_v42 = vld [vmem:[#allocation6 + $0x48] ss:$16 sps:$4 sm:$0xff]  }
 0x248   :  { %3666 = vmatpush1.bf16.msra.mxu1 %v8710_v41  ;;  %v8721_v41 = vld [vmem:[#allocation6 + $0x4c] ss:$16 sps:$4 sm:$0xff]  }
 0x249   :  { %3667 = vmatprep.subr.bf16.mxu1 %v8718_v44  ;;  %v8725_v44 = vld [vmem:[#allocation6 + $0x28] ss:$16 sps:$4 sm:$0xff]  }
 0x24c   :  { %3668 = vmatpush1.bf16.msra.mxu1 %v8716_v43  ;;  %v8727_v43 = vld [vmem:[#allocation6 + $0x2c] ss:$16 sps:$4 sm:$0xff]  }
 0x24d   :  { %3669 = vmatprep.subr.bf16.mxu1 %v8724_v48  ;;  %v8739_v48 = vld [vmem:[#allocation6 + $0x1ec] ss:$16 sps:$4 sm:$0xff]  }
 0x250   :  { %3670 = vmatpush1.bf16.msra.mxu1 %v8722_v46  ;;  %v8731_v46 = vld [vmem:[#allocation6 + $0x8] ss:$16 sps:$4 sm:$0xff]  }
 0x251   :  { %3671 = vmatprep.subr.bf16.mxu1 %v8730_v53  ;;  %v8751_v53 = vld [vmem:[#allocation6 + $0x1ac] ss:$16 sps:$4 sm:$0xff]  }
 0x254   :  { %3672 = vmatpush1.bf16.msra.mxu1 %v8728_v52  ;;  %v8743_v52 = vld [vmem:[#allocation6 + $0x1c8] ss:$16 sps:$4 sm:$0xff]  }
 0x255   :  { %3673 = vmatprep.subr.bf16.mxu1 %v8736_v56  ;;  %v8755_v56 = vld [vmem:[#allocation6 + $0x188] ss:$16 sps:$4 sm:$0xff]  }
 0x256   :  { %v2680_v45 = vpop.f32.mrf.mxu0 }
 0x257   :  { %v2681_v25 = vadd.f32 %v2680_v45, %v1989_v21  ;;  %v8733_v45 = vld [vmem:[#allocation6 + $0xc] ss:$16 sps:$4 sm:$0xff]   ;;  %v8779_v21 = vld [vmem:[#allocation6 + $0x108] ss:$16 sps:$4 sm:$0xff]  }
 0x258   :  { %v2682_v49 = vpop.f32.mrf.mxu0  ;;  %3674 = vmatpush2.bf16.msra.mxu1 %v8734_v55  ;;  %v8757_v55 = vld [vmem:[#allocation6 + $0x18c] ss:$16 sps:$4 sm:$0xff]  }
 0x259   :  { %3675 = vmatprep.subr.bf16.mxu1 %v8742_v58  ;;  %v2683_v18 = vadd.f32 %v2682_v49, %v1993_v24  ;;  %v8737_v49 = vld [vmem:[#allocation6 + $0x1e8] ss:$16 sps:$4 sm:$0xff]  }
 0x25a   :  { %v2684_v50 = vpop.f32.mrf.mxu0  ;;  %v8761_v58 = vld [vmem:[#allocation6 + $0x168] ss:$16 sps:$4 sm:$0xff]  }
 0x25b   :  { %v8745_v50 = vld [vmem:[#allocation6 + $0x1cc] ss:$16 sps:$4 sm:$0xff]  }
 0x25c   :  { %v2685_v54 = vpop.f32.mrf.mxu0  ;;  %3676 = vmatpush2.bf16.msra.mxu1 %v8740_v57  ;;  %v8763_v57 = vld [vmem:[#allocation6 + $0x16c] ss:$16 sps:$4 sm:$0xff]  }
 0x25d   :  { %3677 = vmatprep.subr.bf16.mxu1 %v8748_v60  ;;  %v8749_v54 = vld [vmem:[#allocation6 + $0x1a8] ss:$16 sps:$4 sm:$0xff]   ;;  %v1997_v60 = vrot.slane %v9805_v20, %v9783_v35 }
 0x260   :  { %3678 = vmatpush2.bf16.msra.mxu1 %v8746_v59  ;;  %v8769_v59 = vld [vmem:[#allocation6 + $0x14c] ss:$16 sps:$4 sm:$0xff]  }
 0x261   :  { %3679 = vmatprep.subr.bf16.mxu1 %v8754_v62  ;;  %v2001_v62 = vrot.slane %v9805_v20, %v9786_v5 }
 0x264   :  { %3680 = vmatpush2.bf16.msra.mxu1 %v8752_v61  ;;  %v8767_v61 = vld [vmem:[#allocation6 + $0x148] ss:$16 sps:$4 sm:$0xff]  }
 0x265   :  { %3681 = vmatprep.subr.bf16.mxu1 %v8760_v47 }
 0x268   :  { %3682 = vmatpush2.bf16.msra.mxu1 %v8758_v15  ;;  %v8775_v15 = vld [vmem:[#allocation6 + $0x12c] ss:$16 sps:$4 sm:$0xff]  }
 0x269   :  { %3683 = vmatprep.subr.bf16.mxu1 %v8766_v3  ;;  %v8773_v3 = vld [vmem:[#allocation6 + $0x128] ss:$16 sps:$4 sm:$0xff]  }
 0x26c   :  { %3684 = vmatpush2.bf16.msra.mxu1 %v8764_v6 }
 0x26d   :  { %3685 = vmatprep.subr.bf16.mxu1 %v8772_v4 }
 0x270   :  { %3686 = vmatpush2.bf16.msra.mxu1 %v8770_v8 }
 0x271   :  { %3687 = vmatprep.subr.bf16.mxu1 %v8778_v9  ;;  %v8781_v9 = vld [vmem:[#allocation6 + $0x10c] ss:$16 sps:$4 sm:$0xff]  }
 0x274   :  { %3688 = vmatpush2.bf16.msra.mxu1 %v8776_v10 }
 0x275   :  { %3739 = vmatprep.subr.bf16.mxu1 %v8784_v11 }
 0x296   :  { %v9798_v12 = vpop.f32.mrf.mxu0 }
 0x297   :  { %v2763_v47 = vadd.f32 %v9798_v12, %v1997_v60  ;;  %v8839_v60 = vld [vmem:[#allocation7 + $0xc8] ss:$16 sps:$4 sm:$0xff]  }
 0x298   :  { %v9800_v13 = vpop.f32.mrf.mxu0 }
 0x299   :  { %v2765_v4 = vadd.f32 %v9800_v13, %v2001_v62  ;;  %v8847_v62 = vld [vmem:[#allocation7 + $0xac] ss:$16 sps:$4 sm:$0xff]  }
 0x29a   :  { %v2766_v14 = vpop.f32.mrf.mxu0 }
 0x29c   :  { %v2767_v17 = vpop.f32.mrf.mxu0 }
 0x2b7   :  { %v2721_v26 = vpop.f32.mrf.mxu1 }
 0x2b8   :  { %v2722_v27 = vadd.f32 %v2721_v26, %v2681_v25 }
 0x2b9   :  { %v2723_v22 = vpop.f32.mrf.mxu1 }
 0x2ba   :  { %vm2810_vm4 = vcmp.ge.f32.partialorder %v2722_v27, 0.0  ;;  %v2814_v28 = vmul.f32 0.2, %v2722_v27  ;;  %v2724_v19 = vadd.f32 %v2723_v22, %v2683_v18  ;;  %v8782_v18 = vld [vmem:[#allocation6 + $0x2e8] ss:$16 sps:$4 sm:$0xff]  }
 0x2bb   :  { %v2725_v23 = vpop.f32.mrf.mxu1  ;;  %v8785_v22 = vld [vmem:[#allocation6 + $0x2c8] ss:$16 sps:$4 sm:$0xff]  }
 0x2bc   :  { %vm2811_vm5 = vcmp.ge.f32.partialorder %v2724_v19, 0.0  ;;  %v2815_v0 = vmul.f32 0.2, %v2724_v19  ;;  %v2818_v29 = vsel %vm2810_vm4, %v2722_v27, %v2814_v28  ;;  %v8787_v27 = vld [vmem:[#allocation6 + $0x2cc] ss:$16 sps:$4 sm:$0xff]  }
 0x2bd   :  { %v2726_v30 = vpop.f32.mrf.mxu1  ;;  %v9811_v51 = vpack.c.bf16 %v2818_v29, %v2818_v29  ;;  %v8790_v28 = vld [vmem:[#allocation6 + $0x2ac] ss:$16 sps:$4 sm:$0xff]  }
 0x2be   :  { %v2819_v31 = vsel %vm2811_vm5, %v2724_v19, %v2815_v0  ;;  %v8788_v19 = vld [vmem:[#allocation6 + $0x2a8] ss:$16 sps:$4 sm:$0xff]   ;;  %v8793_v23 = vld [vmem:[#allocation6 + $0x28c] ss:$16 sps:$4 sm:$0xff]  }
 0x2bf   :  { %v2823_v32 = vpack.c.bf16 %v2819_v31, %v2819_v31  ;;  %v8791_v0 = vld [vmem:[#allocation6 + $0x288] ss:$16 sps:$4 sm:$0xff]   ;;  %v8796_v29 = vld [vmem:[#allocation6 + $0x26c] ss:$16 sps:$4 sm:$0xff]  }
 0x2c0   :  { %v8794_v30 = vld [vmem:[#allocation6 + $0x268] ss:$16 sps:$4 sm:$0xff]   ;;  %v8799_v31 = vld [vmem:[#allocation6 + $0x24c] ss:$16 sps:$4 sm:$0xff]  }
 0x2c1   :  { %3648 = vmatprep.mubr.bf16.mxu0 %v2823_v32 }
 0x2c2   :  { %3649 = vmatmul.mubr.bf16.vlgmr.msra.gmra.mxu0 %v9811_v51 }
 0x2c3   :  { %3699 = vmatpush1.bf16.msra.mxu0 %v8689_v33  ;;  %3730 = vmatprep.mubr.bf16.mxu0 %v2823_v32  ;;  %v8797_v32 = vld [vmem:[#allocation6 + $0x248] ss:$16 sps:$4 sm:$0xff]   ;;  %v8802_v33 = vld [vmem:[#allocation6 + $0x22c] ss:$16 sps:$4 sm:$0xff]  }
 0x2c4   :  { %3700 = vmatprep.subr.bf16.mxu0 %v8697_v7  ;;  %v8805_v7 = vld [vmem:[#allocation6 + $0x20c] ss:$16 sps:$4 sm:$0xff]  }
 0x2c7   :  { %3701 = vmatpush1.bf16.msra.mxu0 %v8695_v34  ;;  %v8803_v34 = vld [vmem:[#allocation6 + $0x208] ss:$16 sps:$4 sm:$0xff]  }
 0x2c8   :  { %3702 = vmatprep.subr.bf16.mxu0 %v8703_v36  ;;  %v8808_v36 = vld [vmem:[#allocation6 + $0x3ec] ss:$16 sps:$4 sm:$0xff]  }
 0x2cb   :  { %3703 = vmatpush1.bf16.msra.mxu0 %v8701_v16  ;;  %v8806_v16 = vld [vmem:[#allocation6 + $0x3e8] ss:$16 sps:$4 sm:$0xff]  }
 0x2cc   :  { %3704 = vmatprep.subr.bf16.mxu0 %v8709_v37  ;;  %v8811_v37 = vld [vmem:[#allocation6 + $0x3cc] ss:$16 sps:$4 sm:$0xff]  }
 0x2cf   :  { %3705 = vmatpush1.bf16.msra.mxu0 %v8707_v38  ;;  %v8809_v38 = vld [vmem:[#allocation6 + $0x3c8] ss:$16 sps:$4 sm:$0xff]  }
 0x2d0   :  { %3706 = vmatprep.subr.bf16.mxu0 %v8715_v39  ;;  %v8814_v39 = vld [vmem:[#allocation6 + $0x3ac] ss:$16 sps:$4 sm:$0xff]  }
 0x2d3   :  { %3707 = vmatpush1.bf16.msra.mxu0 %v8713_v40  ;;  %v8812_v40 = vld [vmem:[#allocation6 + $0x3a8] ss:$16 sps:$4 sm:$0xff]  }
 0x2d4   :  { %3708 = vmatprep.subr.bf16.mxu0 %v8721_v41  ;;  %v8817_v41 = vld [vmem:[#allocation6 + $0x38c] ss:$16 sps:$4 sm:$0xff]  }
 0x2d7   :  { %3709 = vmatpush1.bf16.msra.mxu0 %v8719_v42  ;;  %v8815_v42 = vld [vmem:[#allocation6 + $0x388] ss:$16 sps:$4 sm:$0xff]  }
 0x2d8   :  { %3710 = vmatprep.subr.bf16.mxu0 %v8727_v43  ;;  %v8820_v43 = vld [vmem:[#allocation6 + $0x36c] ss:$16 sps:$4 sm:$0xff]  }
 0x2db   :  { %3711 = vmatpush1.bf16.msra.mxu0 %v8725_v44  ;;  %v8818_v44 = vld [vmem:[#allocation6 + $0x368] ss:$16 sps:$4 sm:$0xff]  }
 0x2dc   :  { %3712 = vmatprep.subr.bf16.mxu0 %v8733_v45  ;;  %v8823_v45 = vld [vmem:[#allocation6 + $0x34c] ss:$16 sps:$4 sm:$0xff]  }
 0x2df   :  { %3713 = vmatpush1.bf16.msra.mxu0 %v8731_v46  ;;  %v8821_v46 = vld [vmem:[#allocation6 + $0x348] ss:$16 sps:$4 sm:$0xff]  }
 0x2e0   :  { %3714 = vmatprep.subr.bf16.mxu0 %v8739_v48  ;;  %v8826_v48 = vld [vmem:[#allocation6 + $0x32c] ss:$16 sps:$4 sm:$0xff]  }
 0x2e3   :  { %3715 = vmatpush2.bf16.msra.mxu0 %v8737_v49  ;;  %v8824_v49 = vld [vmem:[#allocation6 + $0x328] ss:$16 sps:$4 sm:$0xff]  }
 0x2e4   :  { %3716 = vmatprep.subr.bf16.mxu0 %v8745_v50  ;;  %v8829_v50 = vld [vmem:[#allocation6 + $0x30c] ss:$16 sps:$4 sm:$0xff]  }
 0x2e7   :  { %3717 = vmatpush2.bf16.msra.mxu0 %v8743_v52  ;;  %v8827_v52 = vld [vmem:[#allocation6 + $0x308] ss:$16 sps:$4 sm:$0xff]  }
 0x2e8   :  { %3718 = vmatprep.subr.bf16.mxu0 %v8751_v53  ;;  %v8830_v53 = vld [vmem:[#allocation7 + $0xe0] ss:$16 sps:$4 sm:$0xff]  }
 0x2eb   :  { %3719 = vmatpush2.bf16.msra.mxu0 %v8749_v54  ;;  %v8832_v54 = vld [vmem:[#allocation7 + $0xe4] ss:$16 sps:$4 sm:$0xff]  }
 0x2ec   :  { %3720 = vmatprep.subr.bf16.mxu0 %v8757_v55  ;;  %v8833_v55 = vld [vmem:[#allocation7 + $0xe8] ss:$16 sps:$4 sm:$0xff]  }
 0x2ef   :  { %3721 = vmatpush2.bf16.msra.mxu0 %v8755_v56  ;;  %v8835_v56 = vld [vmem:[#allocation7 + $0xec] ss:$16 sps:$4 sm:$0xff]  }
 0x2f0   :  { %3722 = vmatprep.subr.bf16.mxu0 %v8763_v57  ;;  %v8838_v57 = vld [vmem:[#allocation7 + $0xc4] ss:$16 sps:$4 sm:$0xff]  }
 0x2f3   :  { %3723 = vmatpush2.bf16.msra.mxu0 %v8761_v58  ;;  %v8841_v58 = vld [vmem:[#allocation7 + $0xcc] ss:$16 sps:$4 sm:$0xff]  }
 0x2f4   :  { %3724 = vmatprep.subr.bf16.mxu0 %v8769_v59  ;;  %v8836_v59 = vld [vmem:[#allocation7 + $0xc0] ss:$16 sps:$4 sm:$0xff]  }
 0x2f7   :  { %v2803_v6 = vpop.f32.mrf.mxu1  ;;  %3725 = vmatpush2.bf16.msra.mxu0 %v8767_v61  ;;  %v8844_v61 = vld [vmem:[#allocation7 + $0xa4] ss:$16 sps:$4 sm:$0xff]  }
 0x2f8   :  { %v2804_v8 = vadd.f32 %v2803_v6, %v2763_v47  ;;  %3726 = vmatprep.subr.bf16.mxu0 %v8775_v15  ;;  %v8842_v15 = vld [vmem:[#allocation7 + $0xa0] ss:$16 sps:$4 sm:$0xff]   ;;  %v8845_v47 = vld [vmem:[#allocation7 + $0xa8] ss:$16 sps:$4 sm:$0xff]   ;;  %v8850_v6 = vld [vmem:[#allocation7 + $0x84] ss:$16 sps:$4 sm:$0xff]  }
 0x2f9   :  { %v2805_v10 = vpop.f32.mrf.mxu1 }
 0x2fa   :  { %vm2812_vm6 = vcmp.ge.f32.partialorder %v2804_v8, 0.0  ;;  %v2816_v11 = vmul.f32 0.2, %v2804_v8  ;;  %v2806_v14 = vadd.f32 %v2805_v10, %v2765_v4  ;;  %v8848_v4 = vld [vmem:[#allocation7 + $0x80] ss:$16 sps:$4 sm:$0xff]  }
 0x2fb   :  { %v2807_v17 = vpop.f32.mrf.mxu1  ;;  %3727 = vmatpush2.bf16.msra.mxu0 %v8773_v3  ;;  %v8853_v3 = vld [vmem:[#allocation7 + $0x8c] ss:$16 sps:$4 sm:$0xff]  }
 0x2fc   :  { %vm2813_vm7 = vcmp.ge.f32.partialorder %v2806_v14, 0.0  ;;  %v2817_v20 = vmul.f32 0.2, %v2806_v14  ;;  %3728 = vmatprep.subr.bf16.mxu0 %v8781_v9  ;;  %v2820_v24 = vsel %vm2812_vm6, %v2804_v8, %v2816_v11  ;;  %v8851_v8 = vld [vmem:[#allocation7 + $0x88] ss:$16 sps:$4 sm:$0xff]  }
 0x2fd   :  { %v2808_v12 = vpop.f32.mrf.mxu1  ;;  %v9820_v13 = vpack.c.bf16 %v2820_v24, %v2820_v24  ;;  %v8856_v9 = vld [vmem:[#allocation7 + $0x64] ss:$16 sps:$4 sm:$0xff]   ;;  %v8859_v10 = vld [vmem:[#allocation7 + $0x6c] ss:$16 sps:$4 sm:$0xff]   ;;  %v8854_v11 = vld [vmem:[#allocation7 + $0x60] ss:$16 sps:$4 sm:$0xff]  }
 0x2fe   :  { %v2821_v25 = vsel %vm2813_vm7, %v2806_v14, %v2817_v20  ;;  %v8857_v14 = vld [vmem:[#allocation7 + $0x68] ss:$16 sps:$4 sm:$0xff]   ;;  %v8862_v17 = vld [vmem:[#allocation7 + $0x44] ss:$16 sps:$4 sm:$0xff]   ;;  %v8860_v20 = vld [vmem:[#allocation7 + $0x40] ss:$16 sps:$4 sm:$0xff]  }
 0x2ff   :  { %3729 = vmatpush2.bf16.msra.mxu0 %v8779_v21  ;;  %v2825_v26 = vpack.c.bf16 %v2821_v25, %v2821_v25  ;;  %v8865_v21 = vld [vmem:[#allocation7 + $0x4c] ss:$16 sps:$4 sm:$0xff]   ;;  %v8863_v24 = vld [vmem:[#allocation7 + $0x48] ss:$16 sps:$4 sm:$0xff]   ;;  %v8868_v12 = vld [vmem:[#allocation7 + $0x24] ss:$16 sps:$4 sm:$0xff]  }
 0x300   :  { %4200 = vmatprep.subr.bf16.mxu0 %v8832_v54  ;;  %v8871_v25 = vld [vmem:[#allocation7 + $0x2c] ss:$16 sps:$4 sm:$0xff]   ;;  %v8916_v54 = vld [vmem:[#allocation7 + $0x124] ss:$16 sps:$4 sm:$0xff]  }
 0x301   :  { %3689 = vmatprep.mubr.bf16.mxu1 %v2825_v26 }
 0x302   :  { %3690 = vmatmul.mubr.bf16.vlgmr.msra.gmra.mxu1 %v9820_v13  ;;  %3731 = vmatmul.mubr.bf16.vlgmr.msra.gmra.mxu0 %v9811_v51  ;;  %v8800_v51 = vld [vmem:[#allocation6 + $0x228] ss:$16 sps:$4 sm:$0xff]  }
 0x303   :  { %3740 = vmatpush1.bf16.msra.mxu1 %v8782_v18  ;;  %3771 = vmatprep.mubr.bf16.mxu1 %v2825_v26  ;;  %v8866_v26 = vld [vmem:[#allocation7 + $0x20] ss:$16 sps:$4 sm:$0xff]   ;;  %v8869_v18 = vld [vmem:[#allocation7 + $0x28] ss:$16 sps:$4 sm:$0xff]  }
 0x304   :  { %3741 = vmatprep.subr.bf16.mxu1 %v8787_v27  ;;  %4201 = vmatpush1.bf16.msra.mxu0 %v8830_v53  ;;  %v8877_v27 = vld [vmem:[#allocation7 + $0xc] ss:$16 sps:$4 sm:$0xff]   ;;  %v8911_v53 = vld [vmem:[#allocation7 + $0x148] ss:$16 sps:$4 sm:$0xff]  }
 0x305   :  { %4202 = vmatprep.subr.bf16.mxu0 %v8838_v57  ;;  %v8917_v57 = vld [vmem:[#allocation7 + $0x128] ss:$16 sps:$4 sm:$0xff]  }
 0x307   :  { %3742 = vmatpush1.bf16.msra.mxu1 %v8785_v22  ;;  %v8872_v22 = vld [vmem:[#allocation7] ss:$16 sps:$4 sm:$0xff]  }
 0x308   :  { %3743 = vmatprep.subr.bf16.mxu1 %v8790_v28  ;;  %4203 = vmatpush1.bf16.msra.mxu0 %v8836_v59  ;;  %v8875_v28 = vld [vmem:[#allocation7 + $0x8] ss:$16 sps:$4 sm:$0xff]   ;;  %v8925_v59 = vld [vmem:[#allocation7 + $0x10c] ss:$16 sps:$4 sm:$0xff]  }
 0x309   :  { %4204 = vmatprep.subr.bf16.mxu0 %v8844_v61  ;;  %v8923_v61 = vld [vmem:[#allocation7 + $0x108] ss:$16 sps:$4 sm:$0xff]  }
 0x30b   :  { %3744 = vmatpush1.bf16.msra.mxu1 %v8788_v19  ;;  %v8880_v19 = vld [vmem:[#allocation7 + $0x1e4] ss:$16 sps:$4 sm:$0xff]  }
 0x30c   :  { %3745 = vmatprep.subr.bf16.mxu1 %v8793_v23  ;;  %4205 = vmatpush1.bf16.msra.mxu0 %v8842_v15  ;;  %v8883_v23 = vld [vmem:[#allocation7 + $0x1ec] ss:$16 sps:$4 sm:$0xff]   ;;  %v8931_v15 = vld [vmem:[#allocation9 + $0x2e4] ss:$16 sps:$4 sm:$0xff]  }
 0x30d   :  { %4206 = vmatprep.subr.bf16.mxu0 %v8850_v6 }
 0x30f   :  { %3746 = vmatpush1.bf16.msra.mxu1 %v8791_v0  ;;  %v8878_v0 = vld [vmem:[#allocation7 + $0x1e0] ss:$16 sps:$4 sm:$0xff]  }
 0x310   :  { %3747 = vmatprep.subr.bf16.mxu1 %v8796_v29  ;;  %4207 = vmatpush1.bf16.msra.mxu0 %v8848_v4  ;;  %v8881_v29 = vld [vmem:[#allocation7 + $0x1e8] ss:$16 sps:$4 sm:$0xff]  }
 0x311   :  { %4208 = vmatprep.subr.bf16.mxu0 %v8856_v9 }
 0x313   :  { %3748 = vmatpush1.bf16.msra.mxu1 %v8794_v30 }
 0x314   :  { %3749 = vmatprep.subr.bf16.mxu1 %v8799_v31  ;;  %4209 = vmatpush1.bf16.msra.mxu0 %v8854_v11  ;;  %v8886_v31 = vld [vmem:[#allocation7 + $0x1c4] ss:$16 sps:$4 sm:$0xff]  }
 0x315   :  { %4210 = vmatprep.subr.bf16.mxu0 %v8862_v17 }
 0x317   :  { %3750 = vmatpush1.bf16.msra.mxu1 %v8797_v32  ;;  %v8889_v32 = vld [vmem:[#allocation7 + $0x1cc] ss:$16 sps:$4 sm:$0xff]  }
 0x318   :  { %3751 = vmatprep.subr.bf16.mxu1 %v8802_v33  ;;  %4211 = vmatpush1.bf16.msra.mxu0 %v8860_v20  ;;  %v8884_v33 = vld [vmem:[#allocation7 + $0x1c0] ss:$16 sps:$4 sm:$0xff]  }
 0x319   :  { %4212 = vmatprep.subr.bf16.mxu0 %v8868_v12 }
 0x31b   :  { %3752 = vmatpush1.bf16.msra.mxu1 %v8800_v51  ;;  %v8887_v51 = vld [vmem:[#allocation7 + $0x1c8] ss:$16 sps:$4 sm:$0xff]  }
 0x31c   :  { %3753 = vmatprep.subr.bf16.mxu1 %v8805_v7  ;;  %4213 = vmatpush1.bf16.msra.mxu0 %v8866_v26 }
 0x31f   :  { %3754 = vmatpush1.bf16.msra.mxu1 %v8803_v34 }
 0x320   :  { %3755 = vmatprep.subr.bf16.mxu1 %v8808_v36  ;;  %v8892_v36 = vld [vmem:[#allocation7 + $0x1a4] ss:$16 sps:$4 sm:$0xff]  }
 0x323   :  { %3756 = vmatpush2.bf16.msra.mxu1 %v8806_v16  ;;  %v8895_v16 = vld [vmem:[#allocation7 + $0x1ac] ss:$16 sps:$4 sm:$0xff]  }
 0x324   :  { %3757 = vmatprep.subr.bf16.mxu1 %v8811_v37  ;;  %v8890_v37 = vld [vmem:[#allocation7 + $0x1a0] ss:$16 sps:$4 sm:$0xff]  }
 0x327   :  { %3758 = vmatpush2.bf16.msra.mxu1 %v8809_v38  ;;  %v8893_v38 = vld [vmem:[#allocation7 + $0x1a8] ss:$16 sps:$4 sm:$0xff]  }
 0x328   :  { %3759 = vmatprep.subr.bf16.mxu1 %v8814_v39 }
 0x32b   :  { %3760 = vmatpush2.bf16.msra.mxu1 %v8812_v40  ;;  %v8898_v40 = vld [vmem:[#allocation7 + $0x184] ss:$16 sps:$4 sm:$0xff]  }
 0x32c   :  { %3761 = vmatprep.subr.bf16.mxu1 %v8817_v41  ;;  %v8901_v41 = vld [vmem:[#allocation7 + $0x18c] ss:$16 sps:$4 sm:$0xff]  }
 0x32f   :  { %3762 = vmatpush2.bf16.msra.mxu1 %v8815_v42  ;;  %v8896_v42 = vld [vmem:[#allocation7 + $0x180] ss:$16 sps:$4 sm:$0xff]  }
 0x330   :  { %3763 = vmatprep.subr.bf16.mxu1 %v8820_v43  ;;  %v8899_v43 = vld [vmem:[#allocation7 + $0x188] ss:$16 sps:$4 sm:$0xff]  }
 0x333   :  { %3764 = vmatpush2.bf16.msra.mxu1 %v8818_v44  ;;  %v8904_v44 = vld [vmem:[#allocation7 + $0x164] ss:$16 sps:$4 sm:$0xff]  }
 0x334   :  { %3765 = vmatprep.subr.bf16.mxu1 %v8823_v45  ;;  %v8907_v45 = vld [vmem:[#allocation7 + $0x16c] ss:$16 sps:$4 sm:$0xff]  }
 0x337   :  { %3766 = vmatpush2.bf16.msra.mxu1 %v8821_v46  ;;  %v8902_v46 = vld [vmem:[#allocation7 + $0x160] ss:$16 sps:$4 sm:$0xff]  }
 0x338   :  { %3767 = vmatprep.subr.bf16.mxu1 %v8826_v48  ;;  %v8905_v48 = vld [vmem:[#allocation7 + $0x168] ss:$16 sps:$4 sm:$0xff]  }
 0x33b   :  { %3768 = vmatpush2.bf16.msra.mxu1 %v8824_v49  ;;  %v8910_v49 = vld [vmem:[#allocation7 + $0x144] ss:$16 sps:$4 sm:$0xff]  }
 0x33c   :  { %3769 = vmatprep.subr.bf16.mxu1 %v8829_v50  ;;  %v8913_v50 = vld [vmem:[#allocation7 + $0x14c] ss:$16 sps:$4 sm:$0xff]  }
 0x33f   :  { %3770 = vmatpush2.bf16.msra.mxu1 %v8827_v52  ;;  %v8908_v52 = vld [vmem:[#allocation7 + $0x140] ss:$16 sps:$4 sm:$0xff]  }
 0x340   :  { %4241 = vmatprep.subr.bf16.mxu1 %v8835_v56  ;;  %v8914_v56 = vld [vmem:[#allocation7 + $0x120] ss:$16 sps:$4 sm:$0xff]  }
 0x342   :  { %3772 = vmatmul.mubr.bf16.vlgmr.msra.gmra.mxu1 %v9820_v13  ;;  %v8874_v13 = vld [vmem:[#allocation7 + $0x4] ss:$16 sps:$4 sm:$0xff]  }
 0x343   :  { %4242 = vmatpush1.bf16.msra.mxu1 %v8833_v55  ;;  %4214 = vmatprep.subr.bf16.mxu0 %v8874_v13  ;;  %v8919_v55 = vld [vmem:[#allocation7 + $0x12c] ss:$16 sps:$4 sm:$0xff]  }
 0x344   :  { %4243 = vmatprep.subr.bf16.mxu1 %v8841_v58  ;;  %4215 = vmatpush1.bf16.msra.mxu0 %v8872_v22  ;;  %v8922_v58 = vld [vmem:[#allocation7 + $0x104] ss:$16 sps:$4 sm:$0xff]  }
 0x345   :  { %4216 = vmatprep.subr.bf16.mxu0 %v8880_v19 }
 0x347   :  { %4244 = vmatpush1.bf16.msra.mxu1 %v8839_v60  ;;  %v8920_v60 = vld [vmem:[#allocation7 + $0x100] ss:$16 sps:$4 sm:$0xff]  }
 0x348   :  { %4245 = vmatprep.subr.bf16.mxu1 %v8847_v62  ;;  %4217 = vmatpush2.bf16.msra.mxu0 %v8878_v0  ;;  %v8928_v62 = vld [vmem:[#allocation9 + $0xe4] ss:$16 sps:$4 sm:$0xff]  }
 0x349   :  { %4218 = vmatprep.subr.bf16.mxu0 %v8886_v31 }
 0x34b   :  { %4246 = vmatpush1.bf16.msra.mxu1 %v8845_v47  ;;  %v2954_v47 = vld [vmem:[%s9947_s8 + $0x8] sm:$0xf] }
 0x34c   :  { %4247 = vmatprep.subr.bf16.mxu1 %v8853_v3  ;;  %4219 = vmatpush2.bf16.msra.mxu0 %v8884_v33  ;;  %v2959_v6 = vrot.slane %v2954_v47, %v9761_v1  ;;  %v2963_v3 = vrot.slane %v2954_v47, %v9764_v2  ;;  %v2967_v26 = vrot.slane %v2954_v47, %v9783_v35 }
 0x34d   :  { %4220 = vmatprep.subr.bf16.mxu0 %v8892_v36 }
 0x34f   :  { %4248 = vmatpush1.bf16.msra.mxu1 %v8851_v8 }
 0x350   :  { %4249 = vmatprep.subr.bf16.mxu1 %v8859_v10  ;;  %4221 = vmatpush2.bf16.msra.mxu0 %v8890_v37 }
 0x351   :  { %4222 = vmatprep.subr.bf16.mxu0 %v8898_v40 }
 0x353   :  { %4250 = vmatpush1.bf16.msra.mxu1 %v8857_v14 }
 0x354   :  { %4251 = vmatprep.subr.bf16.mxu1 %v8865_v21  ;;  %4223 = vmatpush2.bf16.msra.mxu0 %v8896_v42  ;;  %v8929_v42 = vld [vmem:[#allocation9 + $0x2e0] ss:$16 sps:$4 sm:$0xff]  }
 0x355   :  { %4224 = vmatprep.subr.bf16.mxu0 %v8904_v44  ;;  %v8934_v44 = vld [vmem:[#allocation9 + $0xc4] ss:$16 sps:$4 sm:$0xff]  }
 0x357   :  { %4252 = vmatpush1.bf16.msra.mxu1 %v8863_v24 }
 0x358   :  { %4253 = vmatprep.subr.bf16.mxu1 %v8871_v25  ;;  %4225 = vmatpush2.bf16.msra.mxu0 %v8902_v46  ;;  %v8932_v46 = vld [vmem:[#allocation9 + $0xc0] ss:$16 sps:$4 sm:$0xff]  }
 0x359   :  { %4226 = vmatprep.subr.bf16.mxu0 %v8910_v49  ;;  %v8940_v49 = vld [vmem:[#allocation9 + $0xa4] ss:$16 sps:$4 sm:$0xff]  }
 0x35b   :  { %4254 = vmatpush1.bf16.msra.mxu1 %v8869_v18  ;;  %v2971_v18 = vrot.slane %v2954_v47, %v9786_v5  ;;  %v8956_v47 = vld [vmem:[#allocation9 + $0x40] ss:$16 sps:$4 sm:$0xff]  }
 0x35c   :  { %4255 = vmatprep.subr.bf16.mxu1 %v8877_v27  ;;  %4227 = vmatpush2.bf16.msra.mxu0 %v8908_v52  ;;  %v8938_v52 = vld [vmem:[#allocation9 + $0xa0] ss:$16 sps:$4 sm:$0xff]  }
 0x35d   :  { %4228 = vmatprep.subr.bf16.mxu0 %v8916_v54  ;;  %v8946_v54 = vld [vmem:[#allocation9 + $0x84] ss:$16 sps:$4 sm:$0xff]  }
 0x35f   :  { %4256 = vmatpush1.bf16.msra.mxu1 %v8875_v28 }
 0x360   :  { %4257 = vmatprep.subr.bf16.mxu1 %v8883_v23  ;;  %4229 = vmatpush2.bf16.msra.mxu0 %v8914_v56  ;;  %v8944_v56 = vld [vmem:[#allocation9 + $0x80] ss:$16 sps:$4 sm:$0xff]  }
 0x361   :  { %4230 = vmatprep.subr.bf16.mxu0 %v8922_v58  ;;  %v8952_v58 = vld [vmem:[#allocation9 + $0x64] ss:$16 sps:$4 sm:$0xff]  }
 0x363   :  { %4258 = vmatpush2.bf16.msra.mxu1 %v8881_v29 }
 0x364   :  { %4259 = vmatprep.subr.bf16.mxu1 %v8889_v32  ;;  %4231 = vmatpush2.bf16.msra.mxu0 %v8920_v60  ;;  %v8950_v60 = vld [vmem:[#allocation9 + $0x60] ss:$16 sps:$4 sm:$0xff]  }
 0x365   :  { %5088 = vmatprep.subr.bf16.mxu0 %v8928_v62  ;;  %v8958_v62 = vld [vmem:[#allocation9 + $0x44] ss:$16 sps:$4 sm:$0xff]  }
 0x367   :  { %4260 = vmatpush2.bf16.msra.mxu1 %v8887_v51  ;;  %v3786_v51 = vld [vmem:[%s9940_s1] sm:$0xff] }
 0x368   :  { %4261 = vmatprep.subr.bf16.mxu1 %v8895_v16 }
 0x36b   :  { %4262 = vmatpush2.bf16.msra.mxu1 %v8893_v38 }
 0x36c   :  { %4263 = vmatprep.subr.bf16.mxu1 %v8901_v41  ;;  %v8926_v41 = vld [vmem:[#allocation9 + $0xe0] ss:$16 sps:$4 sm:$0xff]  }
 0x36f   :  { %4264 = vmatpush2.bf16.msra.mxu1 %v8899_v43 }
 0x370   :  { %4265 = vmatprep.subr.bf16.mxu1 %v8907_v45  ;;  %v8937_v45 = vld [vmem:[#allocation9 + $0x2c4] ss:$16 sps:$4 sm:$0xff]  }
 0x373   :  { %4266 = vmatpush2.bf16.msra.mxu1 %v8905_v48  ;;  %v8935_v48 = vld [vmem:[#allocation9 + $0x2c0] ss:$16 sps:$4 sm:$0xff]  }
 0x374   :  { %4267 = vmatprep.subr.bf16.mxu1 %v8913_v50  ;;  %v8943_v50 = vld [vmem:[#allocation9 + $0x2a4] ss:$16 sps:$4 sm:$0xff]  }
 0x377   :  { %4268 = vmatpush2.bf16.msra.mxu1 %v8911_v53  ;;  %v8941_v53 = vld [vmem:[#allocation9 + $0x2a0] ss:$16 sps:$4 sm:$0xff]  }
 0x378   :  { %4269 = vmatprep.subr.bf16.mxu1 %v8919_v55  ;;  %v8949_v55 = vld [vmem:[#allocation9 + $0x284] ss:$16 sps:$4 sm:$0xff]  }
 0x37b   :  { %4270 = vmatpush2.bf16.msra.mxu1 %v8917_v57  ;;  %v8947_v57 = vld [vmem:[#allocation9 + $0x280] ss:$16 sps:$4 sm:$0xff]  }
 0x37c   :  { %4271 = vmatprep.subr.bf16.mxu1 %v8925_v59  ;;  %v8955_v59 = vld [vmem:[#allocation9 + $0x264] ss:$16 sps:$4 sm:$0xff]  }
 0x37f   :  { %4272 = vmatpush2.bf16.msra.mxu1 %v8923_v61  ;;  %v8953_v61 = vld [vmem:[#allocation9 + $0x260] ss:$16 sps:$4 sm:$0xff]  }
 0x380   :  { %5129 = vmatprep.subr.bf16.mxu1 %v8931_v15  ;;  %v8961_v15 = vld [vmem:[#allocation9 + $0x244] ss:$16 sps:$4 sm:$0xff]  }
 0x382   :  { %v9825_v30 = vpop.f32.mrf.mxu0 }
 0x383   :  { %v3651_v4 = vadd.f32 %v9825_v30, %v2959_v6  ;;  %v8959_v6 = vld [vmem:[#allocation9 + $0x240] ss:$16 sps:$4 sm:$0xff]  }
 0x384   :  { %v9827_v7 = vpop.f32.mrf.mxu0 }
 0x385   :  { %v3653_v10 = vadd.f32 %v9827_v7, %v2963_v3  ;;  %v8964_v3 = vld [vmem:[#allocation9 + $0x24] ss:$16 sps:$4 sm:$0xff]  }
 0x386   :  { %v3654_v34 = vpop.f32.mrf.mxu0 }
 0x387   :  { %v3787_v34 = vld [vmem:[%s9940_s1 + $0x8] sm:$0xff] }
 0x388   :  { %v3655_v39 = vpop.f32.mrf.mxu0 }
 0x3c2   :  { %v3691_v8 = vpop.f32.mrf.mxu1  ;;  %v3732_v9 = vpop.f32.mrf.mxu0 }
 0x3c3   :  { %v3692_v11 = vadd.f32 %v3691_v8, %v3651_v4  ;;  %v3733_v13 = vadd.f32 %v3732_v9, %v2967_v26  ;;  %v8967_v4 = vld [vmem:[#allocation9 + $0x224] ss:$16 sps:$4 sm:$0xff]   ;;  %v8962_v8 = vld [vmem:[#allocation9 + $0x20] ss:$16 sps:$4 sm:$0xff]  }
 0x3c4   :  { %v3693_v14 = vpop.f32.mrf.mxu1  ;;  %v3734_v17 = vpop.f32.mrf.mxu0  ;;  %v8965_v9 = vld [vmem:[#allocation9 + $0x220] ss:$16 sps:$4 sm:$0xff]   ;;  %v8985_v26 = vld [vmem:[#allocation9 + $0x3c4] ss:$16 sps:$4 sm:$0xff]  }
 0x3c5   :  { %7114 = vst [vmem:[%s9949_s10] sm:$0xff] %v3692_v11  ;;  %v3694_v21 = vadd.f32 %v3693_v14, %v3653_v10  ;;  %v3735_v22 = vadd.f32 %v3734_v17, %v2971_v18  ;;  %v8970_v10 = vld [vmem:[#allocation9 + $0x4] ss:$16 sps:$4 sm:$0xff]   ;;  %v8968_v14 = vld [vmem:[#allocation9] ss:$16 sps:$4 sm:$0xff]  }
 0x3c6   :  { %v3695_v20 = vpop.f32.mrf.mxu1  ;;  %v3736_v24 = vpop.f32.mrf.mxu0  ;;  %v8971_v17 = vld [vmem:[#allocation9 + $0x200] ss:$16 sps:$4 sm:$0xff]  }
 0x3c7   :  { %7115 = vst [vmem:[%s9949_s10 + $0x8] sm:$0xff] %v3694_v21  ;;  %v8979_v20 = vld [vmem:[#allocation9 + $0x3e4] ss:$16 sps:$4 sm:$0xff]   ;;  %v8974_v24 = vld [vmem:[#allocation9 + $0x1e0] ss:$16 sps:$4 sm:$0xff]  }
 0x3c8   :  { %v3696_v12 = vpop.f32.mrf.mxu1  ;;  %v3737_v25 = vpop.f32.mrf.mxu0  ;;  %v8980_v18 = vld [vmem:[#allocation9 + $0x1c0] ss:$16 sps:$4 sm:$0xff]  }
 0x3c9   :  { %v8977_v12 = vld [vmem:[#allocation9 + $0x3e0] ss:$16 sps:$4 sm:$0xff]   ;;  %v8982_v25 = vld [vmem:[#allocation9 + $0x1c4] ss:$16 sps:$4 sm:$0xff]  }
 0x402   :  { %v3773_v27 = vpop.f32.mrf.mxu1 }
 0x403   :  { %v3774_v28 = vadd.f32 %v3773_v27, %v3733_v13  ;;  %v8983_v13 = vld [vmem:[#allocation9 + $0x3c0] ss:$16 sps:$4 sm:$0xff]   ;;  %v8988_v27 = vld [vmem:[#allocation9 + $0x1a4] ss:$16 sps:$4 sm:$0xff]  }
 0x404   :  { %v3775_v19 = vpop.f32.mrf.mxu1 }
 0x405   :  { %v3780_v23 = vmul.f32 0.5, %v3774_v28  ;;  %7116 = vst [vmem:[%s9949_s10 + $0x10] sm:$0xff] %v3774_v28  ;;  %v3776_v0 = vadd.f32 %v3775_v19, %v3735_v22  ;;  %v8991_v22 = vld [vmem:[#allocation9 + $0x3a4] ss:$16 sps:$4 sm:$0xff]   ;;  %v8986_v28 = vld [vmem:[#allocation9 + $0x1a0] ss:$16 sps:$4 sm:$0xff]  }
 0x406   :  { %v3777_v29 = vpop.f32.mrf.mxu1  ;;  %v8989_v19 = vld [vmem:[#allocation9 + $0x3a0] ss:$16 sps:$4 sm:$0xff]  }
 0x407   :  { %v3782_v30 = vmul.f32 1.442695, %v3780_v23  ;;  %v3781_v31 = vmul.f32 0.5, %v3776_v0  ;;  %7117 = vst [vmem:[%s9949_s10 + $0x18] sm:$0xff] %v3776_v0  ;;  %v8994_v23 = vld [vmem:[#allocation9 + $0x184] ss:$16 sps:$4 sm:$0xff]  }
 0x408   :  { %v3778_v32 = vpop.f32.mrf.mxu1  ;;  %v8997_v0 = vld [vmem:[#allocation9 + $0x384] ss:$16 sps:$4 sm:$0xff]   ;;  %v8992_v29 = vld [vmem:[#allocation9 + $0x180] ss:$16 sps:$4 sm:$0xff]  }
 0x409   :  { %9438 = vpow2.f32 %v3782_v30  ;;  %v3784_v33 = vmul.f32 1.442695, %v3781_v31  ;;  %v8995_v30 = vld [vmem:[#allocation9 + $0x380] ss:$16 sps:$4 sm:$0xff]   ;;  %v9000_v31 = vld [vmem:[#allocation9 + $0x164] ss:$16 sps:$4 sm:$0xff]  }
 0x40a   :  { %v9003_v32 = vld [vmem:[#allocation9 + $0x364] ss:$16 sps:$4 sm:$0xff]  }
 0x40b   :  { %9440 = vpow2.f32 %v3784_v33  ;;  %v8998_v33 = vld [vmem:[#allocation9 + $0x160] ss:$16 sps:$4 sm:$0xff]  }
 0x416   :  { %v9439_v7 = vpop.eup %9438 }
 0x417   :  { %v3788_v36 = vmul.f32 %v9439_v7, %v3786_v51  ;;  %v9001_v51 = vld [vmem:[#allocation9 + $0x360] ss:$16 sps:$4 sm:$0xff]   ;;  %v9006_v7 = vld [vmem:[#allocation9 + $0x144] ss:$16 sps:$4 sm:$0xff]  }
 0x418   :  { %v9441_v16 = vpop.eup %9440 }
 0x419   :  { %v3789_v37 = vmul.f32 %v9441_v16, %v3787_v34  ;;  %v3790_v38 = vadd.f32 %v3788_v36, %v3692_v11  ;;  %v8973_v11 = vld [vmem:[#allocation9 + $0x204] ss:$16 sps:$4 sm:$0xff]   ;;  %v9004_v36 = vld [vmem:[#allocation9 + $0x140] ss:$16 sps:$4 sm:$0xff]  }
 0x41a   :  { %v9009_v34 = vld [vmem:[#allocation9 + $0x344] ss:$16 sps:$4 sm:$0xff]   ;;  %v9007_v16 = vld [vmem:[#allocation9 + $0x340] ss:$16 sps:$4 sm:$0xff]  }
 0x41b   :  { %v3791_v39 = vadd.f32 %v3789_v37, %v3694_v21  ;;  %v3792_v43 = vpack.c.bf16 %v3790_v38, %v3790_v38  ;;  %v8976_v21 = vld [vmem:[#allocation9 + $0x1e4] ss:$16 sps:$4 sm:$0xff]  }
 0x41c   :  { %v9012_v37 = vld [vmem:[#allocation9 + $0x124] ss:$16 sps:$4 sm:$0xff]  }
 0x41d   :  { %v3793_v40 = vpack.c.bf16 %v3791_v39, %v3791_v39  ;;  %v9015_v38 = vld [vmem:[#allocation9 + $0x324] ss:$16 sps:$4 sm:$0xff]   ;;  %v9010_v39 = vld [vmem:[#allocation9 + $0x120] ss:$16 sps:$4 sm:$0xff]  }
 0x41f   :  { %4232 = vmatprep.mubr.bf16.mxu0 %v3793_v40  ;;  %4273 = vmatprep.mubr.bf16.mxu1 %v3793_v40  ;;  %v9013_v40 = vld [vmem:[#allocation9 + $0x320] ss:$16 sps:$4 sm:$0xff]  }
 0x420   :  { %4233 = vmatmul.mubr.bf16.vlgmr.msra.gmra.mxu0 %v3792_v43  ;;  %4274 = vmatmul.mubr.bf16.vlgmr.msra.gmra.mxu1 %v3792_v43  ;;  %v9016_v43 = vld [vmem:[#allocation9 + $0x100] ss:$16 sps:$4 sm:$0xff]  }
 0x421   :  { %5089 = vmatpush1.bf16.msra.mxu0 %v8926_v41  ;;  %5130 = vmatpush1.bf16.msra.mxu1 %v8929_v42  ;;  %v9018_v41 = vld [vmem:[#allocation9 + $0x104] ss:$16 sps:$4 sm:$0xff]  }
 0x422   :  { %5090 = vmatprep.subr.bf16.mxu0 %v8934_v44  ;;  %5131 = vmatprep.subr.bf16.mxu1 %v8937_v45  ;;  %v9021_v42 = vld [vmem:[#allocation9 + $0x304] ss:$16 sps:$4 sm:$0xff]   ;;  %v9019_v44 = vld [vmem:[#allocation9 + $0x300] ss:$16 sps:$4 sm:$0xff]   ;;  %v9024_v45 = vld [vmem:[#allocation9 + $0xec] ss:$16 sps:$4 sm:$0xff]  }
 0x425   :  { %5091 = vmatpush1.bf16.msra.mxu0 %v8932_v46  ;;  %5132 = vmatpush1.bf16.msra.mxu1 %v8935_v48  ;;  %v9027_v46 = vld [vmem:[#allocation9 + $0x2ec] ss:$16 sps:$4 sm:$0xff]  }
 0x426   :  { %5092 = vmatprep.subr.bf16.mxu0 %v8940_v49  ;;  %5133 = vmatprep.subr.bf16.mxu1 %v8943_v50  ;;  %v3858_v48 = vld [vmem:[%s9947_s8 + $0xc] sm:$0xf] }
 0x427   :  { %v3863_v49 = vrot.slane %v3858_v48, %v9761_v1  ;;  %v3871_v50 = vrot.slane %v3858_v48, %v9783_v35 }
 0x429   :  { %5093 = vmatpush1.bf16.msra.mxu0 %v8938_v52  ;;  %5134 = vmatpush1.bf16.msra.mxu1 %v8941_v53 }
 0x42a   :  { %5094 = vmatprep.subr.bf16.mxu0 %v8946_v54  ;;  %5135 = vmatprep.subr.bf16.mxu1 %v8949_v55  ;;  %v3867_v54 = vrot.slane %v3858_v48, %v9764_v2  ;;  %v3875_v55 = vrot.slane %v3858_v48, %v9786_v5  ;;  %v9072_v48 = vld [vmem:[#allocation9 + $0x1ec] ss:$16 sps:$4 sm:$0xff]  }
 0x42d   :  { %5095 = vmatpush1.bf16.msra.mxu0 %v8944_v56  ;;  %5136 = vmatpush1.bf16.msra.mxu1 %v8947_v57 }
 0x42e   :  { %5096 = vmatprep.subr.bf16.mxu0 %v8952_v58  ;;  %5137 = vmatprep.subr.bf16.mxu1 %v8955_v59 }
 0x431   :  { %5097 = vmatpush1.bf16.msra.mxu0 %v8950_v60  ;;  %5138 = vmatpush1.bf16.msra.mxu1 %v8953_v61 }
 0x432   :  { %5098 = vmatprep.subr.bf16.mxu0 %v8958_v62  ;;  %5139 = vmatprep.subr.bf16.mxu1 %v8961_v15 }
 0x435   :  { %5099 = vmatpush1.bf16.msra.mxu0 %v8956_v47  ;;  %5140 = vmatpush1.bf16.msra.mxu1 %v8959_v6 }
 0x436   :  { %5100 = vmatprep.subr.bf16.mxu0 %v8964_v3  ;;  %5141 = vmatprep.subr.bf16.mxu1 %v8967_v4 }
 0x439   :  { %5101 = vmatpush1.bf16.msra.mxu0 %v8962_v8  ;;  %5142 = vmatpush1.bf16.msra.mxu1 %v8965_v9 }
 0x43a   :  { %5102 = vmatprep.subr.bf16.mxu0 %v8970_v10  ;;  %5143 = vmatprep.subr.bf16.mxu1 %v8973_v11 }
 0x43d   :  { %5103 = vmatpush1.bf16.msra.mxu0 %v8968_v14  ;;  %5144 = vmatpush1.bf16.msra.mxu1 %v8971_v17 }
 0x43e   :  { %5104 = vmatprep.subr.bf16.mxu0 %v8976_v21  ;;  %5145 = vmatprep.subr.bf16.mxu1 %v8979_v20  ;;  %v9022_v20 = vld [vmem:[#allocation9 + $0xe8] ss:$16 sps:$4 sm:$0xff]  }
 0x441   :  { %5105 = vmatpush2.bf16.msra.mxu0 %v8974_v24  ;;  %5146 = vmatpush2.bf16.msra.mxu1 %v8977_v12 }
 0x442   :  { %5106 = vmatprep.subr.bf16.mxu0 %v8982_v25  ;;  %5147 = vmatprep.subr.bf16.mxu1 %v8985_v26  ;;  %v9025_v25 = vld [vmem:[#allocation9 + $0x2e8] ss:$16 sps:$4 sm:$0xff]  }
 0x445   :  { %5107 = vmatpush2.bf16.msra.mxu0 %v8980_v18  ;;  %5148 = vmatpush2.bf16.msra.mxu1 %v8983_v13  ;;  %v9030_v18 = vld [vmem:[#allocation9 + $0xcc] ss:$16 sps:$4 sm:$0xff]  }
 0x446   :  { %5108 = vmatprep.subr.bf16.mxu0 %v8988_v27  ;;  %5149 = vmatprep.subr.bf16.mxu1 %v8991_v22  ;;  %v9033_v13 = vld [vmem:[#allocation9 + $0x2cc] ss:$16 sps:$4 sm:$0xff]   ;;  %v9028_v27 = vld [vmem:[#allocation9 + $0xc8] ss:$16 sps:$4 sm:$0xff]  }
 0x447   :  { %v9031_v22 = vld [vmem:[#allocation9 + $0x2c8] ss:$16 sps:$4 sm:$0xff]  }
 0x449   :  { %5109 = vmatpush2.bf16.msra.mxu0 %v8986_v28  ;;  %5150 = vmatpush2.bf16.msra.mxu1 %v8989_v19  ;;  %v9036_v28 = vld [vmem:[#allocation9 + $0xac] ss:$16 sps:$4 sm:$0xff]  }
 0x44a   :  { %5110 = vmatprep.subr.bf16.mxu0 %v8994_v23  ;;  %5151 = vmatprep.subr.bf16.mxu1 %v8997_v0  ;;  %v9039_v19 = vld [vmem:[#allocation9 + $0x2ac] ss:$16 sps:$4 sm:$0xff]   ;;  %v9034_v23 = vld [vmem:[#allocation9 + $0xa8] ss:$16 sps:$4 sm:$0xff]  }
 0x44b   :  { %v9037_v0 = vld [vmem:[#allocation9 + $0x2a8] ss:$16 sps:$4 sm:$0xff]  }
 0x44d   :  { %5111 = vmatpush2.bf16.msra.mxu0 %v8992_v29  ;;  %5152 = vmatpush2.bf16.msra.mxu1 %v8995_v30  ;;  %v9042_v29 = vld [vmem:[#allocation9 + $0x8c] ss:$16 sps:$4 sm:$0xff]  }
 0x44e   :  { %5112 = vmatprep.subr.bf16.mxu0 %v9000_v31  ;;  %5153 = vmatprep.subr.bf16.mxu1 %v9003_v32  ;;  %v9045_v30 = vld [vmem:[#allocation9 + $0x28c] ss:$16 sps:$4 sm:$0xff]   ;;  %v9040_v31 = vld [vmem:[#allocation9 + $0x88] ss:$16 sps:$4 sm:$0xff]  }
 0x44f   :  { %v9043_v32 = vld [vmem:[#allocation9 + $0x288] ss:$16 sps:$4 sm:$0xff]  }
 0x451   :  { %5113 = vmatpush2.bf16.msra.mxu0 %v8998_v33  ;;  %5154 = vmatpush2.bf16.msra.mxu1 %v9001_v51  ;;  %v9048_v33 = vld [vmem:[#allocation9 + $0x6c] ss:$16 sps:$4 sm:$0xff]  }
 0x452   :  { %5114 = vmatprep.subr.bf16.mxu0 %v9006_v7  ;;  %5155 = vmatprep.subr.bf16.mxu1 %v9009_v34  ;;  %v9051_v51 = vld [vmem:[#allocation9 + $0x26c] ss:$16 sps:$4 sm:$0xff]   ;;  %v9046_v7 = vld [vmem:[#allocation9 + $0x68] ss:$16 sps:$4 sm:$0xff]  }
 0x453   :  { %v9049_v34 = vld [vmem:[#allocation9 + $0x268] ss:$16 sps:$4 sm:$0xff]  }
 0x455   :  { %5115 = vmatpush2.bf16.msra.mxu0 %v9004_v36  ;;  %5156 = vmatpush2.bf16.msra.mxu1 %v9007_v16  ;;  %v9054_v36 = vld [vmem:[#allocation9 + $0x4c] ss:$16 sps:$4 sm:$0xff]  }
 0x456   :  { %5116 = vmatprep.subr.bf16.mxu0 %v9012_v37  ;;  %5157 = vmatprep.subr.bf16.mxu1 %v9015_v38  ;;  %v9057_v16 = vld [vmem:[#allocation9 + $0x24c] ss:$16 sps:$4 sm:$0xff]   ;;  %v9052_v37 = vld [vmem:[#allocation9 + $0x48] ss:$16 sps:$4 sm:$0xff]  }
 0x457   :  { %v9055_v38 = vld [vmem:[#allocation9 + $0x248] ss:$16 sps:$4 sm:$0xff]  }
 0x459   :  { %5117 = vmatpush2.bf16.msra.mxu0 %v9010_v39  ;;  %5158 = vmatpush2.bf16.msra.mxu1 %v9013_v40  ;;  %v9060_v39 = vld [vmem:[#allocation9 + $0x2c] ss:$16 sps:$4 sm:$0xff]  }
 0x45a   :  { %5118 = vmatprep.subr.bf16.mxu0 %v9018_v41  ;;  %5159 = vmatprep.subr.bf16.mxu1 %v9021_v42  ;;  %v9063_v40 = vld [vmem:[#allocation9 + $0x22c] ss:$16 sps:$4 sm:$0xff]   ;;  %v9058_v41 = vld [vmem:[#allocation9 + $0x28] ss:$16 sps:$4 sm:$0xff]  }
 0x45b   :  { %v9061_v42 = vld [vmem:[#allocation9 + $0x228] ss:$16 sps:$4 sm:$0xff]  }
 0x45d   :  { %5119 = vmatpush2.bf16.msra.mxu0 %v9016_v43  ;;  %5160 = vmatpush2.bf16.msra.mxu1 %v9019_v44  ;;  %v9066_v43 = vld [vmem:[#allocation9 + $0xc] ss:$16 sps:$4 sm:$0xff]  }
 0x45e   :  { %5170 = vmatprep.subr.bf16.mxu0 %v9024_v45  ;;  %5211 = vmatprep.subr.bf16.mxu1 %v9027_v46  ;;  %v9069_v44 = vld [vmem:[#allocation9 + $0x20c] ss:$16 sps:$4 sm:$0xff]   ;;  %v9064_v45 = vld [vmem:[#allocation9 + $0x8] ss:$16 sps:$4 sm:$0xff]  }
 0x45f   :  { %v9067_v46 = vld [vmem:[#allocation9 + $0x208] ss:$16 sps:$4 sm:$0xff]  }
 0x4e0   :  { %v4234_v52 = vpop.f32.mrf.mxu0  ;;  %v4275_v53 = vpop.f32.mrf.mxu1 }
 0x4e1   :  { %v4235_v56 = vadd.f32 %v4234_v52, %v3863_v49  ;;  %v4276_v57 = vadd.f32 %v4275_v53, %v3871_v50  ;;  %v9075_v49 = vld [vmem:[#allocation9 + $0x3ec] ss:$16 sps:$4 sm:$0xff]   ;;  %v9070_v50 = vld [vmem:[#allocation9 + $0x1e8] ss:$16 sps:$4 sm:$0xff]  }
 0x4e2   :  { %v4236_v58 = vpop.f32.mrf.mxu0  ;;  %v4277_v59 = vpop.f32.mrf.mxu1  ;;  %v9073_v52 = vld [vmem:[#allocation9 + $0x3e8] ss:$16 sps:$4 sm:$0xff]   ;;  %v9078_v53 = vld [vmem:[#allocation9 + $0x1cc] ss:$16 sps:$4 sm:$0xff]  }
 0x4e3   :  { %v4286_v60 = vmul.f32 0.2, %v4235_v56  ;;  %vm4282_vm8 = vcmp.ge.f32.partialorder %v4235_v56, 0.0  ;;  %v4288_v61 = vmul.f32 0.2, %v4276_v57  ;;  %v4237_v62 = vadd.f32 %v4236_v58, %v3867_v54 }
 0x4e4   :  { %v4278_v15 = vadd.f32 %v4277_v59, %v3875_v55  ;;  %v4238_v47 = vpop.f32.mrf.mxu0  ;;  %v4279_v6 = vpop.f32.mrf.mxu1  ;;  %vm4284_vm9 = vcmp.ge.f32.partialorder %v4276_v57, 0.0  ;;  %v9081_v54 = vld [vmem:[#allocation9 + $0x3cc] ss:$16 sps:$4 sm:$0xff]   ;;  %v9076_v55 = vld [vmem:[#allocation9 + $0x1c8] ss:$16 sps:$4 sm:$0xff]  }
 0x4e5   :  { %vm4283_vm10 = vcmp.ge.f32.partialorder %v4237_v62, 0.0  ;;  %v4287_v3 = vmul.f32 0.2, %v4237_v62  ;;  %v4290_v9 = vsel %vm4282_vm8, %v4235_v56, %v4286_v60  ;;  %v4292_v11 = vsel %vm4284_vm9, %v4276_v57, %v4288_v61  ;;  %v9079_v56 = vld [vmem:[#allocation9 + $0x3c8] ss:$16 sps:$4 sm:$0xff]  }
 0x4e6   :  { %v4239_v4 = vpop.f32.mrf.mxu0  ;;  %v4280_v8 = vpop.f32.mrf.mxu1  ;;  %vm4285_vm11 = vcmp.ge.f32.partialorder %v4278_v15, 0.0  ;;  %v4289_v10 = vmul.f32 0.2, %v4278_v15  ;;  %v9863_v24 = vpack.c.bf16 %v4290_v9, %v4290_v9  ;;  %v9865_v26 = vpack.c.bf16 %v4292_v11, %v4292_v11  ;;  %v9084_v57 = vld [vmem:[#allocation9 + $0x1ac] ss:$16 sps:$4 sm:$0xff]  }
 0x4e7   :  { %v4291_v14 = vsel %vm4283_vm10, %v4237_v62, %v4287_v3  ;;  %v9087_v58 = vld [vmem:[#allocation9 + $0x3ac] ss:$16 sps:$4 sm:$0xff]   ;;  %v9082_v59 = vld [vmem:[#allocation9 + $0x1a8] ss:$16 sps:$4 sm:$0xff]  }
 0x4e8   :  { %v4295_v17 = vpack.c.bf16 %v4291_v14, %v4291_v14  ;;  %v4293_v21 = vsel %vm4285_vm11, %v4278_v15, %v4289_v10  ;;  %v9085_v60 = vld [vmem:[#allocation9 + $0x3a8] ss:$16 sps:$4 sm:$0xff]   ;;  %v9090_v61 = vld [vmem:[#allocation9 + $0x18c] ss:$16 sps:$4 sm:$0xff]  }
 0x4e9   :  { %v4297_v12 = vpack.c.bf16 %v4293_v21, %v4293_v21  ;;  %v9093_v62 = vld [vmem:[#allocation9 + $0x38c] ss:$16 sps:$4 sm:$0xff]   ;;  %v9088_v15 = vld [vmem:[#allocation9 + $0x188] ss:$16 sps:$4 sm:$0xff]  }
 0x4ea   :  { %5120 = vmatprep.mubr.bf16.mxu0 %v4295_v17  ;;  %v9091_v47 = vld [vmem:[#allocation9 + $0x388] ss:$16 sps:$4 sm:$0xff]   ;;  %v9096_v6 = vld [vmem:[#allocation9 + $0x16c] ss:$16 sps:$4 sm:$0xff]  }
 0x4eb   :  { %5161 = vmatprep.mubr.bf16.mxu1 %v4297_v12  ;;  %5121 = vmatmul.mubr.bf16.vlgmr.msra.gmra.mxu0 %v9863_v24  ;;  %v9099_v3 = vld [vmem:[#allocation9 + $0x36c] ss:$16 sps:$4 sm:$0xff]   ;;  %v9094_v4 = vld [vmem:[#allocation9 + $0x168] ss:$16 sps:$4 sm:$0xff]  }
 0x4ec   :  { %5162 = vmatmul.mubr.bf16.vlgmr.msra.gmra.mxu1 %v9865_v26  ;;  %5171 = vmatpush1.bf16.msra.mxu0 %v9022_v20  ;;  %v9097_v8 = vld [vmem:[#allocation9 + $0x368] ss:$16 sps:$4 sm:$0xff]   ;;  %v9102_v9 = vld [vmem:[#allocation9 + $0x14c] ss:$16 sps:$4 sm:$0xff]  }
 0x4ed   :  { %5212 = vmatpush1.bf16.msra.mxu1 %v9025_v25  ;;  %5202 = vmatprep.mubr.bf16.mxu0 %v4295_v17  ;;  %v9105_v10 = vld [vmem:[#allocation9 + $0x34c] ss:$16 sps:$4 sm:$0xff]   ;;  %v9100_v11 = vld [vmem:[#allocation9 + $0x148] ss:$16 sps:$4 sm:$0xff]  }
 0x4ee   :  { %5243 = vmatprep.mubr.bf16.mxu1 %v4297_v12  ;;  %5172 = vmatprep.subr.bf16.mxu0 %v9030_v18  ;;  %v9103_v14 = vld [vmem:[#allocation9 + $0x348] ss:$16 sps:$4 sm:$0xff]   ;;  %v9108_v17 = vld [vmem:[#allocation9 + $0x12c] ss:$16 sps:$4 sm:$0xff]  }
 0x4ef   :  { %5213 = vmatprep.subr.bf16.mxu1 %v9033_v13  ;;  %v9111_v21 = vld [vmem:[#allocation9 + $0x32c] ss:$16 sps:$4 sm:$0xff]   ;;  %v9106_v20 = vld [vmem:[#allocation9 + $0x128] ss:$16 sps:$4 sm:$0xff]  }
 0x4f0   :  { %5173 = vmatpush1.bf16.msra.mxu0 %v9028_v27  ;;  %v9109_v12 = vld [vmem:[#allocation9 + $0x328] ss:$16 sps:$4 sm:$0xff]   ;;  %v9114_v25 = vld [vmem:[#allocation9 + $0x10c] ss:$16 sps:$4 sm:$0xff]  }
 0x4f1   :  { %5214 = vmatpush1.bf16.msra.mxu1 %v9031_v22  ;;  %5174 = vmatprep.subr.bf16.mxu0 %v9036_v28  ;;  %v9117_v18 = vld [vmem:[#allocation9 + $0x30c] ss:$16 sps:$4 sm:$0xff]   ;;  %v9112_v13 = vld [vmem:[#allocation9 + $0x108] ss:$16 sps:$4 sm:$0xff]  }
 0x4f2   :  { %5215 = vmatprep.subr.bf16.mxu1 %v9039_v19  ;;  %v9115_v27 = vld [vmem:[#allocation9 + $0x308] ss:$16 sps:$4 sm:$0xff]   ;;  %v9123_v19 = vld [vmem:[#allocation10 + $0x154] ss:$28 sps:$4 sm:$0xff]  }
 0x4f3   :  { %v9120_v22 = vld [vmem:[#allocation10 + $0x18c] ss:$28 sps:$4 sm:$0xff]  }
 0x4f4   :  { %5175 = vmatpush1.bf16.msra.mxu0 %v9034_v23  ;;  %v9118_v28 = vld [vmem:[#allocation10 + $0x188] ss:$28 sps:$4 sm:$0xff]   ;;  %v9121_v23 = vld [vmem:[#allocation10 + $0x150] ss:$28 sps:$4 sm:$0xff]  }
 0x4f5   :  { %5216 = vmatpush1.bf16.msra.mxu1 %v9037_v0  ;;  %5176 = vmatprep.subr.bf16.mxu0 %v9042_v29  ;;  %v9126_v0 = vld [vmem:[#allocation10 + $0x11c] ss:$28 sps:$4 sm:$0xff]  }
 0x4f6   :  { %5217 = vmatprep.subr.bf16.mxu1 %v9045_v30  ;;  %v9124_v29 = vld [vmem:[#allocation10 + $0x118] ss:$28 sps:$4 sm:$0xff]   ;;  %v9129_v30 = vld [vmem:[#allocation10 + $0xe4] ss:$28 sps:$4 sm:$0xff]  }
 0x4f8   :  { %5177 = vmatpush1.bf16.msra.mxu0 %v9040_v31  ;;  %v9127_v31 = vld [vmem:[#allocation10 + $0xe0] ss:$28 sps:$4 sm:$0xff]  }
 0x4f9   :  { %5218 = vmatpush1.bf16.msra.mxu1 %v9043_v32  ;;  %5178 = vmatprep.subr.bf16.mxu0 %v9048_v33  ;;  %v9132_v32 = vld [vmem:[#allocation10 + $0xac] ss:$28 sps:$4 sm:$0xff]  }
 0x4fa   :  { %5219 = vmatprep.subr.bf16.mxu1 %v9051_v51  ;;  %v9166_v33 = vld [vmem:[#allocation10 + $0x508] ss:$28 sps:$4 sm:$0xff]  }
 0x4fb   :  { %v9168_v51 = vld [vmem:[#allocation10 + $0x50c] ss:$28 sps:$4 sm:$0xff]  }
 0x4fc   :  { %5179 = vmatpush1.bf16.msra.mxu0 %v9046_v7  ;;  %v9130_v7 = vld [vmem:[#allocation10 + $0xa8] ss:$28 sps:$4 sm:$0xff]  }
 0x4fd   :  { %5220 = vmatpush1.bf16.msra.mxu1 %v9049_v34  ;;  %5180 = vmatprep.subr.bf16.mxu0 %v9054_v36  ;;  %v9174_v34 = vld [vmem:[#allocation10 + $0x4d4] ss:$28 sps:$4 sm:$0xff]  }
 0x4fe   :  { %5221 = vmatprep.subr.bf16.mxu1 %v9057_v16  ;;  %v9133_v36 = vld [vmem:[#allocation10 + $0x70] ss:$28 sps:$4 sm:$0xff]   ;;  %v9138_v16 = vld [vmem:[#allocation10 + $0x3c] ss:$28 sps:$4 sm:$0xff]  }
 0x500   :  { %5181 = vmatpush1.bf16.msra.mxu0 %v9052_v37  ;;  %v9178_v37 = vld [vmem:[#allocation10 + $0x498] ss:$28 sps:$4 sm:$0xff]  }
 0x501   :  { %5222 = vmatpush1.bf16.msra.mxu1 %v9055_v38  ;;  %5182 = vmatprep.subr.bf16.mxu0 %v9060_v39  ;;  %v9180_v38 = vld [vmem:[#allocation10 + $0x49c] ss:$28 sps:$4 sm:$0xff]  }
 0x502   :  { %5223 = vmatprep.subr.bf16.mxu1 %v9063_v40  ;;  %v9136_v39 = vld [vmem:[#allocation10 + $0x38] ss:$28 sps:$4 sm:$0xff]   ;;  %v9141_v40 = vld [vmem:[#allocation10 + $0x4] ss:$28 sps:$4 sm:$0xff]  }
 0x504   :  { %5183 = vmatpush1.bf16.msra.mxu0 %v9058_v41  ;;  %v9184_v41 = vld [vmem:[#allocation10 + $0x460] ss:$28 sps:$4 sm:$0xff]  }
 0x505   :  { %5224 = vmatpush1.bf16.msra.mxu1 %v9061_v42  ;;  %5184 = vmatprep.subr.bf16.mxu0 %v9066_v43  ;;  %v9186_v42 = vld [vmem:[#allocation10 + $0x464] ss:$28 sps:$4 sm:$0xff]  }
 0x506   :  { %5225 = vmatprep.subr.bf16.mxu1 %v9069_v44  ;;  %v9139_v43 = vld [vmem:[#allocation10] ss:$28 sps:$4 sm:$0xff]   ;;  %v9144_v44 = vld [vmem:[#allocation10 + $0x34c] ss:$28 sps:$4 sm:$0xff]  }
 0x508   :  { %5185 = vmatpush1.bf16.msra.mxu0 %v9064_v45  ;;  %v9190_v45 = vld [vmem:[#allocation10 + $0x428] ss:$28 sps:$4 sm:$0xff]  }
 0x509   :  { %5226 = vmatpush1.bf16.msra.mxu1 %v9067_v46  ;;  %5186 = vmatprep.subr.bf16.mxu0 %v9072_v48  ;;  %v9192_v46 = vld [vmem:[#allocation10 + $0x42c] ss:$28 sps:$4 sm:$0xff]  }
 0x50a   :  { %5227 = vmatprep.subr.bf16.mxu1 %v9075_v49  ;;  %v9142_v48 = vld [vmem:[#allocation10 + $0x348] ss:$28 sps:$4 sm:$0xff]   ;;  %v9147_v49 = vld [vmem:[#allocation10 + $0x314] ss:$28 sps:$4 sm:$0xff]  }
 0x50c   :  { %5187 = vmatpush2.bf16.msra.mxu0 %v9070_v50  ;;  %v9196_v50 = vld [vmem:[#allocation10 + $0x3f0] ss:$28 sps:$4 sm:$0xff]  }
 0x50d   :  { %5228 = vmatpush2.bf16.msra.mxu1 %v9073_v52  ;;  %5188 = vmatprep.subr.bf16.mxu0 %v9078_v53  ;;  %v9198_v52 = vld [vmem:[#allocation10 + $0x3f4] ss:$28 sps:$4 sm:$0xff]  }
 0x50e   :  { %5229 = vmatprep.subr.bf16.mxu1 %v9081_v54  ;;  %v9145_v53 = vld [vmem:[#allocation10 + $0x310] ss:$28 sps:$4 sm:$0xff]   ;;  %v9150_v54 = vld [vmem:[#allocation10 + $0x2dc] ss:$28 sps:$4 sm:$0xff]  }
 0x510   :  { %5189 = vmatpush2.bf16.msra.mxu0 %v9076_v55  ;;  %v9202_v55 = vld [vmem:[#allocation10 + $0x3b8] ss:$28 sps:$4 sm:$0xff]  }
 0x511   :  { %5230 = vmatpush2.bf16.msra.mxu1 %v9079_v56  ;;  %5190 = vmatprep.subr.bf16.mxu0 %v9084_v57  ;;  %v9204_v56 = vld [vmem:[#allocation10 + $0x3bc] ss:$28 sps:$4 sm:$0xff]  }
 0x512   :  { %5231 = vmatprep.subr.bf16.mxu1 %v9087_v58  ;;  %v9148_v57 = vld [vmem:[#allocation10 + $0x2d8] ss:$28 sps:$4 sm:$0xff]   ;;  %v9153_v58 = vld [vmem:[#allocation10 + $0x2a4] ss:$28 sps:$4 sm:$0xff]  }
 0x514   :  { %5191 = vmatpush2.bf16.msra.mxu0 %v9082_v59  ;;  %v9208_v59 = vld [vmem:[#allocation10 + $0x380] ss:$28 sps:$4 sm:$0xff]  }
 0x515   :  { %5232 = vmatpush2.bf16.msra.mxu1 %v9085_v60  ;;  %5192 = vmatprep.subr.bf16.mxu0 %v9090_v61  ;;  %v9210_v60 = vld [vmem:[#allocation10 + $0x384] ss:$28 sps:$4 sm:$0xff]  }
 0x516   :  { %5233 = vmatprep.subr.bf16.mxu1 %v9093_v62  ;;  %v9151_v61 = vld [vmem:[#allocation10 + $0x2a0] ss:$28 sps:$4 sm:$0xff]   ;;  %v9156_v62 = vld [vmem:[#allocation10 + $0x26c] ss:$28 sps:$4 sm:$0xff]  }
 0x518   :  { %5193 = vmatpush2.bf16.msra.mxu0 %v9088_v15  ;;  %v9214_v15 = vld [vmem:[#allocation10 + $0x6c8] ss:$28 sps:$4 sm:$0xff]  }
 0x519   :  { %5234 = vmatpush2.bf16.msra.mxu1 %v9091_v47  ;;  %5194 = vmatprep.subr.bf16.mxu0 %v9096_v6  ;;  %v9216_v47 = vld [vmem:[#allocation10 + $0x6cc] ss:$28 sps:$4 sm:$0xff]  }
 0x51a   :  { %5235 = vmatprep.subr.bf16.mxu1 %v9099_v3  ;;  %v9154_v6 = vld [vmem:[#allocation10 + $0x268] ss:$28 sps:$4 sm:$0xff]   ;;  %v9159_v3 = vld [vmem:[#allocation10 + $0x234] ss:$28 sps:$4 sm:$0xff]  }
 0x51c   :  { %5195 = vmatpush2.bf16.msra.mxu0 %v9094_v4  ;;  %v9220_v4 = vld [vmem:[#allocation10 + $0x690] ss:$28 sps:$4 sm:$0xff]  }
 0x51d   :  { %5236 = vmatpush2.bf16.msra.mxu1 %v9097_v8  ;;  %5196 = vmatprep.subr.bf16.mxu0 %v9102_v9  ;;  %v9222_v8 = vld [vmem:[#allocation10 + $0x694] ss:$28 sps:$4 sm:$0xff]  }
 0x51e   :  { %5237 = vmatprep.subr.bf16.mxu1 %v9105_v10  ;;  %v9157_v9 = vld [vmem:[#allocation10 + $0x230] ss:$28 sps:$4 sm:$0xff]   ;;  %v9162_v10 = vld [vmem:[#allocation10 + $0x1fc] ss:$28 sps:$4 sm:$0xff]  }
 0x520   :  { %5197 = vmatpush2.bf16.msra.mxu0 %v9100_v11  ;;  %v9226_v11 = vld [vmem:[#allocation10 + $0x658] ss:$28 sps:$4 sm:$0xff]  }
 0x521   :  { %5238 = vmatpush2.bf16.msra.mxu1 %v9103_v14  ;;  %5198 = vmatprep.subr.bf16.mxu0 %v9108_v17  ;;  %v9228_v14 = vld [vmem:[#allocation10 + $0x65c] ss:$28 sps:$4 sm:$0xff]  }
 0x522   :  { %5239 = vmatprep.subr.bf16.mxu1 %v9111_v21  ;;  %v9160_v17 = vld [vmem:[#allocation10 + $0x1f8] ss:$28 sps:$4 sm:$0xff]   ;;  %v9165_v21 = vld [vmem:[#allocation10 + $0x1c4] ss:$28 sps:$4 sm:$0xff]  }
 0x524   :  { %5199 = vmatpush2.bf16.msra.mxu0 %v9106_v20  ;;  %v9232_v20 = vld [vmem:[#allocation10 + $0x620] ss:$28 sps:$4 sm:$0xff]  }
 0x525   :  { %5240 = vmatpush2.bf16.msra.mxu1 %v9109_v12  ;;  %5200 = vmatprep.subr.bf16.mxu0 %v9114_v25  ;;  %v9234_v12 = vld [vmem:[#allocation10 + $0x624] ss:$28 sps:$4 sm:$0xff]  }
 0x526   :  { %5241 = vmatprep.subr.bf16.mxu1 %v9117_v18  ;;  %v9163_v25 = vld [vmem:[#allocation10 + $0x1c0] ss:$28 sps:$4 sm:$0xff]   ;;  %v9171_v18 = vld [vmem:[#allocation10 + $0x194] ss:$28 sps:$4 sm:$0xff]  }
 0x528   :  { %5201 = vmatpush2.bf16.msra.mxu0 %v9112_v13  ;;  %v9238_v13 = vld [vmem:[#allocation10 + $0x5e8] ss:$28 sps:$4 sm:$0xff]  }
 0x529   :  { %5242 = vmatpush2.bf16.msra.mxu1 %v9115_v27  ;;  %6713 = vmatprep.subr.bf16.mxu0 %v9120_v22  ;;  %v9240_v27 = vld [vmem:[#allocation10 + $0x5ec] ss:$28 sps:$4 sm:$0xff]   ;;  %v9246_v22 = vld [vmem:[#allocation10 + $0x5b4] ss:$28 sps:$4 sm:$0xff]  }
 0x52a   :  { %6754 = vmatprep.subr.bf16.mxu1 %v9168_v51 }
 0x52b   :  { %5203 = vmatmul.mubr.bf16.vlgmr.msra.gmra.mxu0 %v9863_v24  ;;  %v9135_v24 = vld [vmem:[#allocation10 + $0x74] ss:$28 sps:$4 sm:$0xff]  }
 0x52c   :  { %5244 = vmatmul.mubr.bf16.vlgmr.msra.gmra.mxu1 %v9865_v26  ;;  %6714 = vmatpush1.bf16.msra.mxu0 %v9118_v28  ;;  %v9172_v26 = vld [vmem:[#allocation10 + $0x4d0] ss:$28 sps:$4 sm:$0xff]  }
 0x52d   :  { %6715 = vmatprep.subr.bf16.mxu0 %v9123_v19  ;;  %6755 = vmatpush1.bf16.msra.mxu1 %v9166_v33  ;;  %v9244_v28 = vld [vmem:[#allocation10 + $0x5b0] ss:$28 sps:$4 sm:$0xff]   ;;  %v9252_v19 = vld [vmem:[#allocation10 + $0x57c] ss:$28 sps:$4 sm:$0xff]  }
 0x52e   :  { %6756 = vmatprep.subr.bf16.mxu1 %v9174_v34 }
 0x530   :  { %6716 = vmatpush1.bf16.msra.mxu0 %v9121_v23  ;;  %v9250_v23 = vld [vmem:[#allocation10 + $0x578] ss:$28 sps:$4 sm:$0xff]  }
 0x531   :  { %6717 = vmatprep.subr.bf16.mxu0 %v9126_v0  ;;  %6757 = vmatpush1.bf16.msra.mxu1 %v9172_v26  ;;  %v9258_v0 = vld [vmem:[#allocation10 + $0x544] ss:$28 sps:$4 sm:$0xff]  }
 0x532   :  { %6758 = vmatprep.subr.bf16.mxu1 %v9180_v38 }
 0x534   :  { %6718 = vmatpush1.bf16.msra.mxu0 %v9124_v29  ;;  %v9256_v29 = vld [vmem:[#allocation10 + $0x540] ss:$28 sps:$4 sm:$0xff]  }
 0x535   :  { %6719 = vmatprep.subr.bf16.mxu0 %v9129_v30  ;;  %6759 = vmatpush1.bf16.msra.mxu1 %v9178_v37  ;;  %v9264_v30 = vld [vmem:[#allocation10 + $0x514] ss:$28 sps:$4 sm:$0xff]  }
 0x536   :  { %6760 = vmatprep.subr.bf16.mxu1 %v9186_v42 }
 0x538   :  { %6720 = vmatpush1.bf16.msra.mxu0 %v9127_v31  ;;  %v9874_v31 = vld [vmem:[%s9947_s8 + $0x10] sm:$0xf] }
 0x539   :  { %6721 = vmatprep.subr.bf16.mxu0 %v9132_v32  ;;  %6761 = vmatpush1.bf16.msra.mxu1 %v9184_v41  ;;  %v4431_v32 = vrot.slane %v9874_v31, %v9761_v1  ;;  %v4435_v33 = vrot.slane %v9874_v31, %v9764_v2 }
 0x53a   :  { %6762 = vmatprep.subr.bf16.mxu1 %v9192_v46 }
 0x53c   :  { %6722 = vmatpush1.bf16.msra.mxu0 %v9130_v7 }
 0x53d   :  { %6723 = vmatprep.subr.bf16.mxu0 %v9135_v24  ;;  %6763 = vmatpush1.bf16.msra.mxu1 %v9190_v45 }
 0x53e   :  { %6764 = vmatprep.subr.bf16.mxu1 %v9198_v52  ;;  %v9175_v52 = vld [vmem:[#allocation10 + $0x158] ss:$28 sps:$4 sm:$0xff]  }
 0x540   :  { %6724 = vmatpush1.bf16.msra.mxu0 %v9133_v36 }
 0x541   :  { %6725 = vmatprep.subr.bf16.mxu0 %v9138_v16  ;;  %6765 = vmatpush1.bf16.msra.mxu1 %v9196_v50  ;;  %v9177_v50 = vld [vmem:[#allocation10 + $0x15c] ss:$28 sps:$4 sm:$0xff]  }
 0x542   :  { %6766 = vmatprep.subr.bf16.mxu1 %v9204_v56  ;;  %v9187_v56 = vld [vmem:[#allocation10 + $0xe8] ss:$28 sps:$4 sm:$0xff]  }
 0x544   :  { %6726 = vmatpush1.bf16.msra.mxu0 %v9136_v39 }
 0x545   :  { %6727 = vmatprep.subr.bf16.mxu0 %v9141_v40  ;;  %6767 = vmatpush1.bf16.msra.mxu1 %v9202_v55  ;;  %v9189_v55 = vld [vmem:[#allocation10 + $0xec] ss:$28 sps:$4 sm:$0xff]  }
 0x546   :  { %6768 = vmatprep.subr.bf16.mxu1 %v9210_v60  ;;  %v9199_v60 = vld [vmem:[#allocation10 + $0x78] ss:$28 sps:$4 sm:$0xff]  }
 0x548   :  { %6728 = vmatpush1.bf16.msra.mxu0 %v9139_v43 }
 0x549   :  { %6729 = vmatprep.subr.bf16.mxu0 %v9144_v44  ;;  %6769 = vmatpush1.bf16.msra.mxu1 %v9208_v59  ;;  %v9201_v59 = vld [vmem:[#allocation10 + $0x7c] ss:$28 sps:$4 sm:$0xff]  }
 0x54a   :  { %6770 = vmatprep.subr.bf16.mxu1 %v9216_v47  ;;  %v9211_v47 = vld [vmem:[#allocation10 + $0x8] ss:$28 sps:$4 sm:$0xff]  }
 0x54c   :  { %6730 = vmatpush2.bf16.msra.mxu0 %v9142_v48  ;;  %v9169_v48 = vld [vmem:[#allocation10 + $0x190] ss:$28 sps:$4 sm:$0xff]  }
 0x54d   :  { %6731 = vmatprep.subr.bf16.mxu0 %v9147_v49  ;;  %6771 = vmatpush2.bf16.msra.mxu1 %v9214_v15  ;;  %v9213_v15 = vld [vmem:[#allocation10 + $0xc] ss:$28 sps:$4 sm:$0xff]  }
 0x54e   :  { %6772 = vmatprep.subr.bf16.mxu1 %v9222_v8  ;;  %v9223_v8 = vld [vmem:[#allocation10 + $0x318] ss:$28 sps:$4 sm:$0xff]  }
 0x550   :  { %6732 = vmatpush2.bf16.msra.mxu0 %v9145_v53  ;;  %v9183_v53 = vld [vmem:[#allocation10 + $0x124] ss:$28 sps:$4 sm:$0xff]  }
 0x551   :  { %6733 = vmatprep.subr.bf16.mxu0 %v9150_v54  ;;  %6773 = vmatpush2.bf16.msra.mxu1 %v9220_v4  ;;  %v9181_v54 = vld [vmem:[#allocation10 + $0x120] ss:$28 sps:$4 sm:$0xff]  }
 0x552   :  { %6774 = vmatprep.subr.bf16.mxu1 %v9228_v14  ;;  %v9225_v4 = vld [vmem:[#allocation10 + $0x31c] ss:$28 sps:$4 sm:$0xff]   ;;  %v9235_v14 = vld [vmem:[#allocation10 + $0x2a8] ss:$28 sps:$4 sm:$0xff]  }
 0x554   :  { %6734 = vmatpush2.bf16.msra.mxu0 %v9148_v57  ;;  %v9195_v57 = vld [vmem:[#allocation10 + $0xb4] ss:$28 sps:$4 sm:$0xff]  }
 0x555   :  { %6735 = vmatprep.subr.bf16.mxu0 %v9153_v58  ;;  %6775 = vmatpush2.bf16.msra.mxu1 %v9226_v11  ;;  %v9193_v58 = vld [vmem:[#allocation10 + $0xb0] ss:$28 sps:$4 sm:$0xff]  }
 0x556   :  { %6776 = vmatprep.subr.bf16.mxu1 %v9234_v12  ;;  %v9237_v11 = vld [vmem:[#allocation10 + $0x2ac] ss:$28 sps:$4 sm:$0xff]   ;;  %v4439_v12 = vrot.slane %v9874_v31, %v9783_v35 }
 0x558   :  { %6736 = vmatpush2.bf16.msra.mxu0 %v9151_v61  ;;  %v9207_v61 = vld [vmem:[#allocation10 + $0x44] ss:$28 sps:$4 sm:$0xff]  }
 0x559   :  { %6737 = vmatprep.subr.bf16.mxu0 %v9156_v62  ;;  %6777 = vmatpush2.bf16.msra.mxu1 %v9232_v20  ;;  %v9205_v62 = vld [vmem:[#allocation10 + $0x40] ss:$28 sps:$4 sm:$0xff]  }
 0x55a   :  { %6778 = vmatprep.subr.bf16.mxu1 %v9240_v27  ;;  %v9249_v20 = vld [vmem:[#allocation10 + $0x23c] ss:$28 sps:$4 sm:$0xff]  }
 0x55c   :  { %6738 = vmatpush2.bf16.msra.mxu0 %v9154_v6  ;;  %v9219_v6 = vld [vmem:[#allocation10 + $0x354] ss:$28 sps:$4 sm:$0xff]  }
 0x55d   :  { %6739 = vmatprep.subr.bf16.mxu0 %v9159_v3  ;;  %6779 = vmatpush2.bf16.msra.mxu1 %v9238_v13  ;;  %v9217_v3 = vld [vmem:[#allocation10 + $0x350] ss:$28 sps:$4 sm:$0xff]   ;;  %v9255_v13 = vld [vmem:[#allocation10 + $0x204] ss:$28 sps:$4 sm:$0xff]  }
 0x55e   :  { %6780 = vmatprep.subr.bf16.mxu1 %v9246_v22 }
 0x560   :  { %6740 = vmatpush2.bf16.msra.mxu0 %v9157_v9  ;;  %v9231_v9 = vld [vmem:[#allocation10 + $0x2e4] ss:$28 sps:$4 sm:$0xff]  }
 0x561   :  { %6741 = vmatprep.subr.bf16.mxu0 %v9162_v10  ;;  %6781 = vmatpush2.bf16.msra.mxu1 %v9244_v28  ;;  %v9229_v10 = vld [vmem:[#allocation10 + $0x2e0] ss:$28 sps:$4 sm:$0xff]  }
 0x562   :  { %6782 = vmatprep.subr.bf16.mxu1 %v9252_v19 }
 0x564   :  { %6742 = vmatpush2.bf16.msra.mxu0 %v9160_v17  ;;  %v9243_v17 = vld [vmem:[#allocation10 + $0x274] ss:$28 sps:$4 sm:$0xff]  }
 0x565   :  { %6743 = vmatprep.subr.bf16.mxu0 %v9165_v21  ;;  %6783 = vmatpush2.bf16.msra.mxu1 %v9250_v23  ;;  %v9241_v21 = vld [vmem:[#allocation10 + $0x270] ss:$28 sps:$4 sm:$0xff]   ;;  %v9253_v23 = vld [vmem:[#allocation10 + $0x200] ss:$28 sps:$4 sm:$0xff]  }
 0x566   :  { %6784 = vmatprep.subr.bf16.mxu1 %v9258_v0 }
 0x568   :  { %6744 = vmatpush2.bf16.msra.mxu0 %v9163_v25  ;;  %v9247_v25 = vld [vmem:[#allocation10 + $0x238] ss:$28 sps:$4 sm:$0xff]  }
 0x569   :  { %6795 = vmatprep.subr.bf16.mxu0 %v9171_v18  ;;  %6785 = vmatpush2.bf16.msra.mxu1 %v9256_v29  ;;  %v4443_v18 = vrot.slane %v9874_v31, %v9786_v5  ;;  %v9259_v31 = vld [vmem:[#allocation10 + $0x1c8] ss:$28 sps:$4 sm:$0xff]  }
 0x56a   :  { %6836 = vmatprep.subr.bf16.mxu1 %v9264_v30 }
 0x5ab   :  { %v5122_v51 = vpop.f32.mrf.mxu0 }
 0x5ac   :  { %v5123_v7 = vadd.f32 %v5122_v51, %v4431_v32  ;;  %v5163_v24 = vpop.f32.mrf.mxu1  ;;  %v9261_v32 = vld [vmem:[#allocation10 + $0x1cc] ss:$28 sps:$4 sm:$0xff]  }
 0x5ad   :  { %v5124_v26 = vpop.f32.mrf.mxu0 }
 0x5ae   :  { %v5164_v34 = vadd.f32 %v5163_v24, %v5123_v7  ;;  %v5125_v36 = vadd.f32 %v5124_v26, %v4435_v33  ;;  %v5165_v16 = vpop.f32.mrf.mxu1 }
 0x5af   :  { %v5126_v37 = vpop.f32.mrf.mxu0 }
 0x5b0   :  { %vm5252_vm12 = vcmp.ge.f32.partialorder %v5164_v34, 0.0  ;;  %v5256_v38 = vmul.f32 0.2, %v5164_v34  ;;  %v5166_v39 = vadd.f32 %v5165_v16, %v5125_v36  ;;  %v5167_v40 = vpop.f32.mrf.mxu1  ;;  %v9267_v16 = vld [vmem:[#allocation10 + $0x19c] ss:$28 sps:$4 sm:$0xff]  }
 0x5b1   :  { %v5127_v41 = vpop.f32.mrf.mxu0  ;;  %v9262_v40 = vld [vmem:[#allocation10 + $0x510] ss:$28 sps:$4 sm:$0xff]  }
 0x5b2   :  { %vm5253_vm13 = vcmp.ge.f32.partialorder %v5166_v39, 0.0  ;;  %v5257_v42 = vmul.f32 0.2, %v5166_v39  ;;  %v5168_v43 = vpop.f32.mrf.mxu1  ;;  %v5260_v44 = vsel %vm5252_vm12, %v5164_v34, %v5256_v38 }
 0x5b3   :  { %v9882_v49 = vpack.c.bf16 %v5260_v44, %v5260_v44  ;;  %v9270_v43 = vld [vmem:[#allocation10 + $0x4dc] ss:$28 sps:$4 sm:$0xff]   ;;  %v9273_v44 = vld [vmem:[#allocation10 + $0x164] ss:$28 sps:$4 sm:$0xff]  }
 0x5b4   :  { %v5261_v45 = vsel %vm5253_vm13, %v5166_v39, %v5257_v42  ;;  %v9265_v42 = vld [vmem:[#allocation10 + $0x198] ss:$28 sps:$4 sm:$0xff]  }
 0x5b5   :  { %v9880_v46 = vpack.c.bf16 %v5261_v45, %v5261_v45  ;;  %v9268_v45 = vld [vmem:[#allocation10 + $0x4d8] ss:$28 sps:$4 sm:$0xff]  }
 0x5b7   :  { %6745 = vmatprep.mubr.bf16.mxu0 %v9880_v46 }
 0x5b8   :  { %6746 = vmatmul.mubr.bf16.vlgmr.msra.gmra.mxu0 %v9882_v49 }
 0x5b9   :  { %6796 = vmatpush1.bf16.msra.mxu0 %v9169_v48  ;;  %6827 = vmatprep.mubr.bf16.mxu0 %v9880_v46  ;;  %v9271_v48 = vld [vmem:[#allocation10 + $0x160] ss:$28 sps:$4 sm:$0xff]  }
 0x5ba   :  { %6797 = vmatprep.subr.bf16.mxu0 %v9177_v50  ;;  %v9276_v50 = vld [vmem:[#allocation10 + $0x4a4] ss:$28 sps:$4 sm:$0xff]  }
 0x5bd   :  { %6798 = vmatpush1.bf16.msra.mxu0 %v9175_v52  ;;  %v9279_v52 = vld [vmem:[#allocation10 + $0x12c] ss:$28 sps:$4 sm:$0xff]  }
 0x5be   :  { %6799 = vmatprep.subr.bf16.mxu0 %v9183_v53  ;;  %v9274_v53 = vld [vmem:[#allocation10 + $0x4a0] ss:$28 sps:$4 sm:$0xff]  }
 0x5c1   :  { %6800 = vmatpush1.bf16.msra.mxu0 %v9181_v54  ;;  %v9277_v54 = vld [vmem:[#allocation10 + $0x128] ss:$28 sps:$4 sm:$0xff]  }
 0x5c2   :  { %6801 = vmatprep.subr.bf16.mxu0 %v9189_v55  ;;  %v9282_v55 = vld [vmem:[#allocation10 + $0x46c] ss:$28 sps:$4 sm:$0xff]  }
 0x5c5   :  { %6802 = vmatpush1.bf16.msra.mxu0 %v9187_v56  ;;  %v9285_v56 = vld [vmem:[#allocation10 + $0xf4] ss:$28 sps:$4 sm:$0xff]  }
 0x5c6   :  { %6803 = vmatprep.subr.bf16.mxu0 %v9195_v57  ;;  %v9280_v57 = vld [vmem:[#allocation10 + $0x468] ss:$28 sps:$4 sm:$0xff]  }
 0x5c9   :  { %6804 = vmatpush1.bf16.msra.mxu0 %v9193_v58  ;;  %v9283_v58 = vld [vmem:[#allocation10 + $0xf0] ss:$28 sps:$4 sm:$0xff]  }
 0x5ca   :  { %6805 = vmatprep.subr.bf16.mxu0 %v9201_v59  ;;  %v9288_v59 = vld [vmem:[#allocation10 + $0x434] ss:$28 sps:$4 sm:$0xff]  }
 0x5cd   :  { %6806 = vmatpush1.bf16.msra.mxu0 %v9199_v60  ;;  %v9291_v60 = vld [vmem:[#allocation10 + $0xbc] ss:$28 sps:$4 sm:$0xff]  }
 0x5ce   :  { %6807 = vmatprep.subr.bf16.mxu0 %v9207_v61  ;;  %v9286_v61 = vld [vmem:[#allocation10 + $0x430] ss:$28 sps:$4 sm:$0xff]  }
 0x5d1   :  { %6808 = vmatpush1.bf16.msra.mxu0 %v9205_v62  ;;  %v9289_v62 = vld [vmem:[#allocation10 + $0xb8] ss:$28 sps:$4 sm:$0xff]  }
 0x5d2   :  { %6809 = vmatprep.subr.bf16.mxu0 %v9213_v15  ;;  %v9294_v15 = vld [vmem:[#allocation10 + $0x3fc] ss:$28 sps:$4 sm:$0xff]  }
 0x5d5   :  { %6810 = vmatpush1.bf16.msra.mxu0 %v9211_v47  ;;  %v9297_v47 = vld [vmem:[#allocation10 + $0x84] ss:$28 sps:$4 sm:$0xff]  }
 0x5d6   :  { %6811 = vmatprep.subr.bf16.mxu0 %v9219_v6  ;;  %v9292_v6 = vld [vmem:[#allocation10 + $0x3f8] ss:$28 sps:$4 sm:$0xff]  }
 0x5d9   :  { %6812 = vmatpush2.bf16.msra.mxu0 %v9217_v3  ;;  %v9295_v3 = vld [vmem:[#allocation10 + $0x80] ss:$28 sps:$4 sm:$0xff]  }
 0x5da   :  { %6813 = vmatprep.subr.bf16.mxu0 %v9225_v4  ;;  %v9300_v4 = vld [vmem:[#allocation10 + $0x3c4] ss:$28 sps:$4 sm:$0xff]  }
 0x5dd   :  { %6814 = vmatpush2.bf16.msra.mxu0 %v9223_v8  ;;  %v9303_v8 = vld [vmem:[#allocation10 + $0x4c] ss:$28 sps:$4 sm:$0xff]  }
 0x5de   :  { %6815 = vmatprep.subr.bf16.mxu0 %v9231_v9  ;;  %v9298_v9 = vld [vmem:[#allocation10 + $0x3c0] ss:$28 sps:$4 sm:$0xff]  }
 0x5e1   :  { %6816 = vmatpush2.bf16.msra.mxu0 %v9229_v10  ;;  %v9301_v10 = vld [vmem:[#allocation10 + $0x48] ss:$28 sps:$4 sm:$0xff]  }
 0x5e2   :  { %6817 = vmatprep.subr.bf16.mxu0 %v9237_v11  ;;  %v9306_v11 = vld [vmem:[#allocation10 + $0x38c] ss:$28 sps:$4 sm:$0xff]  }
 0x5e5   :  { %6818 = vmatpush2.bf16.msra.mxu0 %v9235_v14  ;;  %v9309_v14 = vld [vmem:[#allocation10 + $0x14] ss:$28 sps:$4 sm:$0xff]  }
 0x5e6   :  { %6819 = vmatprep.subr.bf16.mxu0 %v9243_v17  ;;  %v9304_v17 = vld [vmem:[#allocation10 + $0x388] ss:$28 sps:$4 sm:$0xff]  }
 0x5e9   :  { %6820 = vmatpush2.bf16.msra.mxu0 %v9241_v21  ;;  %v9307_v21 = vld [vmem:[#allocation10 + $0x10] ss:$28 sps:$4 sm:$0xff]  }
 0x5ea   :  { %6821 = vmatprep.subr.bf16.mxu0 %v9249_v20  ;;  %v9312_v20 = vld [vmem:[#allocation10 + $0x6d4] ss:$28 sps:$4 sm:$0xff]  }
 0x5eb   :  { %v5204_v27 = vpop.f32.mrf.mxu0 }
 0x5ec   :  { %v5205_v22 = vadd.f32 %v5204_v27, %v4439_v12  ;;  %v5245_v28 = vpop.f32.mrf.mxu1  ;;  %v9315_v12 = vld [vmem:[#allocation10 + $0x35c] ss:$28 sps:$4 sm:$0xff]   ;;  %v9321_v27 = vld [vmem:[#allocation10 + $0x324] ss:$28 sps:$4 sm:$0xff]  }
 0x5ed   :  { %v5206_v19 = vpop.f32.mrf.mxu0  ;;  %6822 = vmatpush2.bf16.msra.mxu0 %v9247_v25  ;;  %v9310_v25 = vld [vmem:[#allocation10 + $0x6d0] ss:$28 sps:$4 sm:$0xff]  }
 0x5ee   :  { %v5246_v0 = vadd.f32 %v5245_v28, %v5205_v22  ;;  %v5207_v29 = vadd.f32 %v5206_v19, %v4443_v18  ;;  %v5247_v30 = vpop.f32.mrf.mxu1  ;;  %6823 = vmatprep.subr.bf16.mxu0 %v9255_v13  ;;  %v9313_v18 = vld [vmem:[#allocation10 + $0x358] ss:$28 sps:$4 sm:$0xff]   ;;  %v9319_v28 = vld [vmem:[#allocation10 + $0x320] ss:$28 sps:$4 sm:$0xff]  }
 0x5ef   :  { %v5208_v33 = vpop.f32.mrf.mxu0  ;;  %v9318_v13 = vld [vmem:[#allocation10 + $0x69c] ss:$28 sps:$4 sm:$0xff]   ;;  %v9324_v19 = vld [vmem:[#allocation10 + $0x664] ss:$28 sps:$4 sm:$0xff]  }
 0x5f0   :  { %vm5254_vm14 = vcmp.ge.f32.partialorder %v5246_v0, 0.0  ;;  %v5258_v51 = vmul.f32 0.2, %v5246_v0  ;;  %v5248_v7 = vadd.f32 %v5247_v30, %v5207_v29  ;;  %v5249_v24 = vpop.f32.mrf.mxu1  ;;  %v9316_v22 = vld [vmem:[#allocation10 + $0x698] ss:$28 sps:$4 sm:$0xff]  }
 0x5f1   :  { %v5209_v26 = vpop.f32.mrf.mxu0  ;;  %6824 = vmatpush2.bf16.msra.mxu0 %v9253_v23  ;;  %v9327_v23 = vld [vmem:[#allocation10 + $0x2ec] ss:$28 sps:$4 sm:$0xff]   ;;  %v9339_v24 = vld [vmem:[#allocation10 + $0x27c] ss:$28 sps:$4 sm:$0xff]  }
 0x5f2   :  { %vm5255_vm15 = vcmp.ge.f32.partialorder %v5248_v7, 0.0  ;;  %v5259_v34 = vmul.f32 0.2, %v5248_v7  ;;  %v5250_v36 = vpop.f32.mrf.mxu1  ;;  %6825 = vmatprep.subr.bf16.mxu0 %v9261_v32  ;;  %v5262_v37 = vsel %vm5254_vm14, %v5246_v0, %v5258_v51  ;;  %v9322_v0 = vld [vmem:[#allocation10 + $0x660] ss:$28 sps:$4 sm:$0xff]  }
 0x5f3   :  { %v9893_v41 = vpack.c.bf16 %v5262_v37, %v5262_v37  ;;  %v9325_v29 = vld [vmem:[#allocation10 + $0x2e8] ss:$28 sps:$4 sm:$0xff]   ;;  %v9333_v32 = vld [vmem:[#allocation10 + $0x2b4] ss:$28 sps:$4 sm:$0xff]   ;;  %v9343_v37 = vld [vmem:[#allocation10 + $0x240] ss:$28 sps:$4 sm:$0xff]  }
 0x5f4   :  { %v5263_v38 = vsel %vm5255_vm15, %v5248_v7, %v5259_v34  ;;  %v9330_v30 = vld [vmem:[#allocation10 + $0x62c] ss:$28 sps:$4 sm:$0xff]   ;;  %v9336_v7 = vld [vmem:[#allocation10 + $0x5f4] ss:$28 sps:$4 sm:$0xff]   ;;  %v9342_v34 = vld [vmem:[#allocation10 + $0x5bc] ss:$28 sps:$4 sm:$0xff]  }
 0x5f5   :  { %v9891_v39 = vpack.c.bf16 %v5263_v38, %v5263_v38  ;;  %6826 = vmatpush2.bf16.msra.mxu0 %v9259_v31  ;;  %v9328_v33 = vld [vmem:[#allocation10 + $0x628] ss:$28 sps:$4 sm:$0xff]   ;;  %v9331_v51 = vld [vmem:[#allocation10 + $0x2b0] ss:$28 sps:$4 sm:$0xff]   ;;  %v9337_v31 = vld [vmem:[#allocation10 + $0x278] ss:$28 sps:$4 sm:$0xff]  }
 0x5f6   :  { %6877 = vmatprep.subr.bf16.mxu0 %v9267_v16  ;;  %v9334_v26 = vld [vmem:[#allocation10 + $0x5f0] ss:$28 sps:$4 sm:$0xff]   ;;  %v9345_v36 = vld [vmem:[#allocation10 + $0x244] ss:$28 sps:$4 sm:$0xff]   ;;  %v9340_v16 = vld [vmem:[#allocation10 + $0x5b8] ss:$28 sps:$4 sm:$0xff]  }
 0x5f7   :  { %6786 = vmatprep.mubr.bf16.mxu1 %v9891_v39  ;;  %v9348_v38 = vld [vmem:[#allocation10 + $0x584] ss:$28 sps:$4 sm:$0xff]  }
 0x5f8   :  { %6787 = vmatmul.mubr.bf16.vlgmr.msra.gmra.mxu1 %v9893_v41  ;;  %6828 = vmatmul.mubr.bf16.vlgmr.msra.gmra.mxu0 %v9882_v49 }
 0x5f9   :  { %6837 = vmatpush1.bf16.msra.mxu1 %v9262_v40  ;;  %6868 = vmatprep.mubr.bf16.mxu1 %v9891_v39  ;;  %v9351_v40 = vld [vmem:[#allocation10 + $0x20c] ss:$28 sps:$4 sm:$0xff]  }
 0x5fa   :  { %6878 = vmatpush1.bf16.msra.mxu0 %v9265_v42  ;;  %6909 = vmatprep.mubr.bf16.mxu0 %v9880_v46  ;;  %v9346_v42 = vld [vmem:[#allocation10 + $0x580] ss:$28 sps:$4 sm:$0xff]  }
 0x5fb   :  { %6838 = vmatprep.subr.bf16.mxu1 %v9270_v43  ;;  %6879 = vmatprep.subr.bf16.mxu0 %v9273_v44  ;;  %v9349_v43 = vld [vmem:[#allocation10 + $0x208] ss:$28 sps:$4 sm:$0xff]  }
 0x5fc   :  { %v9354_v44 = vld [vmem:[#allocation10 + $0x54c] ss:$28 sps:$4 sm:$0xff]  }
 0x5fd   :  { %6839 = vmatpush1.bf16.msra.mxu1 %v9268_v45  ;;  %v9357_v45 = vld [vmem:[#allocation10 + $0x1d4] ss:$28 sps:$4 sm:$0xff]  }
 0x5fe   :  { %6880 = vmatpush1.bf16.msra.mxu0 %v9271_v48  ;;  %6840 = vmatprep.subr.bf16.mxu1 %v9276_v50  ;;  %v9352_v48 = vld [vmem:[#allocation10 + $0x548] ss:$28 sps:$4 sm:$0xff]   ;;  %v9355_v50 = vld [vmem:[#allocation10 + $0x1d0] ss:$28 sps:$4 sm:$0xff]  }
 0x5ff   :  { %6881 = vmatprep.subr.bf16.mxu0 %v9279_v52  ;;  %v9360_v52 = vld [vmem:[#allocation10 + $0x51c] ss:$28 sps:$4 sm:$0xff]  }
 0x601   :  { %6841 = vmatpush1.bf16.msra.mxu1 %v9274_v53  ;;  %v9361_v53 = vld [vmem:[#allocation10 + $0x360] ss:$28 sps:$4 sm:$0xff]  }
 0x602   :  { %6882 = vmatpush1.bf16.msra.mxu0 %v9277_v54  ;;  %6842 = vmatprep.subr.bf16.mxu1 %v9282_v55  ;;  %v9358_v54 = vld [vmem:[#allocation10 + $0x518] ss:$28 sps:$4 sm:$0xff]   ;;  %v9362_v55 = vld [vmem:[#allocation10 + $0x1a0] ss:$28 sps:$4 sm:$0xff]  }
 0x603   :  { %6883 = vmatprep.subr.bf16.mxu0 %v9285_v56  ;;  %v9365_v56 = vld [vmem:[#allocation10 + $0x4e4] ss:$28 sps:$4 sm:$0xff]  }
 0x605   :  { %6843 = vmatpush1.bf16.msra.mxu1 %v9280_v57  ;;  %v9366_v57 = vld [vmem:[#allocation10 + $0x328] ss:$28 sps:$4 sm:$0xff]  }
 0x606   :  { %6884 = vmatpush1.bf16.msra.mxu0 %v9283_v58  ;;  %6844 = vmatprep.subr.bf16.mxu1 %v9288_v59  ;;  %v9363_v58 = vld [vmem:[#allocation10 + $0x4e0] ss:$28 sps:$4 sm:$0xff]   ;;  %v9367_v59 = vld [vmem:[#allocation10 + $0x168] ss:$28 sps:$4 sm:$0xff]  }
 0x607   :  { %6885 = vmatprep.subr.bf16.mxu0 %v9291_v60  ;;  %v9370_v60 = vld [vmem:[#allocation10 + $0x4ac] ss:$28 sps:$4 sm:$0xff]  }
 0x609   :  { %6845 = vmatpush1.bf16.msra.mxu1 %v9286_v61  ;;  %v9371_v61 = vld [vmem:[#allocation10 + $0x2f0] ss:$28 sps:$4 sm:$0xff]  }
 0x60a   :  { %6886 = vmatpush1.bf16.msra.mxu0 %v9289_v62  ;;  %6846 = vmatprep.subr.bf16.mxu1 %v9294_v15  ;;  %v9368_v62 = vld [vmem:[#allocation10 + $0x4a8] ss:$28 sps:$4 sm:$0xff]   ;;  %v9372_v15 = vld [vmem:[#allocation10 + $0x130] ss:$28 sps:$4 sm:$0xff]  }
 0x60b   :  { %6887 = vmatprep.subr.bf16.mxu0 %v9297_v47  ;;  %v9375_v47 = vld [vmem:[#allocation10 + $0x474] ss:$28 sps:$4 sm:$0xff]  }
 0x60d   :  { %6847 = vmatpush1.bf16.msra.mxu1 %v9292_v6  ;;  %v9376_v6 = vld [vmem:[#allocation10 + $0x2b8] ss:$28 sps:$4 sm:$0xff]  }
 0x60e   :  { %6888 = vmatpush1.bf16.msra.mxu0 %v9295_v3  ;;  %6848 = vmatprep.subr.bf16.mxu1 %v9300_v4  ;;  %v9373_v3 = vld [vmem:[#allocation10 + $0x470] ss:$28 sps:$4 sm:$0xff]   ;;  %v9377_v4 = vld [vmem:[#allocation10 + $0xf8] ss:$28 sps:$4 sm:$0xff]  }
 0x60f   :  { %6889 = vmatprep.subr.bf16.mxu0 %v9303_v8  ;;  %v9380_v8 = vld [vmem:[#allocation10 + $0x43c] ss:$28 sps:$4 sm:$0xff]  }
 0x611   :  { %6849 = vmatpush1.bf16.msra.mxu1 %v9298_v9  ;;  %v9381_v9 = vld [vmem:[#allocation10 + $0x280] ss:$28 sps:$4 sm:$0xff]  }
 0x612   :  { %6890 = vmatpush1.bf16.msra.mxu0 %v9301_v10  ;;  %6850 = vmatprep.subr.bf16.mxu1 %v9306_v11  ;;  %v9382_v10 = vld [vmem:[#allocation10 + $0xc0] ss:$28 sps:$4 sm:$0xff]  }
 0x613   :  { %6891 = vmatprep.subr.bf16.mxu0 %v9309_v14  ;;  %v9385_v11 = vld [vmem:[#allocation10 + $0x404] ss:$28 sps:$4 sm:$0xff]  }
 0x614   :  { %v9386_v14 = vld [vmem:[#allocation10 + $0x248] ss:$28 sps:$4 sm:$0xff]  }
 0x615   :  { %6851 = vmatpush1.bf16.msra.mxu1 %v9304_v17  ;;  %v9383_v17 = vld [vmem:[#allocation10 + $0x400] ss:$28 sps:$4 sm:$0xff]  }
 0x616   :  { %6892 = vmatpush1.bf16.msra.mxu0 %v9307_v21  ;;  %6852 = vmatprep.subr.bf16.mxu1 %v9312_v20  ;;  %v9387_v21 = vld [vmem:[#allocation10 + $0x88] ss:$28 sps:$4 sm:$0xff]  }
 0x617   :  { %6893 = vmatprep.subr.bf16.mxu0 %v9315_v12  ;;  %v9390_v20 = vld [vmem:[#allocation10 + $0x3cc] ss:$28 sps:$4 sm:$0xff]  }
 0x618   :  { %v9391_v12 = vld [vmem:[#allocation10 + $0x210] ss:$28 sps:$4 sm:$0xff]  }
 0x619   :  { %6853 = vmatpush2.bf16.msra.mxu1 %v9310_v25  ;;  %v9388_v25 = vld [vmem:[#allocation10 + $0x3c8] ss:$28 sps:$4 sm:$0xff]  }
 0x61a   :  { %6894 = vmatpush2.bf16.msra.mxu0 %v9313_v18  ;;  %6854 = vmatprep.subr.bf16.mxu1 %v9318_v13  ;;  %v9392_v18 = vld [vmem:[#allocation10 + $0x50] ss:$28 sps:$4 sm:$0xff]  }
 0x61b   :  { %6895 = vmatprep.subr.bf16.mxu0 %v9321_v27  ;;  %v9395_v13 = vld [vmem:[#allocation10 + $0x394] ss:$28 sps:$4 sm:$0xff]  }
 0x61c   :  { %v9396_v27 = vld [vmem:[#allocation10 + $0x1d8] ss:$28 sps:$4 sm:$0xff]  }
 0x61d   :  { %6855 = vmatpush2.bf16.msra.mxu1 %v9316_v22  ;;  %v9393_v22 = vld [vmem:[#allocation10 + $0x390] ss:$28 sps:$4 sm:$0xff]  }
 0x61e   :  { %6896 = vmatpush2.bf16.msra.mxu0 %v9319_v28  ;;  %6856 = vmatprep.subr.bf16.mxu1 %v9324_v19  ;;  %v9397_v28 = vld [vmem:[#allocation10 + $0x18] ss:$28 sps:$4 sm:$0xff]  }
 0x61f   :  { %6897 = vmatprep.subr.bf16.mxu0 %v9327_v23  ;;  %v9400_v19 = vld [vmem:[#allocation10 + $0x6dc] ss:$28 sps:$4 sm:$0xff]  }
 0x620   :  { %v9398_v23 = vld [vmem:[#allocation10 + $0x6d8] ss:$28 sps:$4 sm:$0xff]  }
 0x621   :  { %6857 = vmatpush2.bf16.msra.mxu1 %v9322_v0  ;;  %v9403_v0 = vld [vmem:[#allocation10 + $0x6a4] ss:$28 sps:$4 sm:$0xff]  }
 0x622   :  { %6898 = vmatpush2.bf16.msra.mxu0 %v9325_v29  ;;  %6858 = vmatprep.subr.bf16.mxu1 %v9330_v30  ;;  %v9401_v29 = vld [vmem:[#allocation10 + $0x6a0] ss:$28 sps:$4 sm:$0xff]   ;;  %v9406_v30 = vld [vmem:[#allocation10 + $0x66c] ss:$28 sps:$4 sm:$0xff]  }
 0x623   :  { %6899 = vmatprep.subr.bf16.mxu0 %v9333_v32  ;;  %v9404_v32 = vld [vmem:[#allocation10 + $0x668] ss:$28 sps:$4 sm:$0xff]  }
 0x625   :  { %6859 = vmatpush2.bf16.msra.mxu1 %v9328_v33  ;;  %v9409_v33 = vld [vmem:[#allocation10 + $0x634] ss:$28 sps:$4 sm:$0xff]  }
 0x626   :  { %6900 = vmatpush2.bf16.msra.mxu0 %v9331_v51  ;;  %6860 = vmatprep.subr.bf16.mxu1 %v9336_v7  ;;  %v9407_v51 = vld [vmem:[#allocation10 + $0x630] ss:$28 sps:$4 sm:$0xff]   ;;  %v9412_v7 = vld [vmem:[#allocation10 + $0x5fc] ss:$28 sps:$4 sm:$0xff]  }
 0x627   :  { %6901 = vmatprep.subr.bf16.mxu0 %v9339_v24  ;;  %v9410_v24 = vld [vmem:[#allocation10 + $0x5f8] ss:$28 sps:$4 sm:$0xff]  }
 0x629   :  { %6861 = vmatpush2.bf16.msra.mxu1 %v9334_v26  ;;  %v9415_v26 = vld [vmem:[#allocation10 + $0x5c4] ss:$28 sps:$4 sm:$0xff]  }
 0x62a   :  { %6902 = vmatpush2.bf16.msra.mxu0 %v9337_v31  ;;  %6862 = vmatprep.subr.bf16.mxu1 %v9342_v34  ;;  %v9413_v31 = vld [vmem:[#allocation10 + $0x5c0] ss:$28 sps:$4 sm:$0xff]   ;;  %v9418_v34 = vld [vmem:[#allocation10 + $0x58c] ss:$28 sps:$4 sm:$0xff]  }
 0x62b   :  { %6903 = vmatprep.subr.bf16.mxu0 %v9345_v36  ;;  %v9421_v36 = vld [vmem:[#allocation10 + $0x554] ss:$28 sps:$4 sm:$0xff]  }
 0x62d   :  { %6863 = vmatpush2.bf16.msra.mxu1 %v9340_v16  ;;  %v9419_v16 = vld [vmem:[#allocation10 + $0x550] ss:$28 sps:$4 sm:$0xff]  }
 0x62e   :  { %6904 = vmatpush2.bf16.msra.mxu0 %v9343_v37  ;;  %6864 = vmatprep.subr.bf16.mxu1 %v9348_v38  ;;  %v9422_v37 = vld [vmem:[#allocation10 + $0x6e0] ss:$28 sps:$4 sm:$0xff]  }
 0x62f   :  { %6905 = vmatprep.subr.bf16.mxu0 %v9351_v40  ;;  %v9423_v38 = vld [vmem:[#allocation10 + $0x520] ss:$28 sps:$4 sm:$0xff]   ;;  %v9424_v40 = vld [vmem:[#allocation10 + $0x6a8] ss:$28 sps:$4 sm:$0xff]  }
 0x631   :  { %6865 = vmatpush2.bf16.msra.mxu1 %v9346_v42 }
 0x632   :  { %6906 = vmatpush2.bf16.msra.mxu0 %v9349_v43  ;;  %6866 = vmatprep.subr.bf16.mxu1 %v9354_v44  ;;  %v9425_v43 = vld [vmem:[#allocation10 + $0x4e8] ss:$28 sps:$4 sm:$0xff]  }
 0x633   :  { %6907 = vmatprep.subr.bf16.mxu0 %v9357_v45  ;;  %v9426_v45 = vld [vmem:[#allocation10 + $0x670] ss:$28 sps:$4 sm:$0xff]  }
 0x635   :  { %6867 = vmatpush2.bf16.msra.mxu1 %v9352_v48 }
 0x636   :  { %6908 = vmatpush2.bf16.msra.mxu0 %v9355_v50  ;;  %6918 = vmatprep.subr.bf16.mxu1 %v9360_v52  ;;  %v9427_v50 = vld [vmem:[#allocation10 + $0x4b0] ss:$28 sps:$4 sm:$0xff]  }
 0x637   :  { %8048 = vmatprep.subr.bf16.mxu0 %v9361_v53  ;;  %v9428_v53 = vld [vmem:[#allocation10 + $0x638] ss:$28 sps:$4 sm:$0xff]  }
 0x638   :  { %6869 = vmatmul.mubr.bf16.vlgmr.msra.gmra.mxu1 %v9893_v41 }
 0x639   :  { %6910 = vmatmul.mubr.bf16.vlgmr.msra.gmra.mxu0 %v9882_v49  ;;  %6919 = vmatpush1.bf16.msra.mxu1 %v9358_v54  ;;  %v9429_v54 = vld [vmem:[#allocation10 + $0x478] ss:$28 sps:$4 sm:$0xff]  }
 0x63a   :  { %6950 = vmatprep.mubr.bf16.mxu1 %v9891_v39  ;;  %8049 = vmatpush3.bf16.msra.mxu0 %v9362_v55  ;;  %v9430_v55 = vld [vmem:[#allocation10 + $0x600] ss:$28 sps:$4 sm:$0xff]  }
 0x63b   :  { %6991 = vmatprep.mubr.bf16.mxu0 %v9880_v46  ;;  %6920 = vmatprep.subr.bf16.mxu1 %v9365_v56  ;;  %v9378_v46 = vld [vmem:[#allocation10 + $0x438] ss:$28 sps:$4 sm:$0xff]   ;;  %v9431_v56 = vld [vmem:[#allocation10 + $0x440] ss:$28 sps:$4 sm:$0xff]  }
 0x63c   :  { %8050 = vmatprep.subr.bf16.mxu0 %v9366_v57  ;;  %v9432_v57 = vld [vmem:[#allocation10 + $0x5c8] ss:$28 sps:$4 sm:$0xff]  }
 0x63d   :  { %6921 = vmatpush1.bf16.msra.mxu1 %v9363_v58  ;;  %v9434_v58 = vld [vmem:[#allocation10 + $0x590] ss:$28 sps:$4 sm:$0xff]  }
 0x63e   :  { %8051 = vmatpush3.bf16.msra.mxu0 %v9367_v59  ;;  %6922 = vmatprep.subr.bf16.mxu1 %v9370_v60  ;;  %v9435_v59 = vld [vmem:[#allocation10 + $0x3d0] ss:$28 sps:$4 sm:$0xff]   ;;  %v9436_v60 = vld [vmem:[#allocation10 + $0x558] ss:$28 sps:$4 sm:$0xff]  }
 0x63f   :  { %8052 = vmatprep.subr.bf16.mxu0 %v9371_v61  ;;  %v9437_v61 = vld [vmem:[#allocation10 + $0x398] ss:$28 sps:$4 sm:$0xff]  }
 0x641   :  { %6923 = vmatpush1.bf16.msra.mxu1 %v9368_v62  ;;  %v9911_v62 = vld [vmem:[%s9947_s8 + $0x14] sm:$0xff] }
 0x642   :  { %8053 = vmatpush3.bf16.msra.mxu0 %v9372_v15  ;;  %6924 = vmatprep.subr.bf16.mxu1 %v9375_v47  ;;  %v5529_v15 = vrot.slane %v9911_v62, %v9761_v1  ;;  %v5533_v47 = vrot.slane %v9911_v62, %v9764_v2 }
 0x643   :  { %8054 = vmatprep.subr.bf16.mxu0 %v9376_v6 }
 0x645   :  { %6925 = vmatpush1.bf16.msra.mxu1 %v9373_v3 }
 0x646   :  { %8055 = vmatpush3.bf16.msra.mxu0 %v9377_v4  ;;  %6926 = vmatprep.subr.bf16.mxu1 %v9380_v8 }
 0x647   :  { %8056 = vmatprep.subr.bf16.mxu0 %v9381_v9 }
 0x649   :  { %6927 = vmatpush1.bf16.msra.mxu1 %v9378_v46 }
 0x64a   :  { %8057 = vmatpush3.bf16.msra.mxu0 %v9382_v10  ;;  %6928 = vmatprep.subr.bf16.mxu1 %v9385_v11 }
 0x64b   :  { %8058 = vmatprep.subr.bf16.mxu0 %v9386_v14 }
 0x64d   :  { %6929 = vmatpush1.bf16.msra.mxu1 %v9383_v17 }
 0x64e   :  { %8059 = vmatpush3.bf16.msra.mxu0 %v9387_v21  ;;  %6930 = vmatprep.subr.bf16.mxu1 %v9390_v20 }
 0x64f   :  { %8060 = vmatprep.subr.bf16.mxu0 %v9391_v12 }
 0x651   :  { %6931 = vmatpush1.bf16.msra.mxu1 %v9388_v25 }
 0x652   :  { %8061 = vmatpush3.bf16.msra.mxu0 %v9392_v18  ;;  %6932 = vmatprep.subr.bf16.mxu1 %v9395_v13 }
 0x653   :  { %8062 = vmatprep.subr.bf16.mxu0 %v9396_v27 }
 0x655   :  { %6933 = vmatpush1.bf16.msra.mxu1 %v9393_v22 }
 0x656   :  { %8063 = vmatpush3.bf16.msra.mxu0 %v9397_v28  ;;  %6934 = vmatprep.subr.bf16.mxu1 %v9400_v19  ;;  %v5537_v28 = vrot.slane %v9911_v62, %v9783_v35  ;;  %v5541_v19 = vrot.slane %v9911_v62, %v9786_v5 }
 0x659   :  { %6935 = vmatpush2.bf16.msra.mxu1 %v9398_v23  ;;  %6992 = vmatmul.mubr.bf16.vlgmr.msra.gmra.mxu0 %v9882_v49  ;;  %v9416_v49 = vld [vmem:[#allocation10 + $0x588] ss:$28 sps:$4 sm:$0xff]  }
 0x65a   :  { %6936 = vmatprep.subr.bf16.mxu1 %v9403_v0 }
 0x65d   :  { %6937 = vmatpush2.bf16.msra.mxu1 %v9401_v29 }
 0x65e   :  { %6938 = vmatprep.subr.bf16.mxu1 %v9406_v30 }
 0x661   :  { %6939 = vmatpush2.bf16.msra.mxu1 %v9404_v32 }
 0x662   :  { %6940 = vmatprep.subr.bf16.mxu1 %v9409_v33 }
 0x665   :  { %6941 = vmatpush2.bf16.msra.mxu1 %v9407_v51 }
 0x666   :  { %6942 = vmatprep.subr.bf16.mxu1 %v9412_v7 }
 0x669   :  { %6943 = vmatpush2.bf16.msra.mxu1 %v9410_v24 }
 0x66a   :  { %6944 = vmatprep.subr.bf16.mxu1 %v9415_v26 }
 0x66d   :  { %6945 = vmatpush2.bf16.msra.mxu1 %v9413_v31 }
 0x66e   :  { %6946 = vmatprep.subr.bf16.mxu1 %v9418_v34 }
 0x671   :  { %6947 = vmatpush2.bf16.msra.mxu1 %v9416_v49 }
 0x672   :  { %6948 = vmatprep.subr.bf16.mxu1 %v9421_v36 }
 0x675   :  { %6949 = vmatpush2.bf16.msra.mxu1 %v9419_v16 }
 0x676   :  { %8070 = vmatprep.subr.bf16.mxu1 %v9422_v37 }
 0x678   :  { %6951 = vmatmul.mubr.bf16.vlgmr.msra.gmra.mxu1 %v9893_v41  ;;  %v6747_v42 = vpop.f32.mrf.mxu0 }
 0x679   :  { %8071 = vmatpush3.bf16.msra.mxu1 %v9423_v38  ;;  %7031 = vmatprep.mubr.bf16.mxu1 %v9891_v39  ;;  %v9433_v39 = vld [vmem:[#allocation10 + $0x408] ss:$28 sps:$4 sm:$0xff]   ;;  %v6748_v6 = vadd.f32 %v6747_v42, %v5529_v15 }
 0x67a   :  { %v6749_v44 = vpop.f32.mrf.mxu0  ;;  %8072 = vmatprep.subr.bf16.mxu1 %v9424_v40 }
 0x67b   :  { %v6750_v8 = vadd.f32 %v6749_v44, %v5533_v47 }
 0x67c   :  { %v6751_v48 = vpop.f32.mrf.mxu0 }
 0x67d   :  { %8073 = vmatpush3.bf16.msra.mxu1 %v9425_v43 }
 0x67e   :  { %v6752_v52 = vpop.f32.mrf.mxu0  ;;  %8074 = vmatprep.subr.bf16.mxu1 %v9426_v45 }
 0x67f   :  { %v5548_v52 = vsub.s32 5, %v9753_v63 }
 0x681   :  { %8075 = vmatpush3.bf16.msra.mxu1 %v9427_v50  ;;  %v5544_v50 = vsub.s32 4, %v9753_v63 }
 0x682   :  { %8076 = vmatprep.subr.bf16.mxu1 %v9428_v53 }
 0x683   :  { %v5545_v53 = vrot.slane %v9911_v62, %v5544_v50 }
 0x685   :  { %8077 = vmatpush3.bf16.msra.mxu1 %v9429_v54  ;;  %v5549_v54 = vrot.slane %v9911_v62, %v5548_v52 }
 0x686   :  { %8078 = vmatprep.subr.bf16.mxu1 %v9430_v55 }
 0x689   :  { %8079 = vmatpush3.bf16.msra.mxu1 %v9431_v56 }
 0x68a   :  { %8080 = vmatprep.subr.bf16.mxu1 %v9432_v57 }
 0x68d   :  { %8081 = vmatpush3.bf16.msra.mxu1 %v9433_v39 }
 0x68e   :  { %8082 = vmatprep.subr.bf16.mxu1 %v9434_v58 }
 0x691   :  { %8083 = vmatpush3.bf16.msra.mxu1 %v9435_v59 }
 0x692   :  { %8084 = vmatprep.subr.bf16.mxu1 %v9436_v60 }
 0x695   :  { %8085 = vmatpush3.bf16.msra.mxu1 %v9437_v61 }
 0x698   :  { %7032 = vmatmul.mubr.bf16.vlgmr.msra.gmra.mxu1 %v9893_v41 }
 0x6b8   :  { %v6788_v3 = vpop.f32.mrf.mxu1  ;;  %v6829_v4 = vpop.f32.mrf.mxu0 }
 0x6b9   :  { %v6789_v9 = vadd.f32 %v6788_v3, %v6748_v6  ;;  %v6830_v23 = vadd.f32 %v6829_v4, %v5537_v28 }
 0x6ba   :  { %v6790_v46 = vpop.f32.mrf.mxu1  ;;  %v6831_v10 = vpop.f32.mrf.mxu0 }
 0x6bb   :  { %v8033_v11 = vmul.f32 -1.442695, %v6789_v9  ;;  %v6791_v41 = vadd.f32 %v6790_v46, %v6750_v8  ;;  %v6832_v29 = vadd.f32 %v6831_v10, %v5541_v19  ;;  %v5552_v9 = vsub.s32 6, %v9753_v63 }
 0x6bc   :  { %v6792_v14 = vpop.f32.mrf.mxu1  ;;  %v6833_v17 = vpop.f32.mrf.mxu0 }
 0x6bd   :  { %9442 = vpow2.f32 %v8033_v11  ;;  %v8034_v21 = vmul.f32 -1.442695, %v6791_v41  ;;  %v5553_v46 = vrot.slane %v9911_v62, %v5552_v9 }
 0x6be   :  { %v6793_v20 = vpop.f32.mrf.mxu1  ;;  %v6834_v12 = vpop.f32.mrf.mxu0 }
 0x6bf   :  { %9444 = vpow2.f32 %v8034_v21 }
 0x6ca   :  { %v9443_v1 = vpop.eup %9442 }
 0x6cb   :  { %v7060_v25 = vadd.f32 1.0, %v9443_v1 }
 0x6cc   :  { %v9445_v18 = vpop.eup %9444 }
 0x6cd   :  { %v7061_v2 = vadd.f32 1.0, %v9445_v18  ;;  %9446 = vrcp.f32 %v7060_v25 }
 0x6cf   :  { %9448 = vrcp.f32 %v7061_v2 }
 0x6da   :  { %v9447_v13 = vpop.eup %9446 }
 0x6dc   :  { %v9449_v27 = vpop.eup %9448 }
 0x6dd   :  { %v8044_v22 = vpack.c.bf16 %v9449_v27, %v9447_v13 }
 0x6df   :  { %7110 = vst [vmem:[%s9948_s9] sm:$0xff] %v8044_v22 }
 0x6f8   :  { %v6870_v0 = vpop.f32.mrf.mxu1 }
 0x6f9   :  { %v6871_v30 = vadd.f32 %v6870_v0, %v6830_v23  ;;  %v6911_v32 = vpop.f32.mrf.mxu0 }
 0x6fa   :  { %v6872_v33 = vpop.f32.mrf.mxu1  ;;  %v6912_v55 = vadd.f32 %v6911_v32, %v5545_v53 }
 0x6fb   :  { %v8035_v51 = vmul.f32 -1.442695, %v6871_v30  ;;  %v6873_v7 = vadd.f32 %v6872_v33, %v6832_v29  ;;  %v6913_v24 = vpop.f32.mrf.mxu0 }
 0x6fc   :  { %v6874_v26 = vpop.f32.mrf.mxu1  ;;  %v6914_v57 = vadd.f32 %v6913_v24, %v5549_v54 }
 0x6fd   :  { %9450 = vpow2.f32 %v8035_v51  ;;  %v8036_v31 = vmul.f32 -1.442695, %v6873_v7  ;;  %v6915_v34 = vpop.f32.mrf.mxu0 }
 0x6fe   :  { %v6875_v49 = vpop.f32.mrf.mxu1 }
 0x6ff   :  { %9452 = vpow2.f32 %v8036_v31  ;;  %v6916_v36 = vpop.f32.mrf.mxu0 }
 0x70a   :  { %v9451_v35 = vpop.eup %9450 }
 0x70b   :  { %v7062_v16 = vadd.f32 1.0, %v9451_v35 }
 0x70c   :  { %v9453_v37 = vpop.eup %9452 }
 0x70d   :  { %v7063_v5 = vadd.f32 1.0, %v9453_v37  ;;  %9454 = vrcp.f32 %v7062_v16 }
 0x70f   :  { %9456 = vrcp.f32 %v7063_v5 }
 0x719   :  { %v8064_v38 = vpop.f32.mrf.mxu0 }
 0x71a   :  { %v9455_v40 = vpop.eup %9454 }
 0x71b   :  { %v8065_v42 = vpop.f32.mrf.mxu0 }
 0x71c   :  { %v9457_v43 = vpop.eup %9456  ;;  %v8066_v10 = vadd.f32 %v8065_v42, %v8064_v38 }
 0x71d   :  { %v8045_v44 = vpack.c.bf16 %v9457_v43, %v9455_v40  ;;  %v8067_v45 = vpop.f32.mrf.mxu0 }
 0x71e   :  { %v6994_v17 = vadd.f32 %v8066_v10, %v5553_v46 }
 0x71f   :  { %7111 = vst [vmem:[%s9948_s9 + $0x8] sm:$0xff] %v8045_v44  ;;  %v8068_v48 = vpop.f32.mrf.mxu0 }
 0x738   :  { %v6952_v56 = vpop.f32.mrf.mxu1 }
 0x739   :  { %v6953_v39 = vadd.f32 %v6952_v56, %v6912_v55 }
 0x73a   :  { %v6954_v58 = vpop.f32.mrf.mxu1 }
 0x73b   :  { %v8037_v59 = vmul.f32 -1.442695, %v6953_v39  ;;  %v6955_v60 = vadd.f32 %v6954_v58, %v6914_v57 }
 0x73c   :  { %v6956_v61 = vpop.f32.mrf.mxu1 }
 0x73d   :  { %9458 = vpow2.f32 %v8037_v59  ;;  %v8038_v15 = vmul.f32 -1.442695, %v6955_v60 }
 0x73e   :  { %v6957_v47 = vpop.f32.mrf.mxu1 }
 0x73f   :  { %9460 = vpow2.f32 %v8038_v15 }
 0x74a   :  { %v9459_v6 = vpop.eup %9458 }
 0x74b   :  { %v7064_v3 = vadd.f32 1.0, %v9459_v6 }
 0x74c   :  { %v9461_v4 = vpop.eup %9460 }
 0x74d   :  { %v7065_v8 = vadd.f32 1.0, %v9461_v4  ;;  %9462 = vrcp.f32 %v7064_v3 }
 0x74f   :  { %9464 = vrcp.f32 %v7065_v8 }
 0x758   :  { %v8086_v11 = vpop.f32.mrf.mxu1 }
 0x75a   :  { %v8087_v41 = vpop.f32.mrf.mxu1  ;;  %v9463_v14 = vpop.eup %9462 }
 0x75b   :  { %v8088_v21 = vadd.f32 %v8087_v41, %v8086_v11 }
 0x75c   :  { %v9465_v20 = vpop.eup %9464  ;;  %v8089_v12 = vpop.f32.mrf.mxu1 }
 0x75d   :  { %v8046_v1 = vpack.c.bf16 %v9465_v20, %v9463_v14  ;;  %v7034_v25 = vadd.f32 %v8088_v21, %v6994_v17 }
 0x75e   :  { %v8090_v18 = vpop.f32.mrf.mxu1 }
 0x75f   :  { %7112 = vst [vmem:[%s9948_s9 + $0x10] sm:$0xff] %v8046_v1  ;;  %v8039_v2 = vmul.f32 -1.442695, %v7034_v25 }
 0x761   :  { %9466 = vpow2.f32 %v8039_v2 }
 0x76e   :  { %v9467_v63 = vpop.eup %9466 }
 0x76f   :  { %v7066_v13 = vadd.f32 1.0, %v9467_v63 }
 0x771   :  { %9468 = vrcp.f32 %v7066_v13 }
 0x77e   :  { %v9469_v62 = vpop.eup %9468 }
 0x77f   :  { %v8047_v27 = vpack.c.bf16 %v9469_v62, %v9469_v62 }
 0x781   :  { %7113 = vst [vmem:[%s9948_s9 + $0x18] sm:$0xf] %v8047_v27 }
 0x782   :  { %7126 = vsyncpa [#allocation3], 1 }
 0x783   :  { %7127 = vsyncpa [#allocation5], 1 }
 0x784   :  { %7128 = vsyncpa [#allocation8], 1 }
 0x785   :  { %7129 = vsyncpa [#allocation11], 1 }

</bundles_post_ra>
